<compile_context>
chip_gen: v7x
topology: tpu7x:2x2x1
jax: 0.10.0
libtpu: 0.0.40
codegen_flags: <defaults>
</compile_context>

<pallas_src>
import functools

import jax
import jax.numpy as jnp
from jax.experimental import pallas as pl
from jax.experimental.pallas import tpu as pltpu

# ---- small, deterministic problem sizes (consistent with the module) ----
S_LEN = 8          # source sequence length
T_LEN = 6          # target sequence length
BATCH = 2
EMBED = 32         # embed_dim
HID = 32           # hidden_dim
VOCAB_ART = 50     # article_vocab_size
VOCAB_SUM = 40     # summary_vocab_size


def _gates(pre, H):
    """Split pre-activations into (i, f, g, o) with PyTorch's gate order."""
    i = jax.nn.sigmoid(pre[:, 0 * H:1 * H])
    f = jax.nn.sigmoid(pre[:, 1 * H:2 * H])
    g = jnp.tanh(pre[:, 2 * H:3 * H])
    o = jax.nn.sigmoid(pre[:, 3 * H:4 * H])
    return i, f, g, o


# ---------------------------------------------------------------------------
# Single fused Pallas kernel: encoder + attention + decoder + fc_out
# ---------------------------------------------------------------------------
def seq2seq_fused_kernel(
        src_ref,         # (S*B, E)  source embeddings, time-major flattened
        tgt_ref,         # (T*B, E)  target embeddings, time-major flattened
        enc_wih_fb_ref,  # (E, 8H)   [Wih_fwd | Wih_bwd]
        enc_b_fb_ref,    # (1, 8H)   [b_fwd  | b_bwd]
        enc_whh_f_ref,   # (H, 4H)
        enc_whh_b_ref,   # (H, 4H)
        hproj_w_ref,     # (2H, H)
        hproj_b_ref,     # (1, H)
        cproj_w_ref,     # (2H, H)
        cproj_b_ref,     # (1, H)
        attn_w1e_ref,    # (2H, H)   attn first linear, encoder rows
        attn_w1h_ref,    # (H, H)    attn first linear, hidden rows
        attn_b1_ref,     # (1, H)
        attn_w2_ref,     # (1, H)    attn second linear as a row (bias dropped)
        dec_wx_ref,      # (E, 4H)   decoder input->hidden (embedding part)
        dec_b_ref,       # (1, 4H)
        dec_wch_ref,     # (3H, 4H)  [Wih_context ; Whh] fused
        fcw_ref,         # (H, VPAD)
        fcb_ref,         # (1, VPAD)
        out_ref,         # (T*B, VPAD)
        enc_sc,          # scratch: (B, S, 2H) encoder outputs, batch-major
        *, S, T, B, H):
    f32 = jnp.float32
    dot = functools.partial(jnp.dot, preferred_element_type=f32)

    # ----------------- bidirectional encoder (both directions fused) -------
    # Hoisted: input->hidden projection for every timestep and both directions
    # in ONE matmul, with biases folded in once.
    xw = dot(src_ref[...], enc_wih_fb_ref[...]) + enc_b_fb_ref[...]   # (S*B, 8H)
    whh_f = enc_whh_f_ref[...]
    whh_b = enc_whh_b_ref[...]

    h_f = jnp.zeros((B, H), f32)
    c_f = jnp.zeros((B, H), f32)
    h_b = jnp.zeros((B, H), f32)
    c_b = jnp.zeros((B, H), f32)

    # Trace-time unrolled recurrence; forward / backward steps interleaved so
    # the two independent chains can overlap on the MXU/VPU/EUP slots.
    for k in range(S):
        kb = S - 1 - k
        pre_f = xw[k * B:(k + 1) * B, 0:4 * H] + dot(h_f, whh_f)
        pre_b = xw[kb * B:(kb + 1) * B, 4 * H:8 * H] + dot(h_b, whh_b)

        i, f, g, o = _gates(pre_f, H)
        c_f = f * c_f + i * g
        h_f = o * jnp.tanh(c_f)

        i, f, g, o = _gates(pre_b, H)
        c_b = f * c_b + i * g
        h_b = o * jnp.tanh(c_b)

        enc_sc[:, k:k + 1, 0:H] = h_f[:, None, :]
        enc_sc[:, kb:kb + 1, H:2 * H] = h_b[:, None, :]

    enc = enc_sc[...]                                     # (B, S, 2H)
    h_enc = jnp.concatenate([h_f, h_b], axis=-1)          # (B, 2H)
    c_enc = jnp.concatenate([c_f, c_b], axis=-1)          # (B, 2H)

    # ----------------- decoder initial state -------------------------------
    h_dec = jnp.tanh(dot(h_enc, hproj_w_ref[...]) + hproj_b_ref[...])   # (B, H)
    c_dec = jnp.tanh(dot(c_enc, cproj_w_ref[...]) + cproj_b_ref[...])   # (B, H)

    # Hoisted (target-step invariant): encoder part of the attention MLP,
    # bias folded in.  Computed once for all T decoder steps.
    e_pre = (dot(enc.reshape(B * S, 2 * H), attn_w1e_ref[...])
             + attn_b1_ref[...]).reshape(B, S, H)
    w2 = attn_w2_ref[...]                                 # (1, H)
    w1h = attn_w1h_ref[...]
    wch = dec_wch_ref[...]

    # Hoisted: decoder input->hidden projection for all target steps (+ bias).
    xw_dec = dot(tgt_ref[...], dec_wx_ref[...]) + dec_b_ref[...]        # (T*B, 4H)

    hs = []
    for t in range(T):
        # ---- attention (softmax over S kept on the lane axis) ----
        h_term = dot(h_dec, w1h)                                        # (B, H)
        e = jnp.tanh(e_pre + h_term[:, None, :])                        # (B, S, H)
        # NOTE: attn second-linear bias omitted - softmax is shift-invariant.
        energy = jnp.sum(e * w2[None, :, :], axis=-1)                   # (B, S)
        m = jnp.max(energy, axis=-1, keepdims=True)
        ew = jnp.exp(energy - m)
        attn = ew / jnp.sum(ew, axis=-1, keepdims=True)                 # (B, S)
        context = jnp.einsum('bqs,bsk->bqk', attn[:, None, :], enc,
                             preferred_element_type=f32)[:, 0, :]       # (B, 2H)

        # ---- decoder LSTM cell: fused [context ; h] @ (3H, 4H) ----
        ch = jnp.concatenate([context, h_dec], axis=-1)                 # (B, 3H)
        pre = xw_dec[t * B:(t + 1) * B, :] + dot(ch, wch)               # (B, 4H)
        i, f, g, o = _gates(pre, H)
        c_dec = f * c_dec + i * g
        h_dec = o * jnp.tanh(c_dec)
        hs.append(h_dec)

    # ----------------- output projection: one lane-dense matmul + store ----
    h_all = jnp.concatenate(hs, axis=0)                                 # (T*B, H)
    out_ref[...] = dot(h_all, fcw_ref[...]) + fcb_ref[...]              # (T*B, VPAD)


# ---------------------------------------------------------------------------
# Wrapper
# ---------------------------------------------------------------------------
def seq2seq_forward(p, src, tgt):
    """src: (S, B) int32, tgt: (T, B) int32 -> logits (T, B, VOCAB_SUM)."""
    S, B = src.shape
    T = tgt.shape[0]
    E = p["enc_emb"].shape[1]
    H = p["dec_whh"].shape[0]
    V = p["fc_w"].shape[1]
    vpad = pl.cdiv(V, 128) * 128          # lane-dense output vocab

    # Embedding lookups (plain JAX gather); emb_dropout == identity at eval.
    src_flat = p["enc_emb"][src].reshape(S * B, E)
    tgt_flat = p["dec_emb"][tgt].reshape(T * B, E)

    # One-time weight restructuring (wrapper-side; folded by XLA under jit).
    enc_wih_fb = jnp.concatenate([p["enc_wih_f"], p["enc_wih_b"]], axis=1)   # (E, 8H)
    enc_b_fb = jnp.concatenate([p["enc_b_f"], p["enc_b_b"]], axis=1)         # (1, 8H)
    dec_wch = jnp.concatenate([p["dec_wih_c"], p["dec_whh"]], axis=0)        # (3H, 4H)
    fcw_pad = jnp.zeros((H, vpad), jnp.float32).at[:, :V].set(p["fc_w"])
    fcb_pad = jnp.zeros((1, vpad), jnp.float32).at[:, :V].set(p["fc_b"])

    kernel = functools.partial(seq2seq_fused_kernel, S=S, T=T, B=B, H=H)
    logits_flat = pl.pallas_call(
        kernel,
        out_shape=jax.ShapeDtypeStruct((T * B, vpad), jnp.float32),
        scratch_shapes=[pltpu.VMEM((B, S, 2 * H), jnp.float32)],
    )(src_flat, tgt_flat,
      enc_wih_fb, enc_b_fb, p["enc_whh_f"], p["enc_whh_b"],
      p["hproj_w"], p["hproj_b"], p["cproj_w"], p["cproj_b"],
      p["attn_w1"][:2 * H], p["attn_w1"][2 * H:], p["attn_b1"], p["attn_w2"].T,
      p["dec_wih_x"], p["dec_b"], dec_wch,
      fcw_pad, fcb_pad)

    return logits_flat.reshape(T, B, vpad)[:, :, :V]


# ---------------------------------------------------------------------------
# Pure-JAX reference (same math, no Pallas) for verification
# ---------------------------------------------------------------------------
def _lstm_cell_ref(x, h, c, wih, whh, b, H):
    gates = x @ wih + h @ whh + b
    i = jax.nn.sigmoid(gates[:, 0 * H:1 * H])
    f = jax.nn.sigmoid(gates[:, 1 * H:2 * H])
    g = jnp.tanh(gates[:, 2 * H:3 * H])
    o = jax.nn.sigmoid(gates[:, 3 * H:4 * H])
    c2 = f * c + i * g
    return o * jnp.tanh(c2), c2


def reference_forward(p, src, tgt):
    H = HID
    src_emb = p["enc_emb"][src]
    S, B, _ = src_emb.shape
    h = jnp.zeros((B, H)); c = jnp.zeros((B, H)); outs_f = []
    for t in range(S):
        h, c = _lstm_cell_ref(src_emb[t], h, c, p["enc_wih_f"], p["enc_whh_f"], p["enc_b_f"], H)
        outs_f.append(h)
    h_f, c_f = h, c
    h = jnp.zeros((B, H)); c = jnp.zeros((B, H)); outs_b = [None] * S
    for t in range(S - 1, -1, -1):
        h, c = _lstm_cell_ref(src_emb[t], h, c, p["enc_wih_b"], p["enc_whh_b"], p["enc_b_b"], H)
        outs_b[t] = h
    h_b, c_b = h, c
    enc_out = jnp.concatenate([jnp.stack(outs_f), jnp.stack(outs_b)], axis=2)
    h_enc = jnp.concatenate([h_f, h_b], axis=1)
    c_enc = jnp.concatenate([c_f, c_b], axis=1)
    h_dec = jnp.tanh(h_enc @ p["hproj_w"] + p["hproj_b"])
    c_dec = jnp.tanh(c_enc @ p["cproj_w"] + p["cproj_b"])
    outputs = []
    for i in range(tgt.shape[0]):
        e = jnp.tanh(jnp.einsum("sbk,kh->sbh", enc_out, p["attn_w1"][:2 * H])
                     + (h_dec @ p["attn_w1"][2 * H:] + p["attn_b1"])[None])
        energy = jnp.einsum("sbh,hk->sbk", e, p["attn_w2"]) + p["attn_b2"]  # (S,B,1)
        attn = jax.nn.softmax(energy, axis=0)
        context = jnp.sum(enc_out * attn, axis=0)                           # (B,2H)
        x = p["dec_emb"][tgt[i]]                                            # (B,E)
        gates = (x @ p["dec_wih_x"] + context @ p["dec_wih_c"]
                 + h_dec @ p["dec_whh"] + p["dec_b"])
        ig = jax.nn.sigmoid(gates[:, 0 * H:1 * H])
        fg = jax.nn.sigmoid(gates[:, 1 * H:2 * H])
        gg = jnp.tanh(gates[:, 2 * H:3 * H])
        og = jax.nn.sigmoid(gates[:, 3 * H:4 * H])
        c_dec = fg * c_dec + ig * gg
        h_dec = og * jnp.tanh(c_dec)
        outputs.append(h_dec @ p["fc_w"] + p["fc_b"])
    return jnp.stack(outputs)


# ---------------------------------------------------------------------------
# Deterministic parameter init
# ---------------------------------------------------------------------------
def init_params(key):
    H, E = HID, EMBED
    k = 1.0 / jnp.sqrt(H).astype(jnp.float32)

    def u(key, shape, scale=k):
        return jax.random.uniform(key, shape, jnp.float32, -scale, scale)

    keys = jax.random.split(key, 32)
    it = iter(keys)
    p = {
        "enc_emb": u(next(it), (VOCAB_ART, E), 0.1),
        "dec_emb": u(next(it), (VOCAB_SUM, E), 0.1),
        # encoder bidirectional LSTM
        "enc_wih_f": u(next(it), (E, 4 * H)), "enc_whh_f": u(next(it), (H, 4 * H)),
        "enc_b_f": u(next(it), (1, 4 * H)),
        "enc_wih_b": u(next(it), (E, 4 * H)), "enc_whh_b": u(next(it), (H, 4 * H)),
        "enc_b_b": u(next(it), (1, 4 * H)),
        # h/c projections: Linear(2H -> H) + tanh
        "hproj_w": u(next(it), (2 * H, H)), "hproj_b": u(next(it), (1, H)),
        "cproj_w": u(next(it), (2 * H, H)), "cproj_b": u(next(it), (1, H)),
        # attention: Linear(3H -> H), tanh, Linear(H -> 1)
        "attn_w1": u(next(it), (3 * H, H)), "attn_b1": u(next(it), (1, H)),
        "attn_w2": u(next(it), (H, 1)), "attn_b2": u(next(it), (1, 1)),
        # decoder LSTM, input = [emb (E) ; context (2H)]
        "dec_wih_x": u(next(it), (E, 4 * H)), "dec_wih_c": u(next(it), (2 * H, 4 * H)),
        "dec_whh": u(next(it), (H, 4 * H)), "dec_b": u(next(it), (1, 4 * H)),
        # fc_out: Linear(H -> summary_vocab)
        "fc_w": u(next(it), (H, VOCAB_SUM)), "fc_b": u(next(it), (1, VOCAB_SUM)),
    }
    return p


if __name__ == "__main__":
    root = jax.random.PRNGKey(0)
    kp, ks, kt = jax.random.split(root, 3)
    params = init_params(kp)

    src = jax.random.randint(ks, (S_LEN, BATCH), 0, VOCAB_ART, dtype=jnp.int32)
    tgt = jax.random.randint(kt, (T_LEN, BATCH), 0, VOCAB_SUM, dtype=jnp.int32)

    fwd = jax.jit(seq2seq_forward)
    logits = jax.block_until_ready(fwd(params, src, tgt))

    ref = reference_forward(params, src, tgt)
    err = float(jnp.max(jnp.abs(logits - ref)))
    assert logits.shape == (T_LEN, BATCH, VOCAB_SUM), logits.shape
    # Tolerance absorbs possible MXU f32 pass-count differences between the
    # Pallas matmul lowering and XLA's default matmul lowering in the reference.
    assert err < 1e-2, f"mismatch vs reference: {err}"

    print("KERNEL_OK")
</pallas_src>

<mosaic_0001>
module attributes {stable_mosaic.version = 11 : i64} {
  func.func @seq2seq_fused_kernel(%arg0: memref<16x32xf32, #tpu.memory_space<vmem>>, %arg1: memref<12x32xf32, #tpu.memory_space<vmem>>, %arg2: memref<32x256xf32, #tpu.memory_space<vmem>>, %arg3: memref<1x256xf32, #tpu.memory_space<vmem>>, %arg4: memref<32x128xf32, #tpu.memory_space<vmem>>, %arg5: memref<32x128xf32, #tpu.memory_space<vmem>>, %arg6: memref<64x32xf32, #tpu.memory_space<vmem>>, %arg7: memref<1x32xf32, #tpu.memory_space<vmem>>, %arg8: memref<64x32xf32, #tpu.memory_space<vmem>>, %arg9: memref<1x32xf32, #tpu.memory_space<vmem>>, %arg10: memref<64x32xf32, #tpu.memory_space<vmem>>, %arg11: memref<32x32xf32, #tpu.memory_space<vmem>>, %arg12: memref<1x32xf32, #tpu.memory_space<vmem>>, %arg13: memref<1x32xf32, #tpu.memory_space<vmem>>, %arg14: memref<32x128xf32, #tpu.memory_space<vmem>>, %arg15: memref<1x128xf32, #tpu.memory_space<vmem>>, %arg16: memref<96x128xf32, #tpu.memory_space<vmem>>, %arg17: memref<32x128xf32, #tpu.memory_space<vmem>>, %arg18: memref<1x128xf32, #tpu.memory_space<vmem>>, %arg19: memref<12x128xf32, #tpu.memory_space<vmem>>, %arg20: memref<2x8x64xf32, #tpu.memory_space<vmem>>) attributes {dimension_semantics = [], scalar_prefetch = 0 : i64, scratch_operands = 1 : i64, tpu.core_type = #tpu.core_type<tc>} {
    %c0 = arith.constant 0 : index
    %c0_0 = arith.constant 0 : index
    %0 = vector.load %arg0[%c0, %c0_0] : memref<16x32xf32, #tpu.memory_space<vmem>>, vector<16x32xf32>
    %c0_1 = arith.constant 0 : index
    %c0_2 = arith.constant 0 : index
    %1 = vector.load %arg2[%c0_1, %c0_2] : memref<32x256xf32, #tpu.memory_space<vmem>>, vector<32x256xf32>
    %cst = arith.constant dense<0.000000e+00> : vector<16x256xf32>
    %2 = tpu.matmul %0, %1, %cst {dimension_numbers = #tpu.dot_dimension_numbers<[1], [0], [0], [1], [0, 0, 1, 1], [], []>} : vector<16x32xf32>, vector<32x256xf32>, vector<16x256xf32> -> vector<16x256xf32>
    %c0_3 = arith.constant 0 : index
    %c0_4 = arith.constant 0 : index
    %3 = vector.load %arg3[%c0_3, %c0_4] : memref<1x256xf32, #tpu.memory_space<vmem>>, vector<1x256xf32>
    %4 = vector.broadcast %3 : vector<1x256xf32> to vector<16x256xf32>
    %5 = arith.addf %2, %4 : vector<16x256xf32>
    %c0_5 = arith.constant 0 : index
    %c0_6 = arith.constant 0 : index
    %6 = vector.load %arg4[%c0_5, %c0_6] : memref<32x128xf32, #tpu.memory_space<vmem>>, vector<32x128xf32>
    %c0_7 = arith.constant 0 : index
    %c0_8 = arith.constant 0 : index
    %7 = vector.load %arg5[%c0_7, %c0_8] : memref<32x128xf32, #tpu.memory_space<vmem>>, vector<32x128xf32>
    %cst_9 = arith.constant 0.000000e+00 : f32
    %8 = vector.broadcast %cst_9 : f32 to vector<2x32xf32>
    %cst_10 = arith.constant 0.000000e+00 : f32
    %9 = vector.broadcast %cst_10 : f32 to vector<2x32xf32>
    %cst_11 = arith.constant 0.000000e+00 : f32
    %10 = vector.broadcast %cst_11 : f32 to vector<2x32xf32>
    %cst_12 = arith.constant 0.000000e+00 : f32
    %11 = vector.broadcast %cst_12 : f32 to vector<2x32xf32>
    %12 = vector.extract_strided_slice %5 {offsets = [0, 0], sizes = [2, 128], strides = [1, 1]} : vector<16x256xf32> to vector<2x128xf32>
    %cst_13 = arith.constant dense<0.000000e+00> : vector<2x128xf32>
    %13 = tpu.matmul %8, %6, %cst_13 {dimension_numbers = #tpu.dot_dimension_numbers<[1], [0], [0], [1], [0, 0, 1, 1], [], []>} : vector<2x32xf32>, vector<32x128xf32>, vector<2x128xf32> -> vector<2x128xf32>
    %14 = arith.addf %12, %13 : vector<2x128xf32>
    %15 = vector.extract_strided_slice %5 {offsets = [14, 128], sizes = [2, 128], strides = [1, 1]} : vector<16x256xf32> to vector<2x128xf32>
    %cst_14 = arith.constant dense<0.000000e+00> : vector<2x128xf32>
    %16 = tpu.matmul %10, %7, %cst_14 {dimension_numbers = #tpu.dot_dimension_numbers<[1], [0], [0], [1], [0, 0, 1, 1], [], []>} : vector<2x32xf32>, vector<32x128xf32>, vector<2x128xf32> -> vector<2x128xf32>
    %17 = arith.addf %15, %16 : vector<2x128xf32>
    %18 = vector.extract_strided_slice %14 {offsets = [0, 0], sizes = [2, 32], strides = [1, 1]} : vector<2x128xf32> to vector<2x32xf32>
    %19 = arith.negf %18 : vector<2x32xf32>
    %20 = math.exp %19 : vector<2x32xf32>
    %cst_15 = arith.constant 1.000000e+00 : f32
    %21 = vector.broadcast %cst_15 : f32 to vector<2x32xf32>
    %22 = arith.addf %21, %20 : vector<2x32xf32>
    %23 = arith.divf %21, %22 : vector<2x32xf32>
    %24 = vector.extract_strided_slice %14 {offsets = [0, 32], sizes = [2, 32], strides = [1, 1]} : vector<2x128xf32> to vector<2x32xf32>
    %25 = arith.negf %24 : vector<2x32xf32>
    %26 = math.exp %25 : vector<2x32xf32>
    %cst_16 = arith.constant 1.000000e+00 : f32
    %27 = vector.broadcast %cst_16 : f32 to vector<2x32xf32>
    %28 = arith.addf %27, %26 : vector<2x32xf32>
    %29 = arith.divf %27, %28 : vector<2x32xf32>
    %30 = vector.extract_strided_slice %14 {offsets = [0, 64], sizes = [2, 32], strides = [1, 1]} : vector<2x128xf32> to vector<2x32xf32>
    %31 = math.tanh %30 : vector<2x32xf32>
    %32 = vector.extract_strided_slice %14 {offsets = [0, 96], sizes = [2, 32], strides = [1, 1]} : vector<2x128xf32> to vector<2x32xf32>
    %33 = arith.negf %32 : vector<2x32xf32>
    %34 = math.exp %33 : vector<2x32xf32>
    %cst_17 = arith.constant 1.000000e+00 : f32
    %35 = vector.broadcast %cst_17 : f32 to vector<2x32xf32>
    %36 = arith.addf %35, %34 : vector<2x32xf32>
    %37 = arith.divf %35, %36 : vector<2x32xf32>
    %38 = arith.mulf %29, %9 : vector<2x32xf32>
    %39 = arith.mulf %23, %31 : vector<2x32xf32>
    %40 = arith.addf %38, %39 : vector<2x32xf32>
    %41 = math.tanh %40 : vector<2x32xf32>
    %42 = arith.mulf %37, %41 : vector<2x32xf32>
    %43 = vector.extract_strided_slice %17 {offsets = [0, 0], sizes = [2, 32], strides = [1, 1]} : vector<2x128xf32> to vector<2x32xf32>
    %44 = arith.negf %43 : vector<2x32xf32>
    %45 = math.exp %44 : vector<2x32xf32>
    %cst_18 = arith.constant 1.000000e+00 : f32
    %46 = vector.broadcast %cst_18 : f32 to vector<2x32xf32>
    %47 = arith.addf %46, %45 : vector<2x32xf32>
    %48 = arith.divf %46, %47 : vector<2x32xf32>
    %49 = vector.extract_strided_slice %17 {offsets = [0, 32], sizes = [2, 32], strides = [1, 1]} : vector<2x128xf32> to vector<2x32xf32>
    %50 = arith.negf %49 : vector<2x32xf32>
    %51 = math.exp %50 : vector<2x32xf32>
    %cst_19 = arith.constant 1.000000e+00 : f32
    %52 = vector.broadcast %cst_19 : f32 to vector<2x32xf32>
    %53 = arith.addf %52, %51 : vector<2x32xf32>
    %54 = arith.divf %52, %53 : vector<2x32xf32>
    %55 = vector.extract_strided_slice %17 {offsets = [0, 64], sizes = [2, 32], strides = [1, 1]} : vector<2x128xf32> to vector<2x32xf32>
    %56 = math.tanh %55 : vector<2x32xf32>
    %57 = vector.extract_strided_slice %17 {offsets = [0, 96], sizes = [2, 32], strides = [1, 1]} : vector<2x128xf32> to vector<2x32xf32>
    %58 = arith.negf %57 : vector<2x32xf32>
    %59 = math.exp %58 : vector<2x32xf32>
    %cst_20 = arith.constant 1.000000e+00 : f32
    %60 = vector.broadcast %cst_20 : f32 to vector<2x32xf32>
    %61 = arith.addf %60, %59 : vector<2x32xf32>
    %62 = arith.divf %60, %61 : vector<2x32xf32>
    %63 = arith.mulf %54, %11 : vector<2x32xf32>
    %64 = arith.mulf %48, %56 : vector<2x32xf32>
    %65 = arith.addf %63, %64 : vector<2x32xf32>
    %66 = math.tanh %65 : vector<2x32xf32>
    %67 = arith.mulf %62, %66 : vector<2x32xf32>
    %68 = vector.shape_cast %42 : vector<2x32xf32> to vector<2x1x32xf32>
    %c0_21 = arith.constant 0 : index
    %c0_22 = arith.constant 0 : index
    %c0_23 = arith.constant 0 : index
    %69 = vector.load %arg20[%c0_21, %c0_22, %c0_23] : memref<2x8x64xf32, #tpu.memory_space<vmem>>, vector<2x1x32xf32>
    tpu.vector_store %arg20[%c0_21, %c0_22, %c0_23], %68 {strides = array<i32>} : memref<2x8x64xf32, #tpu.memory_space<vmem>>, vector<2x1x32xf32>,
    %70 = vector.shape_cast %67 : vector<2x32xf32> to vector<2x1x32xf32>
    %c0_24 = arith.constant 0 : index
    %c7 = arith.constant 7 : index
    %c32 = arith.constant 32 : index
    %71 = vector.load %arg20[%c0_24, %c7, %c32] : memref<2x8x64xf32, #tpu.memory_space<vmem>>, vector<2x1x32xf32>
    tpu.vector_store %arg20[%c0_24, %c7, %c32], %70 {strides = array<i32>} : memref<2x8x64xf32, #tpu.memory_space<vmem>>, vector<2x1x32xf32>,
    %72 = vector.extract_strided_slice %5 {offsets = [2, 0], sizes = [2, 128], strides = [1, 1]} : vector<16x256xf32> to vector<2x128xf32>
    %cst_25 = arith.constant dense<0.000000e+00> : vector<2x128xf32>
    %73 = tpu.matmul %42, %6, %cst_25 {dimension_numbers = #tpu.dot_dimension_numbers<[1], [0], [0], [1], [0, 0, 1, 1], [], []>} : vector<2x32xf32>, vector<32x128xf32>, vector<2x128xf32> -> vector<2x128xf32>
    %74 = arith.addf %72, %73 : vector<2x128xf32>
    %75 = vector.extract_strided_slice %5 {offsets = [12, 128], sizes = [2, 128], strides = [1, 1]} : vector<16x256xf32> to vector<2x128xf32>
    %cst_26 = arith.constant dense<0.000000e+00> : vector<2x128xf32>
    %76 = tpu.matmul %67, %7, %cst_26 {dimension_numbers = #tpu.dot_dimension_numbers<[1], [0], [0], [1], [0, 0, 1, 1], [], []>} : vector<2x32xf32>, vector<32x128xf32>, vector<2x128xf32> -> vector<2x128xf32>
    %77 = arith.addf %75, %76 : vector<2x128xf32>
    %78 = vector.extract_strided_slice %74 {offsets = [0, 0], sizes = [2, 32], strides = [1, 1]} : vector<2x128xf32> to vector<2x32xf32>
    %79 = arith.negf %78 : vector<2x32xf32>
    %80 = math.exp %79 : vector<2x32xf32>
    %cst_27 = arith.constant 1.000000e+00 : f32
    %81 = vector.broadcast %cst_27 : f32 to vector<2x32xf32>
    %82 = arith.addf %81, %80 : vector<2x32xf32>
    %83 = arith.divf %81, %82 : vector<2x32xf32>
    %84 = vector.extract_strided_slice %74 {offsets = [0, 32], sizes = [2, 32], strides = [1, 1]} : vector<2x128xf32> to vector<2x32xf32>
    %85 = arith.negf %84 : vector<2x32xf32>
    %86 = math.exp %85 : vector<2x32xf32>
    %cst_28 = arith.constant 1.000000e+00 : f32
    %87 = vector.broadcast %cst_28 : f32 to vector<2x32xf32>
    %88 = arith.addf %87, %86 : vector<2x32xf32>
    %89 = arith.divf %87, %88 : vector<2x32xf32>
    %90 = vector.extract_strided_slice %74 {offsets = [0, 64], sizes = [2, 32], strides = [1, 1]} : vector<2x128xf32> to vector<2x32xf32>
    %91 = math.tanh %90 : vector<2x32xf32>
    %92 = vector.extract_strided_slice %74 {offsets = [0, 96], sizes = [2, 32], strides = [1, 1]} : vector<2x128xf32> to vector<2x32xf32>
    %93 = arith.negf %92 : vector<2x32xf32>
    %94 = math.exp %93 : vector<2x32xf32>
    %cst_29 = arith.constant 1.000000e+00 : f32
    %95 = vector.broadcast %cst_29 : f32 to vector<2x32xf32>
    %96 = arith.addf %95, %94 : vector<2x32xf32>
    %97 = arith.divf %95, %96 : vector<2x32xf32>
    %98 = arith.mulf %89, %40 : vector<2x32xf32>
    %99 = arith.mulf %83, %91 : vector<2x32xf32>
    %100 = arith.addf %98, %99 : vector<2x32xf32>
    %101 = math.tanh %100 : vector<2x32xf32>
    %102 = arith.mulf %97, %101 : vector<2x32xf32>
    %103 = vector.extract_strided_slice %77 {offsets = [0, 0], sizes = [2, 32], strides = [1, 1]} : vector<2x128xf32> to vector<2x32xf32>
    %104 = arith.negf %103 : vector<2x32xf32>
    %105 = math.exp %104 : vector<2x32xf32>
    %cst_30 = arith.constant 1.000000e+00 : f32
    %106 = vector.broadcast %cst_30 : f32 to vector<2x32xf32>
    %107 = arith.addf %106, %105 : vector<2x32xf32>
    %108 = arith.divf %106, %107 : vector<2x32xf32>
    %109 = vector.extract_strided_slice %77 {offsets = [0, 32], sizes = [2, 32], strides = [1, 1]} : vector<2x128xf32> to vector<2x32xf32>
    %110 = arith.negf %109 : vector<2x32xf32>
    %111 = math.exp %110 : vector<2x32xf32>
    %cst_31 = arith.constant 1.000000e+00 : f32
    %112 = vector.broadcast %cst_31 : f32 to vector<2x32xf32>
    %113 = arith.addf %112, %111 : vector<2x32xf32>
    %114 = arith.divf %112, %113 : vector<2x32xf32>
    %115 = vector.extract_strided_slice %77 {offsets = [0, 64], sizes = [2, 32], strides = [1, 1]} : vector<2x128xf32> to vector<2x32xf32>
    %116 = math.tanh %115 : vector<2x32xf32>
    %117 = vector.extract_strided_slice %77 {offsets = [0, 96], sizes = [2, 32], strides = [1, 1]} : vector<2x128xf32> to vector<2x32xf32>
    %118 = arith.negf %117 : vector<2x32xf32>
    %119 = math.exp %118 : vector<2x32xf32>
    %cst_32 = arith.constant 1.000000e+00 : f32
    %120 = vector.broadcast %cst_32 : f32 to vector<2x32xf32>
    %121 = arith.addf %120, %119 : vector<2x32xf32>
    %122 = arith.divf %120, %121 : vector<2x32xf32>
    %123 = arith.mulf %114, %65 : vector<2x32xf32>
    %124 = arith.mulf %108, %116 : vector<2x32xf32>
    %125 = arith.addf %123, %124 : vector<2x32xf32>
    %126 = math.tanh %125 : vector<2x32xf32>
    %127 = arith.mulf %122, %126 : vector<2x32xf32>
    %128 = vector.shape_cast %102 : vector<2x32xf32> to vector<2x1x32xf32>
    %c0_33 = arith.constant 0 : index
    %c1 = arith.constant 1 : index
    %c0_34 = arith.constant 0 : index
    %129 = vector.load %arg20[%c0_33, %c1, %c0_34] : memref<2x8x64xf32, #tpu.memory_space<vmem>>, vector<2x1x32xf32>
    tpu.vector_store %arg20[%c0_33, %c1, %c0_34], %128 {strides = array<i32>} : memref<2x8x64xf32, #tpu.memory_space<vmem>>, vector<2x1x32xf32>,
    %130 = vector.shape_cast %127 : vector<2x32xf32> to vector<2x1x32xf32>
    %c0_35 = arith.constant 0 : index
    %c6 = arith.constant 6 : index
    %c32_36 = arith.constant 32 : index
    %131 = vector.load %arg20[%c0_35, %c6, %c32_36] : memref<2x8x64xf32, #tpu.memory_space<vmem>>, vector<2x1x32xf32>
    tpu.vector_store %arg20[%c0_35, %c6, %c32_36], %130 {strides = array<i32>} : memref<2x8x64xf32, #tpu.memory_space<vmem>>, vector<2x1x32xf32>,
    %132 = vector.extract_strided_slice %5 {offsets = [4, 0], sizes = [2, 128], strides = [1, 1]} : vector<16x256xf32> to vector<2x128xf32>
    %cst_37 = arith.constant dense<0.000000e+00> : vector<2x128xf32>
    %133 = tpu.matmul %102, %6, %cst_37 {dimension_numbers = #tpu.dot_dimension_numbers<[1], [0], [0], [1], [0, 0, 1, 1], [], []>} : vector<2x32xf32>, vector<32x128xf32>, vector<2x128xf32> -> vector<2x128xf32>
    %134 = arith.addf %132, %133 : vector<2x128xf32>
    %135 = vector.extract_strided_slice %5 {offsets = [10, 128], sizes = [2, 128], strides = [1, 1]} : vector<16x256xf32> to vector<2x128xf32>
    %cst_38 = arith.constant dense<0.000000e+00> : vector<2x128xf32>
    %136 = tpu.matmul %127, %7, %cst_38 {dimension_numbers = #tpu.dot_dimension_numbers<[1], [0], [0], [1], [0, 0, 1, 1], [], []>} : vector<2x32xf32>, vector<32x128xf32>, vector<2x128xf32> -> vector<2x128xf32>
    %137 = arith.addf %135, %136 : vector<2x128xf32>
    %138 = vector.extract_strided_slice %134 {offsets = [0, 0], sizes = [2, 32], strides = [1, 1]} : vector<2x128xf32> to vector<2x32xf32>
    %139 = arith.negf %138 : vector<2x32xf32>
    %140 = math.exp %139 : vector<2x32xf32>
    %cst_39 = arith.constant 1.000000e+00 : f32
    %141 = vector.broadcast %cst_39 : f32 to vector<2x32xf32>
    %142 = arith.addf %141, %140 : vector<2x32xf32>
    %143 = arith.divf %141, %142 : vector<2x32xf32>
    %144 = vector.extract_strided_slice %134 {offsets = [0, 32], sizes = [2, 32], strides = [1, 1]} : vector<2x128xf32> to vector<2x32xf32>
    %145 = arith.negf %144 : vector<2x32xf32>
    %146 = math.exp %145 : vector<2x32xf32>
    %cst_40 = arith.constant 1.000000e+00 : f32
    %147 = vector.broadcast %cst_40 : f32 to vector<2x32xf32>
    %148 = arith.addf %147, %146 : vector<2x32xf32>
    %149 = arith.divf %147, %148 : vector<2x32xf32>
    %150 = vector.extract_strided_slice %134 {offsets = [0, 64], sizes = [2, 32], strides = [1, 1]} : vector<2x128xf32> to vector<2x32xf32>
    %151 = math.tanh %150 : vector<2x32xf32>
    %152 = vector.extract_strided_slice %134 {offsets = [0, 96], sizes = [2, 32], strides = [1, 1]} : vector<2x128xf32> to vector<2x32xf32>
    %153 = arith.negf %152 : vector<2x32xf32>
    %154 = math.exp %153 : vector<2x32xf32>
    %cst_41 = arith.constant 1.000000e+00 : f32
    %155 = vector.broadcast %cst_41 : f32 to vector<2x32xf32>
    %156 = arith.addf %155, %154 : vector<2x32xf32>
    %157 = arith.divf %155, %156 : vector<2x32xf32>
    %158 = arith.mulf %149, %100 : vector<2x32xf32>
    %159 = arith.mulf %143, %151 : vector<2x32xf32>
    %160 = arith.addf %158, %159 : vector<2x32xf32>
    %161 = math.tanh %160 : vector<2x32xf32>
    %162 = arith.mulf %157, %161 : vector<2x32xf32>
    %163 = vector.extract_strided_slice %137 {offsets = [0, 0], sizes = [2, 32], strides = [1, 1]} : vector<2x128xf32> to vector<2x32xf32>
    %164 = arith.negf %163 : vector<2x32xf32>
    %165 = math.exp %164 : vector<2x32xf32>
    %cst_42 = arith.constant 1.000000e+00 : f32
    %166 = vector.broadcast %cst_42 : f32 to vector<2x32xf32>
    %167 = arith.addf %166, %165 : vector<2x32xf32>
    %168 = arith.divf %166, %167 : vector<2x32xf32>
    %169 = vector.extract_strided_slice %137 {offsets = [0, 32], sizes = [2, 32], strides = [1, 1]} : vector<2x128xf32> to vector<2x32xf32>
    %170 = arith.negf %169 : vector<2x32xf32>
    %171 = math.exp %170 : vector<2x32xf32>
    %cst_43 = arith.constant 1.000000e+00 : f32
    %172 = vector.broadcast %cst_43 : f32 to vector<2x32xf32>
    %173 = arith.addf %172, %171 : vector<2x32xf32>
    %174 = arith.divf %172, %173 : vector<2x32xf32>
    %175 = vector.extract_strided_slice %137 {offsets = [0, 64], sizes = [2, 32], strides = [1, 1]} : vector<2x128xf32> to vector<2x32xf32>
    %176 = math.tanh %175 : vector<2x32xf32>
    %177 = vector.extract_strided_slice %137 {offsets = [0, 96], sizes = [2, 32], strides = [1, 1]} : vector<2x128xf32> to vector<2x32xf32>
    %178 = arith.negf %177 : vector<2x32xf32>
    %179 = math.exp %178 : vector<2x32xf32>
    %cst_44 = arith.constant 1.000000e+00 : f32
    %180 = vector.broadcast %cst_44 : f32 to vector<2x32xf32>
    %181 = arith.addf %180, %179 : vector<2x32xf32>
    %182 = arith.divf %180, %181 : vector<2x32xf32>
    %183 = arith.mulf %174, %125 : vector<2x32xf32>
    %184 = arith.mulf %168, %176 : vector<2x32xf32>
    %185 = arith.addf %183, %184 : vector<2x32xf32>
    %186 = math.tanh %185 : vector<2x32xf32>
    %187 = arith.mulf %182, %186 : vector<2x32xf32>
    %188 = vector.shape_cast %162 : vector<2x32xf32> to vector<2x1x32xf32>
    %c0_45 = arith.constant 0 : index
    %c2 = arith.constant 2 : index
    %c0_46 = arith.constant 0 : index
    %189 = vector.load %arg20[%c0_45, %c2, %c0_46] : memref<2x8x64xf32, #tpu.memory_space<vmem>>, vector<2x1x32xf32>
    tpu.vector_store %arg20[%c0_45, %c2, %c0_46], %188 {strides = array<i32>} : memref<2x8x64xf32, #tpu.memory_space<vmem>>, vector<2x1x32xf32>,
    %190 = vector.shape_cast %187 : vector<2x32xf32> to vector<2x1x32xf32>
    %c0_47 = arith.constant 0 : index
    %c5 = arith.constant 5 : index
    %c32_48 = arith.constant 32 : index
    %191 = vector.load %arg20[%c0_47, %c5, %c32_48] : memref<2x8x64xf32, #tpu.memory_space<vmem>>, vector<2x1x32xf32>
    tpu.vector_store %arg20[%c0_47, %c5, %c32_48], %190 {strides = array<i32>} : memref<2x8x64xf32, #tpu.memory_space<vmem>>, vector<2x1x32xf32>,
    %192 = vector.extract_strided_slice %5 {offsets = [6, 0], sizes = [2, 128], strides = [1, 1]} : vector<16x256xf32> to vector<2x128xf32>
    %cst_49 = arith.constant dense<0.000000e+00> : vector<2x128xf32>
    %193 = tpu.matmul %162, %6, %cst_49 {dimension_numbers = #tpu.dot_dimension_numbers<[1], [0], [0], [1], [0, 0, 1, 1], [], []>} : vector<2x32xf32>, vector<32x128xf32>, vector<2x128xf32> -> vector<2x128xf32>
    %194 = arith.addf %192, %193 : vector<2x128xf32>
    %195 = vector.extract_strided_slice %5 {offsets = [8, 128], sizes = [2, 128], strides = [1, 1]} : vector<16x256xf32> to vector<2x128xf32>
    %cst_50 = arith.constant dense<0.000000e+00> : vector<2x128xf32>
    %196 = tpu.matmul %187, %7, %cst_50 {dimension_numbers = #tpu.dot_dimension_numbers<[1], [0], [0], [1], [0, 0, 1, 1], [], []>} : vector<2x32xf32>, vector<32x128xf32>, vector<2x128xf32> -> vector<2x128xf32>
    %197 = arith.addf %195, %196 : vector<2x128xf32>
    %198 = vector.extract_strided_slice %194 {offsets = [0, 0], sizes = [2, 32], strides = [1, 1]} : vector<2x128xf32> to vector<2x32xf32>
    %199 = arith.negf %198 : vector<2x32xf32>
    %200 = math.exp %199 : vector<2x32xf32>
    %cst_51 = arith.constant 1.000000e+00 : f32
    %201 = vector.broadcast %cst_51 : f32 to vector<2x32xf32>
    %202 = arith.addf %201, %200 : vector<2x32xf32>
    %203 = arith.divf %201, %202 : vector<2x32xf32>
    %204 = vector.extract_strided_slice %194 {offsets = [0, 32], sizes = [2, 32], strides = [1, 1]} : vector<2x128xf32> to vector<2x32xf32>
    %205 = arith.negf %204 : vector<2x32xf32>
    %206 = math.exp %205 : vector<2x32xf32>
    %cst_52 = arith.constant 1.000000e+00 : f32
    %207 = vector.broadcast %cst_52 : f32 to vector<2x32xf32>
    %208 = arith.addf %207, %206 : vector<2x32xf32>
    %209 = arith.divf %207, %208 : vector<2x32xf32>
    %210 = vector.extract_strided_slice %194 {offsets = [0, 64], sizes = [2, 32], strides = [1, 1]} : vector<2x128xf32> to vector<2x32xf32>
    %211 = math.tanh %210 : vector<2x32xf32>
    %212 = vector.extract_strided_slice %194 {offsets = [0, 96], sizes = [2, 32], strides = [1, 1]} : vector<2x128xf32> to vector<2x32xf32>
    %213 = arith.negf %212 : vector<2x32xf32>
    %214 = math.exp %213 : vector<2x32xf32>
    %cst_53 = arith.constant 1.000000e+00 : f32
    %215 = vector.broadcast %cst_53 : f32 to vector<2x32xf32>
    %216 = arith.addf %215, %214 : vector<2x32xf32>
    %217 = arith.divf %215, %216 : vector<2x32xf32>
    %218 = arith.mulf %209, %160 : vector<2x32xf32>
    %219 = arith.mulf %203, %211 : vector<2x32xf32>
    %220 = arith.addf %218, %219 : vector<2x32xf32>
    %221 = math.tanh %220 : vector<2x32xf32>
    %222 = arith.mulf %217, %221 : vector<2x32xf32>
    %223 = vector.extract_strided_slice %197 {offsets = [0, 0], sizes = [2, 32], strides = [1, 1]} : vector<2x128xf32> to vector<2x32xf32>
    %224 = arith.negf %223 : vector<2x32xf32>
    %225 = math.exp %224 : vector<2x32xf32>
    %cst_54 = arith.constant 1.000000e+00 : f32
    %226 = vector.broadcast %cst_54 : f32 to vector<2x32xf32>
    %227 = arith.addf %226, %225 : vector<2x32xf32>
    %228 = arith.divf %226, %227 : vector<2x32xf32>
    %229 = vector.extract_strided_slice %197 {offsets = [0, 32], sizes = [2, 32], strides = [1, 1]} : vector<2x128xf32> to vector<2x32xf32>
    %230 = arith.negf %229 : vector<2x32xf32>
    %231 = math.exp %230 : vector<2x32xf32>
    %cst_55 = arith.constant 1.000000e+00 : f32
    %232 = vector.broadcast %cst_55 : f32 to vector<2x32xf32>
    %233 = arith.addf %232, %231 : vector<2x32xf32>
    %234 = arith.divf %232, %233 : vector<2x32xf32>
    %235 = vector.extract_strided_slice %197 {offsets = [0, 64], sizes = [2, 32], strides = [1, 1]} : vector<2x128xf32> to vector<2x32xf32>
    %236 = math.tanh %235 : vector<2x32xf32>
    %237 = vector.extract_strided_slice %197 {offsets = [0, 96], sizes = [2, 32], strides = [1, 1]} : vector<2x128xf32> to vector<2x32xf32>
    %238 = arith.negf %237 : vector<2x32xf32>
    %239 = math.exp %238 : vector<2x32xf32>
    %cst_56 = arith.constant 1.000000e+00 : f32
    %240 = vector.broadcast %cst_56 : f32 to vector<2x32xf32>
    %241 = arith.addf %240, %239 : vector<2x32xf32>
    %242 = arith.divf %240, %241 : vector<2x32xf32>
    %243 = arith.mulf %234, %185 : vector<2x32xf32>
    %244 = arith.mulf %228, %236 : vector<2x32xf32>
    %245 = arith.addf %243, %244 : vector<2x32xf32>
    %246 = math.tanh %245 : vector<2x32xf32>
    %247 = arith.mulf %242, %246 : vector<2x32xf32>
    %248 = vector.shape_cast %222 : vector<2x32xf32> to vector<2x1x32xf32>
    %c0_57 = arith.constant 0 : index
    %c3 = arith.constant 3 : index
    %c0_58 = arith.constant 0 : index
    %249 = vector.load %arg20[%c0_57, %c3, %c0_58] : memref<2x8x64xf32, #tpu.memory_space<vmem>>, vector<2x1x32xf32>
    tpu.vector_store %arg20[%c0_57, %c3, %c0_58], %248 {strides = array<i32>} : memref<2x8x64xf32, #tpu.memory_space<vmem>>, vector<2x1x32xf32>,
    %250 = vector.shape_cast %247 : vector<2x32xf32> to vector<2x1x32xf32>
    %c0_59 = arith.constant 0 : index
    %c4 = arith.constant 4 : index
    %c32_60 = arith.constant 32 : index
    %251 = vector.load %arg20[%c0_59, %c4, %c32_60] : memref<2x8x64xf32, #tpu.memory_space<vmem>>, vector<2x1x32xf32>
    tpu.vector_store %arg20[%c0_59, %c4, %c32_60], %250 {strides = array<i32>} : memref<2x8x64xf32, #tpu.memory_space<vmem>>, vector<2x1x32xf32>,
    %252 = vector.extract_strided_slice %5 {offsets = [8, 0], sizes = [2, 128], strides = [1, 1]} : vector<16x256xf32> to vector<2x128xf32>
    %cst_61 = arith.constant dense<0.000000e+00> : vector<2x128xf32>
    %253 = tpu.matmul %222, %6, %cst_61 {dimension_numbers = #tpu.dot_dimension_numbers<[1], [0], [0], [1], [0, 0, 1, 1], [], []>} : vector<2x32xf32>, vector<32x128xf32>, vector<2x128xf32> -> vector<2x128xf32>
    %254 = arith.addf %252, %253 : vector<2x128xf32>
    %255 = vector.extract_strided_slice %5 {offsets = [6, 128], sizes = [2, 128], strides = [1, 1]} : vector<16x256xf32> to vector<2x128xf32>
    %cst_62 = arith.constant dense<0.000000e+00> : vector<2x128xf32>
    %256 = tpu.matmul %247, %7, %cst_62 {dimension_numbers = #tpu.dot_dimension_numbers<[1], [0], [0], [1], [0, 0, 1, 1], [], []>} : vector<2x32xf32>, vector<32x128xf32>, vector<2x128xf32> -> vector<2x128xf32>
    %257 = arith.addf %255, %256 : vector<2x128xf32>
    %258 = vector.extract_strided_slice %254 {offsets = [0, 0], sizes = [2, 32], strides = [1, 1]} : vector<2x128xf32> to vector<2x32xf32>
    %259 = arith.negf %258 : vector<2x32xf32>
    %260 = math.exp %259 : vector<2x32xf32>
    %cst_63 = arith.constant 1.000000e+00 : f32
    %261 = vector.broadcast %cst_63 : f32 to vector<2x32xf32>
    %262 = arith.addf %261, %260 : vector<2x32xf32>
    %263 = arith.divf %261, %262 : vector<2x32xf32>
    %264 = vector.extract_strided_slice %254 {offsets = [0, 32], sizes = [2, 32], strides = [1, 1]} : vector<2x128xf32> to vector<2x32xf32>
    %265 = arith.negf %264 : vector<2x32xf32>
    %266 = math.exp %265 : vector<2x32xf32>
    %cst_64 = arith.constant 1.000000e+00 : f32
    %267 = vector.broadcast %cst_64 : f32 to vector<2x32xf32>
    %268 = arith.addf %267, %266 : vector<2x32xf32>
    %269 = arith.divf %267, %268 : vector<2x32xf32>
    %270 = vector.extract_strided_slice %254 {offsets = [0, 64], sizes = [2, 32], strides = [1, 1]} : vector<2x128xf32> to vector<2x32xf32>
    %271 = math.tanh %270 : vector<2x32xf32>
    %272 = vector.extract_strided_slice %254 {offsets = [0, 96], sizes = [2, 32], strides = [1, 1]} : vector<2x128xf32> to vector<2x32xf32>
    %273 = arith.negf %272 : vector<2x32xf32>
    %274 = math.exp %273 : vector<2x32xf32>
    %cst_65 = arith.constant 1.000000e+00 : f32
    %275 = vector.broadcast %cst_65 : f32 to vector<2x32xf32>
    %276 = arith.addf %275, %274 : vector<2x32xf32>
    %277 = arith.divf %275, %276 : vector<2x32xf32>
    %278 = arith.mulf %269, %220 : vector<2x32xf32>
    %279 = arith.mulf %263, %271 : vector<2x32xf32>
    %280 = arith.addf %278, %279 : vector<2x32xf32>
    %281 = math.tanh %280 : vector<2x32xf32>
    %282 = arith.mulf %277, %281 : vector<2x32xf32>
    %283 = vector.extract_strided_slice %257 {offsets = [0, 0], sizes = [2, 32], strides = [1, 1]} : vector<2x128xf32> to vector<2x32xf32>
    %284 = arith.negf %283 : vector<2x32xf32>
    %285 = math.exp %284 : vector<2x32xf32>
    %cst_66 = arith.constant 1.000000e+00 : f32
    %286 = vector.broadcast %cst_66 : f32 to vector<2x32xf32>
    %287 = arith.addf %286, %285 : vector<2x32xf32>
    %288 = arith.divf %286, %287 : vector<2x32xf32>
    %289 = vector.extract_strided_slice %257 {offsets = [0, 32], sizes = [2, 32], strides = [1, 1]} : vector<2x128xf32> to vector<2x32xf32>
    %290 = arith.negf %289 : vector<2x32xf32>
    %291 = math.exp %290 : vector<2x32xf32>
    %cst_67 = arith.constant 1.000000e+00 : f32
    %292 = vector.broadcast %cst_67 : f32 to vector<2x32xf32>
    %293 = arith.addf %292, %291 : vector<2x32xf32>
    %294 = arith.divf %292, %293 : vector<2x32xf32>
    %295 = vector.extract_strided_slice %257 {offsets = [0, 64], sizes = [2, 32], strides = [1, 1]} : vector<2x128xf32> to vector<2x32xf32>
    %296 = math.tanh %295 : vector<2x32xf32>
    %297 = vector.extract_strided_slice %257 {offsets = [0, 96], sizes = [2, 32], strides = [1, 1]} : vector<2x128xf32> to vector<2x32xf32>
    %298 = arith.negf %297 : vector<2x32xf32>
    %299 = math.exp %298 : vector<2x32xf32>
    %cst_68 = arith.constant 1.000000e+00 : f32
    %300 = vector.broadcast %cst_68 : f32 to vector<2x32xf32>
    %301 = arith.addf %300, %299 : vector<2x32xf32>
    %302 = arith.divf %300, %301 : vector<2x32xf32>
    %303 = arith.mulf %294, %245 : vector<2x32xf32>
    %304 = arith.mulf %288, %296 : vector<2x32xf32>
    %305 = arith.addf %303, %304 : vector<2x32xf32>
    %306 = math.tanh %305 : vector<2x32xf32>
    %307 = arith.mulf %302, %306 : vector<2x32xf32>
    %308 = vector.shape_cast %282 : vector<2x32xf32> to vector<2x1x32xf32>
    %c0_69 = arith.constant 0 : index
    %c4_70 = arith.constant 4 : index
    %c0_71 = arith.constant 0 : index
    %309 = vector.load %arg20[%c0_69, %c4_70, %c0_71] : memref<2x8x64xf32, #tpu.memory_space<vmem>>, vector<2x1x32xf32>
    tpu.vector_store %arg20[%c0_69, %c4_70, %c0_71], %308 {strides = array<i32>} : memref<2x8x64xf32, #tpu.memory_space<vmem>>, vector<2x1x32xf32>,
    %310 = vector.shape_cast %307 : vector<2x32xf32> to vector<2x1x32xf32>
    %c0_72 = arith.constant 0 : index
    %c3_73 = arith.constant 3 : index
    %c32_74 = arith.constant 32 : index
    %311 = vector.load %arg20[%c0_72, %c3_73, %c32_74] : memref<2x8x64xf32, #tpu.memory_space<vmem>>, vector<2x1x32xf32>
    tpu.vector_store %arg20[%c0_72, %c3_73, %c32_74], %310 {strides = array<i32>} : memref<2x8x64xf32, #tpu.memory_space<vmem>>, vector<2x1x32xf32>,
    %312 = vector.extract_strided_slice %5 {offsets = [10, 0], sizes = [2, 128], strides = [1, 1]} : vector<16x256xf32> to vector<2x128xf32>
    %cst_75 = arith.constant dense<0.000000e+00> : vector<2x128xf32>
    %313 = tpu.matmul %282, %6, %cst_75 {dimension_numbers = #tpu.dot_dimension_numbers<[1], [0], [0], [1], [0, 0, 1, 1], [], []>} : vector<2x32xf32>, vector<32x128xf32>, vector<2x128xf32> -> vector<2x128xf32>
    %314 = arith.addf %312, %313 : vector<2x128xf32>
    %315 = vector.extract_strided_slice %5 {offsets = [4, 128], sizes = [2, 128], strides = [1, 1]} : vector<16x256xf32> to vector<2x128xf32>
    %cst_76 = arith.constant dense<0.000000e+00> : vector<2x128xf32>
    %316 = tpu.matmul %307, %7, %cst_76 {dimension_numbers = #tpu.dot_dimension_numbers<[1], [0], [0], [1], [0, 0, 1, 1], [], []>} : vector<2x32xf32>, vector<32x128xf32>, vector<2x128xf32> -> vector<2x128xf32>
    %317 = arith.addf %315, %316 : vector<2x128xf32>
    %318 = vector.extract_strided_slice %314 {offsets = [0, 0], sizes = [2, 32], strides = [1, 1]} : vector<2x128xf32> to vector<2x32xf32>
    %319 = arith.negf %318 : vector<2x32xf32>
    %320 = math.exp %319 : vector<2x32xf32>
    %cst_77 = arith.constant 1.000000e+00 : f32
    %321 = vector.broadcast %cst_77 : f32 to vector<2x32xf32>
    %322 = arith.addf %321, %320 : vector<2x32xf32>
    %323 = arith.divf %321, %322 : vector<2x32xf32>
    %324 = vector.extract_strided_slice %314 {offsets = [0, 32], sizes = [2, 32], strides = [1, 1]} : vector<2x128xf32> to vector<2x32xf32>
    %325 = arith.negf %324 : vector<2x32xf32>
    %326 = math.exp %325 : vector<2x32xf32>
    %cst_78 = arith.constant 1.000000e+00 : f32
    %327 = vector.broadcast %cst_78 : f32 to vector<2x32xf32>
    %328 = arith.addf %327, %326 : vector<2x32xf32>
    %329 = arith.divf %327, %328 : vector<2x32xf32>
    %330 = vector.extract_strided_slice %314 {offsets = [0, 64], sizes = [2, 32], strides = [1, 1]} : vector<2x128xf32> to vector<2x32xf32>
    %331 = math.tanh %330 : vector<2x32xf32>
    %332 = vector.extract_strided_slice %314 {offsets = [0, 96], sizes = [2, 32], strides = [1, 1]} : vector<2x128xf32> to vector<2x32xf32>
    %333 = arith.negf %332 : vector<2x32xf32>
    %334 = math.exp %333 : vector<2x32xf32>
    %cst_79 = arith.constant 1.000000e+00 : f32
    %335 = vector.broadcast %cst_79 : f32 to vector<2x32xf32>
    %336 = arith.addf %335, %334 : vector<2x32xf32>
    %337 = arith.divf %335, %336 : vector<2x32xf32>
    %338 = arith.mulf %329, %280 : vector<2x32xf32>
    %339 = arith.mulf %323, %331 : vector<2x32xf32>
    %340 = arith.addf %338, %339 : vector<2x32xf32>
    %341 = math.tanh %340 : vector<2x32xf32>
    %342 = arith.mulf %337, %341 : vector<2x32xf32>
    %343 = vector.extract_strided_slice %317 {offsets = [0, 0], sizes = [2, 32], strides = [1, 1]} : vector<2x128xf32> to vector<2x32xf32>
    %344 = arith.negf %343 : vector<2x32xf32>
    %345 = math.exp %344 : vector<2x32xf32>
    %cst_80 = arith.constant 1.000000e+00 : f32
    %346 = vector.broadcast %cst_80 : f32 to vector<2x32xf32>
    %347 = arith.addf %346, %345 : vector<2x32xf32>
    %348 = arith.divf %346, %347 : vector<2x32xf32>
    %349 = vector.extract_strided_slice %317 {offsets = [0, 32], sizes = [2, 32], strides = [1, 1]} : vector<2x128xf32> to vector<2x32xf32>
    %350 = arith.negf %349 : vector<2x32xf32>
    %351 = math.exp %350 : vector<2x32xf32>
    %cst_81 = arith.constant 1.000000e+00 : f32
    %352 = vector.broadcast %cst_81 : f32 to vector<2x32xf32>
    %353 = arith.addf %352, %351 : vector<2x32xf32>
    %354 = arith.divf %352, %353 : vector<2x32xf32>
    %355 = vector.extract_strided_slice %317 {offsets = [0, 64], sizes = [2, 32], strides = [1, 1]} : vector<2x128xf32> to vector<2x32xf32>
    %356 = math.tanh %355 : vector<2x32xf32>
    %357 = vector.extract_strided_slice %317 {offsets = [0, 96], sizes = [2, 32], strides = [1, 1]} : vector<2x128xf32> to vector<2x32xf32>
    %358 = arith.negf %357 : vector<2x32xf32>
    %359 = math.exp %358 : vector<2x32xf32>
    %cst_82 = arith.constant 1.000000e+00 : f32
    %360 = vector.broadcast %cst_82 : f32 to vector<2x32xf32>
    %361 = arith.addf %360, %359 : vector<2x32xf32>
    %362 = arith.divf %360, %361 : vector<2x32xf32>
    %363 = arith.mulf %354, %305 : vector<2x32xf32>
    %364 = arith.mulf %348, %356 : vector<2x32xf32>
    %365 = arith.addf %363, %364 : vector<2x32xf32>
    %366 = math.tanh %365 : vector<2x32xf32>
    %367 = arith.mulf %362, %366 : vector<2x32xf32>
    %368 = vector.shape_cast %342 : vector<2x32xf32> to vector<2x1x32xf32>
    %c0_83 = arith.constant 0 : index
    %c5_84 = arith.constant 5 : index
    %c0_85 = arith.constant 0 : index
    %369 = vector.load %arg20[%c0_83, %c5_84, %c0_85] : memref<2x8x64xf32, #tpu.memory_space<vmem>>, vector<2x1x32xf32>
    tpu.vector_store %arg20[%c0_83, %c5_84, %c0_85], %368 {strides = array<i32>} : memref<2x8x64xf32, #tpu.memory_space<vmem>>, vector<2x1x32xf32>,
    %370 = vector.shape_cast %367 : vector<2x32xf32> to vector<2x1x32xf32>
    %c0_86 = arith.constant 0 : index
    %c2_87 = arith.constant 2 : index
    %c32_88 = arith.constant 32 : index
    %371 = vector.load %arg20[%c0_86, %c2_87, %c32_88] : memref<2x8x64xf32, #tpu.memory_space<vmem>>, vector<2x1x32xf32>
    tpu.vector_store %arg20[%c0_86, %c2_87, %c32_88], %370 {strides = array<i32>} : memref<2x8x64xf32, #tpu.memory_space<vmem>>, vector<2x1x32xf32>,
    %372 = vector.extract_strided_slice %5 {offsets = [12, 0], sizes = [2, 128], strides = [1, 1]} : vector<16x256xf32> to vector<2x128xf32>
    %cst_89 = arith.constant dense<0.000000e+00> : vector<2x128xf32>
    %373 = tpu.matmul %342, %6, %cst_89 {dimension_numbers = #tpu.dot_dimension_numbers<[1], [0], [0], [1], [0, 0, 1, 1], [], []>} : vector<2x32xf32>, vector<32x128xf32>, vector<2x128xf32> -> vector<2x128xf32>
    %374 = arith.addf %372, %373 : vector<2x128xf32>
    %375 = vector.extract_strided_slice %5 {offsets = [2, 128], sizes = [2, 128], strides = [1, 1]} : vector<16x256xf32> to vector<2x128xf32>
    %cst_90 = arith.constant dense<0.000000e+00> : vector<2x128xf32>
    %376 = tpu.matmul %367, %7, %cst_90 {dimension_numbers = #tpu.dot_dimension_numbers<[1], [0], [0], [1], [0, 0, 1, 1], [], []>} : vector<2x32xf32>, vector<32x128xf32>, vector<2x128xf32> -> vector<2x128xf32>
    %377 = arith.addf %375, %376 : vector<2x128xf32>
    %378 = vector.extract_strided_slice %374 {offsets = [0, 0], sizes = [2, 32], strides = [1, 1]} : vector<2x128xf32> to vector<2x32xf32>
    %379 = arith.negf %378 : vector<2x32xf32>
    %380 = math.exp %379 : vector<2x32xf32>
    %cst_91 = arith.constant 1.000000e+00 : f32
    %381 = vector.broadcast %cst_91 : f32 to vector<2x32xf32>
    %382 = arith.addf %381, %380 : vector<2x32xf32>
    %383 = arith.divf %381, %382 : vector<2x32xf32>
    %384 = vector.extract_strided_slice %374 {offsets = [0, 32], sizes = [2, 32], strides = [1, 1]} : vector<2x128xf32> to vector<2x32xf32>
    %385 = arith.negf %384 : vector<2x32xf32>
    %386 = math.exp %385 : vector<2x32xf32>
    %cst_92 = arith.constant 1.000000e+00 : f32
    %387 = vector.broadcast %cst_92 : f32 to vector<2x32xf32>
    %388 = arith.addf %387, %386 : vector<2x32xf32>
    %389 = arith.divf %387, %388 : vector<2x32xf32>
    %390 = vector.extract_strided_slice %374 {offsets = [0, 64], sizes = [2, 32], strides = [1, 1]} : vector<2x128xf32> to vector<2x32xf32>
    %391 = math.tanh %390 : vector<2x32xf32>
    %392 = vector.extract_strided_slice %374 {offsets = [0, 96], sizes = [2, 32], strides = [1, 1]} : vector<2x128xf32> to vector<2x32xf32>
    %393 = arith.negf %392 : vector<2x32xf32>
    %394 = math.exp %393 : vector<2x32xf32>
    %cst_93 = arith.constant 1.000000e+00 : f32
    %395 = vector.broadcast %cst_93 : f32 to vector<2x32xf32>
    %396 = arith.addf %395, %394 : vector<2x32xf32>
    %397 = arith.divf %395, %396 : vector<2x32xf32>
    %398 = arith.mulf %389, %340 : vector<2x32xf32>
    %399 = arith.mulf %383, %391 : vector<2x32xf32>
    %400 = arith.addf %398, %399 : vector<2x32xf32>
    %401 = math.tanh %400 : vector<2x32xf32>
    %402 = arith.mulf %397, %401 : vector<2x32xf32>
    %403 = vector.extract_strided_slice %377 {offsets = [0, 0], sizes = [2, 32], strides = [1, 1]} : vector<2x128xf32> to vector<2x32xf32>
    %404 = arith.negf %403 : vector<2x32xf32>
    %405 = math.exp %404 : vector<2x32xf32>
    %cst_94 = arith.constant 1.000000e+00 : f32
    %406 = vector.broadcast %cst_94 : f32 to vector<2x32xf32>
    %407 = arith.addf %406, %405 : vector<2x32xf32>
    %408 = arith.divf %406, %407 : vector<2x32xf32>
    %409 = vector.extract_strided_slice %377 {offsets = [0, 32], sizes = [2, 32], strides = [1, 1]} : vector<2x128xf32> to vector<2x32xf32>
    %410 = arith.negf %409 : vector<2x32xf32>
    %411 = math.exp %410 : vector<2x32xf32>
    %cst_95 = arith.constant 1.000000e+00 : f32
    %412 = vector.broadcast %cst_95 : f32 to vector<2x32xf32>
    %413 = arith.addf %412, %411 : vector<2x32xf32>
    %414 = arith.divf %412, %413 : vector<2x32xf32>
    %415 = vector.extract_strided_slice %377 {offsets = [0, 64], sizes = [2, 32], strides = [1, 1]} : vector<2x128xf32> to vector<2x32xf32>
    %416 = math.tanh %415 : vector<2x32xf32>
    %417 = vector.extract_strided_slice %377 {offsets = [0, 96], sizes = [2, 32], strides = [1, 1]} : vector<2x128xf32> to vector<2x32xf32>
    %418 = arith.negf %417 : vector<2x32xf32>
    %419 = math.exp %418 : vector<2x32xf32>
    %cst_96 = arith.constant 1.000000e+00 : f32
    %420 = vector.broadcast %cst_96 : f32 to vector<2x32xf32>
    %421 = arith.addf %420, %419 : vector<2x32xf32>
    %422 = arith.divf %420, %421 : vector<2x32xf32>
    %423 = arith.mulf %414, %365 : vector<2x32xf32>
    %424 = arith.mulf %408, %416 : vector<2x32xf32>
    %425 = arith.addf %423, %424 : vector<2x32xf32>
    %426 = math.tanh %425 : vector<2x32xf32>
    %427 = arith.mulf %422, %426 : vector<2x32xf32>
    %428 = vector.shape_cast %402 : vector<2x32xf32> to vector<2x1x32xf32>
    %c0_97 = arith.constant 0 : index
    %c6_98 = arith.constant 6 : index
    %c0_99 = arith.constant 0 : index
    %429 = vector.load %arg20[%c0_97, %c6_98, %c0_99] : memref<2x8x64xf32, #tpu.memory_space<vmem>>, vector<2x1x32xf32>
    tpu.vector_store %arg20[%c0_97, %c6_98, %c0_99], %428 {strides = array<i32>} : memref<2x8x64xf32, #tpu.memory_space<vmem>>, vector<2x1x32xf32>,
    %430 = vector.shape_cast %427 : vector<2x32xf32> to vector<2x1x32xf32>
    %c0_100 = arith.constant 0 : index
    %c1_101 = arith.constant 1 : index
    %c32_102 = arith.constant 32 : index
    %431 = vector.load %arg20[%c0_100, %c1_101, %c32_102] : memref<2x8x64xf32, #tpu.memory_space<vmem>>, vector<2x1x32xf32>
    tpu.vector_store %arg20[%c0_100, %c1_101, %c32_102], %430 {strides = array<i32>} : memref<2x8x64xf32, #tpu.memory_space<vmem>>, vector<2x1x32xf32>,
    %432 = vector.extract_strided_slice %5 {offsets = [14, 0], sizes = [2, 128], strides = [1, 1]} : vector<16x256xf32> to vector<2x128xf32>
    %cst_103 = arith.constant dense<0.000000e+00> : vector<2x128xf32>
    %433 = tpu.matmul %402, %6, %cst_103 {dimension_numbers = #tpu.dot_dimension_numbers<[1], [0], [0], [1], [0, 0, 1, 1], [], []>} : vector<2x32xf32>, vector<32x128xf32>, vector<2x128xf32> -> vector<2x128xf32>
    %434 = arith.addf %432, %433 : vector<2x128xf32>
    %435 = vector.extract_strided_slice %5 {offsets = [0, 128], sizes = [2, 128], strides = [1, 1]} : vector<16x256xf32> to vector<2x128xf32>
    %cst_104 = arith.constant dense<0.000000e+00> : vector<2x128xf32>
    %436 = tpu.matmul %427, %7, %cst_104 {dimension_numbers = #tpu.dot_dimension_numbers<[1], [0], [0], [1], [0, 0, 1, 1], [], []>} : vector<2x32xf32>, vector<32x128xf32>, vector<2x128xf32> -> vector<2x128xf32>
    %437 = arith.addf %435, %436 : vector<2x128xf32>
    %438 = vector.extract_strided_slice %434 {offsets = [0, 0], sizes = [2, 32], strides = [1, 1]} : vector<2x128xf32> to vector<2x32xf32>
    %439 = arith.negf %438 : vector<2x32xf32>
    %440 = math.exp %439 : vector<2x32xf32>
    %cst_105 = arith.constant 1.000000e+00 : f32
    %441 = vector.broadcast %cst_105 : f32 to vector<2x32xf32>
    %442 = arith.addf %441, %440 : vector<2x32xf32>
    %443 = arith.divf %441, %442 : vector<2x32xf32>
    %444 = vector.extract_strided_slice %434 {offsets = [0, 32], sizes = [2, 32], strides = [1, 1]} : vector<2x128xf32> to vector<2x32xf32>
    %445 = arith.negf %444 : vector<2x32xf32>
    %446 = math.exp %445 : vector<2x32xf32>
    %cst_106 = arith.constant 1.000000e+00 : f32
    %447 = vector.broadcast %cst_106 : f32 to vector<2x32xf32>
    %448 = arith.addf %447, %446 : vector<2x32xf32>
    %449 = arith.divf %447, %448 : vector<2x32xf32>
    %450 = vector.extract_strided_slice %434 {offsets = [0, 64], sizes = [2, 32], strides = [1, 1]} : vector<2x128xf32> to vector<2x32xf32>
    %451 = math.tanh %450 : vector<2x32xf32>
    %452 = vector.extract_strided_slice %434 {offsets = [0, 96], sizes = [2, 32], strides = [1, 1]} : vector<2x128xf32> to vector<2x32xf32>
    %453 = arith.negf %452 : vector<2x32xf32>
    %454 = math.exp %453 : vector<2x32xf32>
    %cst_107 = arith.constant 1.000000e+00 : f32
    %455 = vector.broadcast %cst_107 : f32 to vector<2x32xf32>
    %456 = arith.addf %455, %454 : vector<2x32xf32>
    %457 = arith.divf %455, %456 : vector<2x32xf32>
    %458 = arith.mulf %449, %400 : vector<2x32xf32>
    %459 = arith.mulf %443, %451 : vector<2x32xf32>
    %460 = arith.addf %458, %459 : vector<2x32xf32>
    %461 = math.tanh %460 : vector<2x32xf32>
    %462 = arith.mulf %457, %461 : vector<2x32xf32>
    %463 = vector.extract_strided_slice %437 {offsets = [0, 0], sizes = [2, 32], strides = [1, 1]} : vector<2x128xf32> to vector<2x32xf32>
    %464 = arith.negf %463 : vector<2x32xf32>
    %465 = math.exp %464 : vector<2x32xf32>
    %cst_108 = arith.constant 1.000000e+00 : f32
    %466 = vector.broadcast %cst_108 : f32 to vector<2x32xf32>
    %467 = arith.addf %466, %465 : vector<2x32xf32>
    %468 = arith.divf %466, %467 : vector<2x32xf32>
    %469 = vector.extract_strided_slice %437 {offsets = [0, 32], sizes = [2, 32], strides = [1, 1]} : vector<2x128xf32> to vector<2x32xf32>
    %470 = arith.negf %469 : vector<2x32xf32>
    %471 = math.exp %470 : vector<2x32xf32>
    %cst_109 = arith.constant 1.000000e+00 : f32
    %472 = vector.broadcast %cst_109 : f32 to vector<2x32xf32>
    %473 = arith.addf %472, %471 : vector<2x32xf32>
    %474 = arith.divf %472, %473 : vector<2x32xf32>
    %475 = vector.extract_strided_slice %437 {offsets = [0, 64], sizes = [2, 32], strides = [1, 1]} : vector<2x128xf32> to vector<2x32xf32>
    %476 = math.tanh %475 : vector<2x32xf32>
    %477 = vector.extract_strided_slice %437 {offsets = [0, 96], sizes = [2, 32], strides = [1, 1]} : vector<2x128xf32> to vector<2x32xf32>
    %478 = arith.negf %477 : vector<2x32xf32>
    %479 = math.exp %478 : vector<2x32xf32>
    %cst_110 = arith.constant 1.000000e+00 : f32
    %480 = vector.broadcast %cst_110 : f32 to vector<2x32xf32>
    %481 = arith.addf %480, %479 : vector<2x32xf32>
    %482 = arith.divf %480, %481 : vector<2x32xf32>
    %483 = arith.mulf %474, %425 : vector<2x32xf32>
    %484 = arith.mulf %468, %476 : vector<2x32xf32>
    %485 = arith.addf %483, %484 : vector<2x32xf32>
    %486 = math.tanh %485 : vector<2x32xf32>
    %487 = arith.mulf %482, %486 : vector<2x32xf32>
    %488 = vector.shape_cast %462 : vector<2x32xf32> to vector<2x1x32xf32>
    %c0_111 = arith.constant 0 : index
    %c7_112 = arith.constant 7 : index
    %c0_113 = arith.constant 0 : index
    %489 = vector.load %arg20[%c0_111, %c7_112, %c0_113] : memref<2x8x64xf32, #tpu.memory_space<vmem>>, vector<2x1x32xf32>
    tpu.vector_store %arg20[%c0_111, %c7_112, %c0_113], %488 {strides = array<i32>} : memref<2x8x64xf32, #tpu.memory_space<vmem>>, vector<2x1x32xf32>,
    %490 = vector.shape_cast %487 : vector<2x32xf32> to vector<2x1x32xf32>
    %c0_114 = arith.constant 0 : index
    %c0_115 = arith.constant 0 : index
    %c32_116 = arith.constant 32 : index
    %491 = vector.load %arg20[%c0_114, %c0_115, %c32_116] : memref<2x8x64xf32, #tpu.memory_space<vmem>>, vector<2x1x32xf32>
    tpu.vector_store %arg20[%c0_114, %c0_115, %c32_116], %490 {strides = array<i32>} : memref<2x8x64xf32, #tpu.memory_space<vmem>>, vector<2x1x32xf32>,
    %c0_117 = arith.constant 0 : index
    %c0_118 = arith.constant 0 : index
    %c0_119 = arith.constant 0 : index
    %492 = vector.load %arg20[%c0_117, %c0_118, %c0_119] : memref<2x8x64xf32, #tpu.memory_space<vmem>>, vector<2x8x64xf32>
    %493 = tpu.concatenate %462, %487 in 1 : vector<2x32xf32>, vector<2x32xf32> -> vector<2x64xf32>
    %494 = tpu.concatenate %460, %485 in 1 : vector<2x32xf32>, vector<2x32xf32> -> vector<2x64xf32>
    %c0_120 = arith.constant 0 : index
    %c0_121 = arith.constant 0 : index
    %495 = vector.load %arg6[%c0_120, %c0_121] : memref<64x32xf32, #tpu.memory_space<vmem>>, vector<64x32xf32>
    %cst_122 = arith.constant dense<0.000000e+00> : vector<2x32xf32>
    %496 = tpu.matmul %493, %495, %cst_122 {dimension_numbers = #tpu.dot_dimension_numbers<[1], [0], [0], [1], [0, 0, 1, 1], [], []>} : vector<2x64xf32>, vector<64x32xf32>, vector<2x32xf32> -> vector<2x32xf32>
    %c0_123 = arith.constant 0 : index
    %c0_124 = arith.constant 0 : index
    %497 = vector.load %arg7[%c0_123, %c0_124] : memref<1x32xf32, #tpu.memory_space<vmem>>, vector<1x32xf32>
    %498 = vector.broadcast %497 : vector<1x32xf32> to vector<2x32xf32>
    %499 = arith.addf %496, %498 : vector<2x32xf32>
    %500 = math.tanh %499 : vector<2x32xf32>
    %c0_125 = arith.constant 0 : index
    %c0_126 = arith.constant 0 : index
    %501 = vector.load %arg8[%c0_125, %c0_126] : memref<64x32xf32, #tpu.memory_space<vmem>>, vector<64x32xf32>
    %cst_127 = arith.constant dense<0.000000e+00> : vector<2x32xf32>
    %502 = tpu.matmul %494, %501, %cst_127 {dimension_numbers = #tpu.dot_dimension_numbers<[1], [0], [0], [1], [0, 0, 1, 1], [], []>} : vector<2x64xf32>, vector<64x32xf32>, vector<2x32xf32> -> vector<2x32xf32>
    %c0_128 = arith.constant 0 : index
    %c0_129 = arith.constant 0 : index
    %503 = vector.load %arg9[%c0_128, %c0_129] : memref<1x32xf32, #tpu.memory_space<vmem>>, vector<1x32xf32>
    %504 = vector.broadcast %503 : vector<1x32xf32> to vector<2x32xf32>
    %505 = arith.addf %502, %504 : vector<2x32xf32>
    %506 = math.tanh %505 : vector<2x32xf32>
    %507 = vector.shape_cast %492 : vector<2x8x64xf32> to vector<16x64xf32>
    %c0_130 = arith.constant 0 : index
    %c0_131 = arith.constant 0 : index
    %508 = vector.load %arg10[%c0_130, %c0_131] : memref<64x32xf32, #tpu.memory_space<vmem>>, vector<64x32xf32>
    %cst_132 = arith.constant dense<0.000000e+00> : vector<16x32xf32>
    %509 = tpu.matmul %507, %508, %cst_132 {dimension_numbers = #tpu.dot_dimension_numbers<[1], [0], [0], [1], [0, 0, 1, 1], [], []>} : vector<16x64xf32>, vector<64x32xf32>, vector<16x32xf32> -> vector<16x32xf32>
    %c0_133 = arith.constant 0 : index
    %c0_134 = arith.constant 0 : index
    %510 = vector.load %arg12[%c0_133, %c0_134] : memref<1x32xf32, #tpu.memory_space<vmem>>, vector<1x32xf32>
    %511 = vector.broadcast %510 : vector<1x32xf32> to vector<16x32xf32>
    %512 = arith.addf %509, %511 : vector<16x32xf32>
    %513 = vector.shape_cast %512 : vector<16x32xf32> to vector<2x8x32xf32>
    %c0_135 = arith.constant 0 : index
    %c0_136 = arith.constant 0 : index
    %514 = vector.load %arg13[%c0_135, %c0_136] : memref<1x32xf32, #tpu.memory_space<vmem>>, vector<1x32xf32>
    %c0_137 = arith.constant 0 : index
    %c0_138 = arith.constant 0 : index
    %515 = vector.load %arg11[%c0_137, %c0_138] : memref<32x32xf32, #tpu.memory_space<vmem>>, vector<32x32xf32>
    %c0_139 = arith.constant 0 : index
    %c0_140 = arith.constant 0 : index
    %516 = vector.load %arg16[%c0_139, %c0_140] : memref<96x128xf32, #tpu.memory_space<vmem>>, vector<96x128xf32>
    %c0_141 = arith.constant 0 : index
    %c0_142 = arith.constant 0 : index
    %517 = vector.load %arg1[%c0_141, %c0_142] : memref<12x32xf32, #tpu.memory_space<vmem>>, vector<12x32xf32>
    %c0_143 = arith.constant 0 : index
    %c0_144 = arith.constant 0 : index
    %518 = vector.load %arg14[%c0_143, %c0_144] : memref<32x128xf32, #tpu.memory_space<vmem>>, vector<32x128xf32>
    %cst_145 = arith.constant dense<0.000000e+00> : vector<12x128xf32>
    %519 = tpu.matmul %517, %518, %cst_145 {dimension_numbers = #tpu.dot_dimension_numbers<[1], [0], [0], [1], [0, 0, 1, 1], [], []>} : vector<12x32xf32>, vector<32x128xf32>, vector<12x128xf32> -> vector<12x128xf32>
    %c0_146 = arith.constant 0 : index
    %c0_147 = arith.constant 0 : index
    %520 = vector.load %arg15[%c0_146, %c0_147] : memref<1x128xf32, #tpu.memory_space<vmem>>, vector<1x128xf32>
    %521 = vector.broadcast %520 : vector<1x128xf32> to vector<12x128xf32>
    %522 = arith.addf %519, %521 : vector<12x128xf32>
    %cst_148 = arith.constant dense<0.000000e+00> : vector<2x32xf32>
    %523 = tpu.matmul %500, %515, %cst_148 {dimension_numbers = #tpu.dot_dimension_numbers<[1], [0], [0], [1], [0, 0, 1, 1], [], []>} : vector<2x32xf32>, vector<32x32xf32>, vector<2x32xf32> -> vector<2x32xf32>
    %524 = vector.shape_cast %523 : vector<2x32xf32> to vector<2x1x32xf32>
    %525 = vector.broadcast %524 : vector<2x1x32xf32> to vector<2x8x32xf32>
    %526 = arith.addf %513, %525 : vector<2x8x32xf32>
    %527 = math.tanh %526 : vector<2x8x32xf32>
    %528 = vector.shape_cast %514 : vector<1x32xf32> to vector<1x1x32xf32>
    %529 = vector.broadcast %528 : vector<1x1x32xf32> to vector<2x8x32xf32>
    %530 = arith.mulf %527, %529 : vector<2x8x32xf32>
    %cst_149 = arith.constant dense<0.000000e+00> : vector<2x8xf32>
    %531 = vector.multi_reduction <add>, %530, %cst_149 [2] : vector<2x8x32xf32> to vector<2x8xf32>
    %cst_150 = arith.constant dense<0xFF800000> : vector<2xf32>
    %532 = vector.multi_reduction <maximumf>, %531, %cst_150 [1] : vector<2x8xf32> to vector<2xf32>
    %533 = vector.shape_cast %532 : vector<2xf32> to vector<2x1xf32>
    %534 = vector.broadcast %533 : vector<2x1xf32> to vector<2x8xf32>
    %535 = arith.subf %531, %534 : vector<2x8xf32>
    %536 = math.exp %535 : vector<2x8xf32>
    %cst_151 = arith.constant dense<0.000000e+00> : vector<2xf32>
    %537 = vector.multi_reduction <add>, %536, %cst_151 [1] : vector<2x8xf32> to vector<2xf32>
    %538 = vector.shape_cast %537 : vector<2xf32> to vector<2x1xf32>
    %539 = vector.broadcast %538 : vector<2x1xf32> to vector<2x8xf32>
    %540 = arith.divf %536, %539 : vector<2x8xf32>
    %541 = vector.shape_cast %540 : vector<2x8xf32> to vector<2x1x8xf32>
    "tpu.trace_start"() <{level = 10 : i32, message = "bqs,bsk->bqk"}> : () -> ()
    %cst_152 = arith.constant dense<0.000000e+00> : vector<2x1x64xf32>
    %542 = tpu.matmul %541, %492, %cst_152 {dimension_numbers = #tpu.dot_dimension_numbers<[2], [1], [1], [2], [0, 0, 0, 1, 1, 2], [0], [0]>} : vector<2x1x8xf32>, vector<2x8x64xf32>, vector<2x1x64xf32> -> vector<2x1x64xf32>
    "tpu.trace_stop"() : () -> ()
    %543 = vector.shape_cast %542 : vector<2x1x64xf32> to vector<2x64xf32>
    %544 = tpu.concatenate %543, %500 in 1 : vector<2x64xf32>, vector<2x32xf32> -> vector<2x96xf32>
    %545 = vector.extract_strided_slice %522 {offsets = [0, 0], sizes = [2, 128], strides = [1, 1]} : vector<12x128xf32> to vector<2x128xf32>
    %cst_153 = arith.constant dense<0.000000e+00> : vector<2x128xf32>
    %546 = tpu.matmul %544, %516, %cst_153 {dimension_numbers = #tpu.dot_dimension_numbers<[1], [0], [0], [1], [0, 0, 1, 1], [], []>} : vector<2x96xf32>, vector<96x128xf32>, vector<2x128xf32> -> vector<2x128xf32>
    %547 = arith.addf %545, %546 : vector<2x128xf32>
    %548 = vector.extract_strided_slice %547 {offsets = [0, 0], sizes = [2, 32], strides = [1, 1]} : vector<2x128xf32> to vector<2x32xf32>
    %549 = arith.negf %548 : vector<2x32xf32>
    %550 = math.exp %549 : vector<2x32xf32>
    %cst_154 = arith.constant 1.000000e+00 : f32
    %551 = vector.broadcast %cst_154 : f32 to vector<2x32xf32>
    %552 = arith.addf %551, %550 : vector<2x32xf32>
    %553 = arith.divf %551, %552 : vector<2x32xf32>
    %554 = vector.extract_strided_slice %547 {offsets = [0, 32], sizes = [2, 32], strides = [1, 1]} : vector<2x128xf32> to vector<2x32xf32>
    %555 = arith.negf %554 : vector<2x32xf32>
    %556 = math.exp %555 : vector<2x32xf32>
    %cst_155 = arith.constant 1.000000e+00 : f32
    %557 = vector.broadcast %cst_155 : f32 to vector<2x32xf32>
    %558 = arith.addf %557, %556 : vector<2x32xf32>
    %559 = arith.divf %557, %558 : vector<2x32xf32>
    %560 = vector.extract_strided_slice %547 {offsets = [0, 64], sizes = [2, 32], strides = [1, 1]} : vector<2x128xf32> to vector<2x32xf32>
    %561 = math.tanh %560 : vector<2x32xf32>
    %562 = vector.extract_strided_slice %547 {offsets = [0, 96], sizes = [2, 32], strides = [1, 1]} : vector<2x128xf32> to vector<2x32xf32>
    %563 = arith.negf %562 : vector<2x32xf32>
    %564 = math.exp %563 : vector<2x32xf32>
    %cst_156 = arith.constant 1.000000e+00 : f32
    %565 = vector.broadcast %cst_156 : f32 to vector<2x32xf32>
    %566 = arith.addf %565, %564 : vector<2x32xf32>
    %567 = arith.divf %565, %566 : vector<2x32xf32>
    %568 = arith.mulf %559, %506 : vector<2x32xf32>
    %569 = arith.mulf %553, %561 : vector<2x32xf32>
    %570 = arith.addf %568, %569 : vector<2x32xf32>
    %571 = math.tanh %570 : vector<2x32xf32>
    %572 = arith.mulf %567, %571 : vector<2x32xf32>
    %cst_157 = arith.constant dense<0.000000e+00> : vector<2x32xf32>
    %573 = tpu.matmul %572, %515, %cst_157 {dimension_numbers = #tpu.dot_dimension_numbers<[1], [0], [0], [1], [0, 0, 1, 1], [], []>} : vector<2x32xf32>, vector<32x32xf32>, vector<2x32xf32> -> vector<2x32xf32>
    %574 = vector.shape_cast %573 : vector<2x32xf32> to vector<2x1x32xf32>
    %575 = vector.broadcast %574 : vector<2x1x32xf32> to vector<2x8x32xf32>
    %576 = arith.addf %513, %575 : vector<2x8x32xf32>
    %577 = math.tanh %576 : vector<2x8x32xf32>
    %578 = vector.shape_cast %514 : vector<1x32xf32> to vector<1x1x32xf32>
    %579 = vector.broadcast %578 : vector<1x1x32xf32> to vector<2x8x32xf32>
    %580 = arith.mulf %577, %579 : vector<2x8x32xf32>
    %cst_158 = arith.constant dense<0.000000e+00> : vector<2x8xf32>
    %581 = vector.multi_reduction <add>, %580, %cst_158 [2] : vector<2x8x32xf32> to vector<2x8xf32>
    %cst_159 = arith.constant dense<0xFF800000> : vector<2xf32>
    %582 = vector.multi_reduction <maximumf>, %581, %cst_159 [1] : vector<2x8xf32> to vector<2xf32>
    %583 = vector.shape_cast %582 : vector<2xf32> to vector<2x1xf32>
    %584 = vector.broadcast %583 : vector<2x1xf32> to vector<2x8xf32>
    %585 = arith.subf %581, %584 : vector<2x8xf32>
    %586 = math.exp %585 : vector<2x8xf32>
    %cst_160 = arith.constant dense<0.000000e+00> : vector<2xf32>
    %587 = vector.multi_reduction <add>, %586, %cst_160 [1] : vector<2x8xf32> to vector<2xf32>
    %588 = vector.shape_cast %587 : vector<2xf32> to vector<2x1xf32>
    %589 = vector.broadcast %588 : vector<2x1xf32> to vector<2x8xf32>
    %590 = arith.divf %586, %589 : vector<2x8xf32>
    %591 = vector.shape_cast %590 : vector<2x8xf32> to vector<2x1x8xf32>
    "tpu.trace_start"() <{level = 10 : i32, message = "bqs,bsk->bqk"}> : () -> ()
    %cst_161 = arith.constant dense<0.000000e+00> : vector<2x1x64xf32>
    %592 = tpu.matmul %591, %492, %cst_161 {dimension_numbers = #tpu.dot_dimension_numbers<[2], [1], [1], [2], [0, 0, 0, 1, 1, 2], [0], [0]>} : vector<2x1x8xf32>, vector<2x8x64xf32>, vector<2x1x64xf32> -> vector<2x1x64xf32>
    "tpu.trace_stop"() : () -> ()
    %593 = vector.shape_cast %592 : vector<2x1x64xf32> to vector<2x64xf32>
    %594 = tpu.concatenate %593, %572 in 1 : vector<2x64xf32>, vector<2x32xf32> -> vector<2x96xf32>
    %595 = vector.extract_strided_slice %522 {offsets = [2, 0], sizes = [2, 128], strides = [1, 1]} : vector<12x128xf32> to vector<2x128xf32>
    %cst_162 = arith.constant dense<0.000000e+00> : vector<2x128xf32>
    %596 = tpu.matmul %594, %516, %cst_162 {dimension_numbers = #tpu.dot_dimension_numbers<[1], [0], [0], [1], [0, 0, 1, 1], [], []>} : vector<2x96xf32>, vector<96x128xf32>, vector<2x128xf32> -> vector<2x128xf32>
    %597 = arith.addf %595, %596 : vector<2x128xf32>
    %598 = vector.extract_strided_slice %597 {offsets = [0, 0], sizes = [2, 32], strides = [1, 1]} : vector<2x128xf32> to vector<2x32xf32>
    %599 = arith.negf %598 : vector<2x32xf32>
    %600 = math.exp %599 : vector<2x32xf32>
    %cst_163 = arith.constant 1.000000e+00 : f32
    %601 = vector.broadcast %cst_163 : f32 to vector<2x32xf32>
    %602 = arith.addf %601, %600 : vector<2x32xf32>
    %603 = arith.divf %601, %602 : vector<2x32xf32>
    %604 = vector.extract_strided_slice %597 {offsets = [0, 32], sizes = [2, 32], strides = [1, 1]} : vector<2x128xf32> to vector<2x32xf32>
    %605 = arith.negf %604 : vector<2x32xf32>
    %606 = math.exp %605 : vector<2x32xf32>
    %cst_164 = arith.constant 1.000000e+00 : f32
    %607 = vector.broadcast %cst_164 : f32 to vector<2x32xf32>
    %608 = arith.addf %607, %606 : vector<2x32xf32>
    %609 = arith.divf %607, %608 : vector<2x32xf32>
    %610 = vector.extract_strided_slice %597 {offsets = [0, 64], sizes = [2, 32], strides = [1, 1]} : vector<2x128xf32> to vector<2x32xf32>
    %611 = math.tanh %610 : vector<2x32xf32>
    %612 = vector.extract_strided_slice %597 {offsets = [0, 96], sizes = [2, 32], strides = [1, 1]} : vector<2x128xf32> to vector<2x32xf32>
    %613 = arith.negf %612 : vector<2x32xf32>
    %614 = math.exp %613 : vector<2x32xf32>
    %cst_165 = arith.constant 1.000000e+00 : f32
    %615 = vector.broadcast %cst_165 : f32 to vector<2x32xf32>
    %616 = arith.addf %615, %614 : vector<2x32xf32>
    %617 = arith.divf %615, %616 : vector<2x32xf32>
    %618 = arith.mulf %609, %570 : vector<2x32xf32>
    %619 = arith.mulf %603, %611 : vector<2x32xf32>
    %620 = arith.addf %618, %619 : vector<2x32xf32>
    %621 = math.tanh %620 : vector<2x32xf32>
    %622 = arith.mulf %617, %621 : vector<2x32xf32>
    %cst_166 = arith.constant dense<0.000000e+00> : vector<2x32xf32>
    %623 = tpu.matmul %622, %515, %cst_166 {dimension_numbers = #tpu.dot_dimension_numbers<[1], [0], [0], [1], [0, 0, 1, 1], [], []>} : vector<2x32xf32>, vector<32x32xf32>, vector<2x32xf32> -> vector<2x32xf32>
    %624 = vector.shape_cast %623 : vector<2x32xf32> to vector<2x1x32xf32>
    %625 = vector.broadcast %624 : vector<2x1x32xf32> to vector<2x8x32xf32>
    %626 = arith.addf %513, %625 : vector<2x8x32xf32>
    %627 = math.tanh %626 : vector<2x8x32xf32>
    %628 = vector.shape_cast %514 : vector<1x32xf32> to vector<1x1x32xf32>
    %629 = vector.broadcast %628 : vector<1x1x32xf32> to vector<2x8x32xf32>
    %630 = arith.mulf %627, %629 : vector<2x8x32xf32>
    %cst_167 = arith.constant dense<0.000000e+00> : vector<2x8xf32>
    %631 = vector.multi_reduction <add>, %630, %cst_167 [2] : vector<2x8x32xf32> to vector<2x8xf32>
    %cst_168 = arith.constant dense<0xFF800000> : vector<2xf32>
    %632 = vector.multi_reduction <maximumf>, %631, %cst_168 [1] : vector<2x8xf32> to vector<2xf32>
    %633 = vector.shape_cast %632 : vector<2xf32> to vector<2x1xf32>
    %634 = vector.broadcast %633 : vector<2x1xf32> to vector<2x8xf32>
    %635 = arith.subf %631, %634 : vector<2x8xf32>
    %636 = math.exp %635 : vector<2x8xf32>
    %cst_169 = arith.constant dense<0.000000e+00> : vector<2xf32>
    %637 = vector.multi_reduction <add>, %636, %cst_169 [1] : vector<2x8xf32> to vector<2xf32>
    %638 = vector.shape_cast %637 : vector<2xf32> to vector<2x1xf32>
    %639 = vector.broadcast %638 : vector<2x1xf32> to vector<2x8xf32>
    %640 = arith.divf %636, %639 : vector<2x8xf32>
    %641 = vector.shape_cast %640 : vector<2x8xf32> to vector<2x1x8xf32>
    "tpu.trace_start"() <{level = 10 : i32, message = "bqs,bsk->bqk"}> : () -> ()
    %cst_170 = arith.constant dense<0.000000e+00> : vector<2x1x64xf32>
    %642 = tpu.matmul %641, %492, %cst_170 {dimension_numbers = #tpu.dot_dimension_numbers<[2], [1], [1], [2], [0, 0, 0, 1, 1, 2], [0], [0]>} : vector<2x1x8xf32>, vector<2x8x64xf32>, vector<2x1x64xf32> -> vector<2x1x64xf32>
    "tpu.trace_stop"() : () -> ()
    %643 = vector.shape_cast %642 : vector<2x1x64xf32> to vector<2x64xf32>
    %644 = tpu.concatenate %643, %622 in 1 : vector<2x64xf32>, vector<2x32xf32> -> vector<2x96xf32>
    %645 = vector.extract_strided_slice %522 {offsets = [4, 0], sizes = [2, 128], strides = [1, 1]} : vector<12x128xf32> to vector<2x128xf32>
    %cst_171 = arith.constant dense<0.000000e+00> : vector<2x128xf32>
    %646 = tpu.matmul %644, %516, %cst_171 {dimension_numbers = #tpu.dot_dimension_numbers<[1], [0], [0], [1], [0, 0, 1, 1], [], []>} : vector<2x96xf32>, vector<96x128xf32>, vector<2x128xf32> -> vector<2x128xf32>
    %647 = arith.addf %645, %646 : vector<2x128xf32>
    %648 = vector.extract_strided_slice %647 {offsets = [0, 0], sizes = [2, 32], strides = [1, 1]} : vector<2x128xf32> to vector<2x32xf32>
    %649 = arith.negf %648 : vector<2x32xf32>
    %650 = math.exp %649 : vector<2x32xf32>
    %cst_172 = arith.constant 1.000000e+00 : f32
    %651 = vector.broadcast %cst_172 : f32 to vector<2x32xf32>
    %652 = arith.addf %651, %650 : vector<2x32xf32>
    %653 = arith.divf %651, %652 : vector<2x32xf32>
    %654 = vector.extract_strided_slice %647 {offsets = [0, 32], sizes = [2, 32], strides = [1, 1]} : vector<2x128xf32> to vector<2x32xf32>
    %655 = arith.negf %654 : vector<2x32xf32>
    %656 = math.exp %655 : vector<2x32xf32>
    %cst_173 = arith.constant 1.000000e+00 : f32
    %657 = vector.broadcast %cst_173 : f32 to vector<2x32xf32>
    %658 = arith.addf %657, %656 : vector<2x32xf32>
    %659 = arith.divf %657, %658 : vector<2x32xf32>
    %660 = vector.extract_strided_slice %647 {offsets = [0, 64], sizes = [2, 32], strides = [1, 1]} : vector<2x128xf32> to vector<2x32xf32>
    %661 = math.tanh %660 : vector<2x32xf32>
    %662 = vector.extract_strided_slice %647 {offsets = [0, 96], sizes = [2, 32], strides = [1, 1]} : vector<2x128xf32> to vector<2x32xf32>
    %663 = arith.negf %662 : vector<2x32xf32>
    %664 = math.exp %663 : vector<2x32xf32>
    %cst_174 = arith.constant 1.000000e+00 : f32
    %665 = vector.broadcast %cst_174 : f32 to vector<2x32xf32>
    %666 = arith.addf %665, %664 : vector<2x32xf32>
    %667 = arith.divf %665, %666 : vector<2x32xf32>
    %668 = arith.mulf %659, %620 : vector<2x32xf32>
    %669 = arith.mulf %653, %661 : vector<2x32xf32>
    %670 = arith.addf %668, %669 : vector<2x32xf32>
    %671 = math.tanh %670 : vector<2x32xf32>
    %672 = arith.mulf %667, %671 : vector<2x32xf32>
    %cst_175 = arith.constant dense<0.000000e+00> : vector<2x32xf32>
    %673 = tpu.matmul %672, %515, %cst_175 {dimension_numbers = #tpu.dot_dimension_numbers<[1], [0], [0], [1], [0, 0, 1, 1], [], []>} : vector<2x32xf32>, vector<32x32xf32>, vector<2x32xf32> -> vector<2x32xf32>
    %674 = vector.shape_cast %673 : vector<2x32xf32> to vector<2x1x32xf32>
    %675 = vector.broadcast %674 : vector<2x1x32xf32> to vector<2x8x32xf32>
    %676 = arith.addf %513, %675 : vector<2x8x32xf32>
    %677 = math.tanh %676 : vector<2x8x32xf32>
    %678 = vector.shape_cast %514 : vector<1x32xf32> to vector<1x1x32xf32>
    %679 = vector.broadcast %678 : vector<1x1x32xf32> to vector<2x8x32xf32>
    %680 = arith.mulf %677, %679 : vector<2x8x32xf32>
    %cst_176 = arith.constant dense<0.000000e+00> : vector<2x8xf32>
    %681 = vector.multi_reduction <add>, %680, %cst_176 [2] : vector<2x8x32xf32> to vector<2x8xf32>
    %cst_177 = arith.constant dense<0xFF800000> : vector<2xf32>
    %682 = vector.multi_reduction <maximumf>, %681, %cst_177 [1] : vector<2x8xf32> to vector<2xf32>
    %683 = vector.shape_cast %682 : vector<2xf32> to vector<2x1xf32>
    %684 = vector.broadcast %683 : vector<2x1xf32> to vector<2x8xf32>
    %685 = arith.subf %681, %684 : vector<2x8xf32>
    %686 = math.exp %685 : vector<2x8xf32>
    %cst_178 = arith.constant dense<0.000000e+00> : vector<2xf32>
    %687 = vector.multi_reduction <add>, %686, %cst_178 [1] : vector<2x8xf32> to vector<2xf32>
    %688 = vector.shape_cast %687 : vector<2xf32> to vector<2x1xf32>
    %689 = vector.broadcast %688 : vector<2x1xf32> to vector<2x8xf32>
    %690 = arith.divf %686, %689 : vector<2x8xf32>
    %691 = vector.shape_cast %690 : vector<2x8xf32> to vector<2x1x8xf32>
    "tpu.trace_start"() <{level = 10 : i32, message = "bqs,bsk->bqk"}> : () -> ()
    %cst_179 = arith.constant dense<0.000000e+00> : vector<2x1x64xf32>
    %692 = tpu.matmul %691, %492, %cst_179 {dimension_numbers = #tpu.dot_dimension_numbers<[2], [1], [1], [2], [0, 0, 0, 1, 1, 2], [0], [0]>} : vector<2x1x8xf32>, vector<2x8x64xf32>, vector<2x1x64xf32> -> vector<2x1x64xf32>
    "tpu.trace_stop"() : () -> ()
    %693 = vector.shape_cast %692 : vector<2x1x64xf32> to vector<2x64xf32>
    %694 = tpu.concatenate %693, %672 in 1 : vector<2x64xf32>, vector<2x32xf32> -> vector<2x96xf32>
    %695 = vector.extract_strided_slice %522 {offsets = [6, 0], sizes = [2, 128], strides = [1, 1]} : vector<12x128xf32> to vector<2x128xf32>
    %cst_180 = arith.constant dense<0.000000e+00> : vector<2x128xf32>
    %696 = tpu.matmul %694, %516, %cst_180 {dimension_numbers = #tpu.dot_dimension_numbers<[1], [0], [0], [1], [0, 0, 1, 1], [], []>} : vector<2x96xf32>, vector<96x128xf32>, vector<2x128xf32> -> vector<2x128xf32>
    %697 = arith.addf %695, %696 : vector<2x128xf32>
    %698 = vector.extract_strided_slice %697 {offsets = [0, 0], sizes = [2, 32], strides = [1, 1]} : vector<2x128xf32> to vector<2x32xf32>
    %699 = arith.negf %698 : vector<2x32xf32>
    %700 = math.exp %699 : vector<2x32xf32>
    %cst_181 = arith.constant 1.000000e+00 : f32
    %701 = vector.broadcast %cst_181 : f32 to vector<2x32xf32>
    %702 = arith.addf %701, %700 : vector<2x32xf32>
    %703 = arith.divf %701, %702 : vector<2x32xf32>
    %704 = vector.extract_strided_slice %697 {offsets = [0, 32], sizes = [2, 32], strides = [1, 1]} : vector<2x128xf32> to vector<2x32xf32>
    %705 = arith.negf %704 : vector<2x32xf32>
    %706 = math.exp %705 : vector<2x32xf32>
    %cst_182 = arith.constant 1.000000e+00 : f32
    %707 = vector.broadcast %cst_182 : f32 to vector<2x32xf32>
    %708 = arith.addf %707, %706 : vector<2x32xf32>
    %709 = arith.divf %707, %708 : vector<2x32xf32>
    %710 = vector.extract_strided_slice %697 {offsets = [0, 64], sizes = [2, 32], strides = [1, 1]} : vector<2x128xf32> to vector<2x32xf32>
    %711 = math.tanh %710 : vector<2x32xf32>
    %712 = vector.extract_strided_slice %697 {offsets = [0, 96], sizes = [2, 32], strides = [1, 1]} : vector<2x128xf32> to vector<2x32xf32>
    %713 = arith.negf %712 : vector<2x32xf32>
    %714 = math.exp %713 : vector<2x32xf32>
    %cst_183 = arith.constant 1.000000e+00 : f32
    %715 = vector.broadcast %cst_183 : f32 to vector<2x32xf32>
    %716 = arith.addf %715, %714 : vector<2x32xf32>
    %717 = arith.divf %715, %716 : vector<2x32xf32>
    %718 = arith.mulf %709, %670 : vector<2x32xf32>
    %719 = arith.mulf %703, %711 : vector<2x32xf32>
    %720 = arith.addf %718, %719 : vector<2x32xf32>
    %721 = math.tanh %720 : vector<2x32xf32>
    %722 = arith.mulf %717, %721 : vector<2x32xf32>
    %cst_184 = arith.constant dense<0.000000e+00> : vector<2x32xf32>
    %723 = tpu.matmul %722, %515, %cst_184 {dimension_numbers = #tpu.dot_dimension_numbers<[1], [0], [0], [1], [0, 0, 1, 1], [], []>} : vector<2x32xf32>, vector<32x32xf32>, vector<2x32xf32> -> vector<2x32xf32>
    %724 = vector.shape_cast %723 : vector<2x32xf32> to vector<2x1x32xf32>
    %725 = vector.broadcast %724 : vector<2x1x32xf32> to vector<2x8x32xf32>
    %726 = arith.addf %513, %725 : vector<2x8x32xf32>
    %727 = math.tanh %726 : vector<2x8x32xf32>
    %728 = vector.shape_cast %514 : vector<1x32xf32> to vector<1x1x32xf32>
    %729 = vector.broadcast %728 : vector<1x1x32xf32> to vector<2x8x32xf32>
    %730 = arith.mulf %727, %729 : vector<2x8x32xf32>
    %cst_185 = arith.constant dense<0.000000e+00> : vector<2x8xf32>
    %731 = vector.multi_reduction <add>, %730, %cst_185 [2] : vector<2x8x32xf32> to vector<2x8xf32>
    %cst_186 = arith.constant dense<0xFF800000> : vector<2xf32>
    %732 = vector.multi_reduction <maximumf>, %731, %cst_186 [1] : vector<2x8xf32> to vector<2xf32>
    %733 = vector.shape_cast %732 : vector<2xf32> to vector<2x1xf32>
    %734 = vector.broadcast %733 : vector<2x1xf32> to vector<2x8xf32>
    %735 = arith.subf %731, %734 : vector<2x8xf32>
    %736 = math.exp %735 : vector<2x8xf32>
    %cst_187 = arith.constant dense<0.000000e+00> : vector<2xf32>
    %737 = vector.multi_reduction <add>, %736, %cst_187 [1] : vector<2x8xf32> to vector<2xf32>
    %738 = vector.shape_cast %737 : vector<2xf32> to vector<2x1xf32>
    %739 = vector.broadcast %738 : vector<2x1xf32> to vector<2x8xf32>
    %740 = arith.divf %736, %739 : vector<2x8xf32>
    %741 = vector.shape_cast %740 : vector<2x8xf32> to vector<2x1x8xf32>
    "tpu.trace_start"() <{level = 10 : i32, message = "bqs,bsk->bqk"}> : () -> ()
    %cst_188 = arith.constant dense<0.000000e+00> : vector<2x1x64xf32>
    %742 = tpu.matmul %741, %492, %cst_188 {dimension_numbers = #tpu.dot_dimension_numbers<[2], [1], [1], [2], [0, 0, 0, 1, 1, 2], [0], [0]>} : vector<2x1x8xf32>, vector<2x8x64xf32>, vector<2x1x64xf32> -> vector<2x1x64xf32>
    "tpu.trace_stop"() : () -> ()
    %743 = vector.shape_cast %742 : vector<2x1x64xf32> to vector<2x64xf32>
    %744 = tpu.concatenate %743, %722 in 1 : vector<2x64xf32>, vector<2x32xf32> -> vector<2x96xf32>
    %745 = vector.extract_strided_slice %522 {offsets = [8, 0], sizes = [2, 128], strides = [1, 1]} : vector<12x128xf32> to vector<2x128xf32>
    %cst_189 = arith.constant dense<0.000000e+00> : vector<2x128xf32>
    %746 = tpu.matmul %744, %516, %cst_189 {dimension_numbers = #tpu.dot_dimension_numbers<[1], [0], [0], [1], [0, 0, 1, 1], [], []>} : vector<2x96xf32>, vector<96x128xf32>, vector<2x128xf32> -> vector<2x128xf32>
    %747 = arith.addf %745, %746 : vector<2x128xf32>
    %748 = vector.extract_strided_slice %747 {offsets = [0, 0], sizes = [2, 32], strides = [1, 1]} : vector<2x128xf32> to vector<2x32xf32>
    %749 = arith.negf %748 : vector<2x32xf32>
    %750 = math.exp %749 : vector<2x32xf32>
    %cst_190 = arith.constant 1.000000e+00 : f32
    %751 = vector.broadcast %cst_190 : f32 to vector<2x32xf32>
    %752 = arith.addf %751, %750 : vector<2x32xf32>
    %753 = arith.divf %751, %752 : vector<2x32xf32>
    %754 = vector.extract_strided_slice %747 {offsets = [0, 32], sizes = [2, 32], strides = [1, 1]} : vector<2x128xf32> to vector<2x32xf32>
    %755 = arith.negf %754 : vector<2x32xf32>
    %756 = math.exp %755 : vector<2x32xf32>
    %cst_191 = arith.constant 1.000000e+00 : f32
    %757 = vector.broadcast %cst_191 : f32 to vector<2x32xf32>
    %758 = arith.addf %757, %756 : vector<2x32xf32>
    %759 = arith.divf %757, %758 : vector<2x32xf32>
    %760 = vector.extract_strided_slice %747 {offsets = [0, 64], sizes = [2, 32], strides = [1, 1]} : vector<2x128xf32> to vector<2x32xf32>
    %761 = math.tanh %760 : vector<2x32xf32>
    %762 = vector.extract_strided_slice %747 {offsets = [0, 96], sizes = [2, 32], strides = [1, 1]} : vector<2x128xf32> to vector<2x32xf32>
    %763 = arith.negf %762 : vector<2x32xf32>
    %764 = math.exp %763 : vector<2x32xf32>
    %cst_192 = arith.constant 1.000000e+00 : f32
    %765 = vector.broadcast %cst_192 : f32 to vector<2x32xf32>
    %766 = arith.addf %765, %764 : vector<2x32xf32>
    %767 = arith.divf %765, %766 : vector<2x32xf32>
    %768 = arith.mulf %759, %720 : vector<2x32xf32>
    %769 = arith.mulf %753, %761 : vector<2x32xf32>
    %770 = arith.addf %768, %769 : vector<2x32xf32>
    %771 = math.tanh %770 : vector<2x32xf32>
    %772 = arith.mulf %767, %771 : vector<2x32xf32>
    %cst_193 = arith.constant dense<0.000000e+00> : vector<2x32xf32>
    %773 = tpu.matmul %772, %515, %cst_193 {dimension_numbers = #tpu.dot_dimension_numbers<[1], [0], [0], [1], [0, 0, 1, 1], [], []>} : vector<2x32xf32>, vector<32x32xf32>, vector<2x32xf32> -> vector<2x32xf32>
    %774 = vector.shape_cast %773 : vector<2x32xf32> to vector<2x1x32xf32>
    %775 = vector.broadcast %774 : vector<2x1x32xf32> to vector<2x8x32xf32>
    %776 = arith.addf %513, %775 : vector<2x8x32xf32>
    %777 = math.tanh %776 : vector<2x8x32xf32>
    %778 = vector.shape_cast %514 : vector<1x32xf32> to vector<1x1x32xf32>
    %779 = vector.broadcast %778 : vector<1x1x32xf32> to vector<2x8x32xf32>
    %780 = arith.mulf %777, %779 : vector<2x8x32xf32>
    %cst_194 = arith.constant dense<0.000000e+00> : vector<2x8xf32>
    %781 = vector.multi_reduction <add>, %780, %cst_194 [2] : vector<2x8x32xf32> to vector<2x8xf32>
    %cst_195 = arith.constant dense<0xFF800000> : vector<2xf32>
    %782 = vector.multi_reduction <maximumf>, %781, %cst_195 [1] : vector<2x8xf32> to vector<2xf32>
    %783 = vector.shape_cast %782 : vector<2xf32> to vector<2x1xf32>
    %784 = vector.broadcast %783 : vector<2x1xf32> to vector<2x8xf32>
    %785 = arith.subf %781, %784 : vector<2x8xf32>
    %786 = math.exp %785 : vector<2x8xf32>
    %cst_196 = arith.constant dense<0.000000e+00> : vector<2xf32>
    %787 = vector.multi_reduction <add>, %786, %cst_196 [1] : vector<2x8xf32> to vector<2xf32>
    %788 = vector.shape_cast %787 : vector<2xf32> to vector<2x1xf32>
    %789 = vector.broadcast %788 : vector<2x1xf32> to vector<2x8xf32>
    %790 = arith.divf %786, %789 : vector<2x8xf32>
    %791 = vector.shape_cast %790 : vector<2x8xf32> to vector<2x1x8xf32>
    "tpu.trace_start"() <{level = 10 : i32, message = "bqs,bsk->bqk"}> : () -> ()
    %cst_197 = arith.constant dense<0.000000e+00> : vector<2x1x64xf32>
    %792 = tpu.matmul %791, %492, %cst_197 {dimension_numbers = #tpu.dot_dimension_numbers<[2], [1], [1], [2], [0, 0, 0, 1, 1, 2], [0], [0]>} : vector<2x1x8xf32>, vector<2x8x64xf32>, vector<2x1x64xf32> -> vector<2x1x64xf32>
    "tpu.trace_stop"() : () -> ()
    %793 = vector.shape_cast %792 : vector<2x1x64xf32> to vector<2x64xf32>
    %794 = tpu.concatenate %793, %772 in 1 : vector<2x64xf32>, vector<2x32xf32> -> vector<2x96xf32>
    %795 = vector.extract_strided_slice %522 {offsets = [10, 0], sizes = [2, 128], strides = [1, 1]} : vector<12x128xf32> to vector<2x128xf32>
    %cst_198 = arith.constant dense<0.000000e+00> : vector<2x128xf32>
    %796 = tpu.matmul %794, %516, %cst_198 {dimension_numbers = #tpu.dot_dimension_numbers<[1], [0], [0], [1], [0, 0, 1, 1], [], []>} : vector<2x96xf32>, vector<96x128xf32>, vector<2x128xf32> -> vector<2x128xf32>
    %797 = arith.addf %795, %796 : vector<2x128xf32>
    %798 = vector.extract_strided_slice %797 {offsets = [0, 0], sizes = [2, 32], strides = [1, 1]} : vector<2x128xf32> to vector<2x32xf32>
    %799 = arith.negf %798 : vector<2x32xf32>
    %800 = math.exp %799 : vector<2x32xf32>
    %cst_199 = arith.constant 1.000000e+00 : f32
    %801 = vector.broadcast %cst_199 : f32 to vector<2x32xf32>
    %802 = arith.addf %801, %800 : vector<2x32xf32>
    %803 = arith.divf %801, %802 : vector<2x32xf32>
    %804 = vector.extract_strided_slice %797 {offsets = [0, 32], sizes = [2, 32], strides = [1, 1]} : vector<2x128xf32> to vector<2x32xf32>
    %805 = arith.negf %804 : vector<2x32xf32>
    %806 = math.exp %805 : vector<2x32xf32>
    %cst_200 = arith.constant 1.000000e+00 : f32
    %807 = vector.broadcast %cst_200 : f32 to vector<2x32xf32>
    %808 = arith.addf %807, %806 : vector<2x32xf32>
    %809 = arith.divf %807, %808 : vector<2x32xf32>
    %810 = vector.extract_strided_slice %797 {offsets = [0, 64], sizes = [2, 32], strides = [1, 1]} : vector<2x128xf32> to vector<2x32xf32>
    %811 = math.tanh %810 : vector<2x32xf32>
    %812 = vector.extract_strided_slice %797 {offsets = [0, 96], sizes = [2, 32], strides = [1, 1]} : vector<2x128xf32> to vector<2x32xf32>
    %813 = arith.negf %812 : vector<2x32xf32>
    %814 = math.exp %813 : vector<2x32xf32>
    %cst_201 = arith.constant 1.000000e+00 : f32
    %815 = vector.broadcast %cst_201 : f32 to vector<2x32xf32>
    %816 = arith.addf %815, %814 : vector<2x32xf32>
    %817 = arith.divf %815, %816 : vector<2x32xf32>
    %818 = arith.mulf %809, %770 : vector<2x32xf32>
    %819 = arith.mulf %803, %811 : vector<2x32xf32>
    %820 = arith.addf %818, %819 : vector<2x32xf32>
    %821 = math.tanh %820 : vector<2x32xf32>
    %822 = arith.mulf %817, %821 : vector<2x32xf32>
    %823 = tpu.concatenate %572, %622, %672, %722, %772, %822 in 0 : vector<2x32xf32>, vector<2x32xf32>, vector<2x32xf32>, vector<2x32xf32>, vector<2x32xf32>, vector<2x32xf32> -> vector<12x32xf32>
    %c0_202 = arith.constant 0 : index
    %c0_203 = arith.constant 0 : index
    %824 = vector.load %arg17[%c0_202, %c0_203] : memref<32x128xf32, #tpu.memory_space<vmem>>, vector<32x128xf32>
    %cst_204 = arith.constant dense<0.000000e+00> : vector<12x128xf32>
    %825 = tpu.matmul %823, %824, %cst_204 {dimension_numbers = #tpu.dot_dimension_numbers<[1], [0], [0], [1], [0, 0, 1, 1], [], []>} : vector<12x32xf32>, vector<32x128xf32>, vector<12x128xf32> -> vector<12x128xf32>
    %c0_205 = arith.constant 0 : index
    %c0_206 = arith.constant 0 : index
    %826 = vector.load %arg18[%c0_205, %c0_206] : memref<1x128xf32, #tpu.memory_space<vmem>>, vector<1x128xf32>
    %827 = vector.broadcast %826 : vector<1x128xf32> to vector<12x128xf32>
    %828 = arith.addf %825, %827 : vector<12x128xf32>
    %c0_207 = arith.constant 0 : index
    %c0_208 = arith.constant 0 : index
    %829 = vector.load %arg19[%c0_207, %c0_208] : memref<12x128xf32, #tpu.memory_space<vmem>>, vector<12x128xf32>
    tpu.vector_store %arg19[%c0_207, %c0_208], %828 {strides = array<i32>} : memref<12x128xf32, #tpu.memory_space<vmem>>, vector<12x128xf32>,
    return
  }
}

</mosaic_0001>

<bundles_post_ra>
// kernel: seq2seq_forward.1
= control target key start
LH: loop header
LB: loop body
LE: loop exit
PB: predicated region body
PF: predicated region fallthrough
CT: control target
= control target key end

     0   :  { %v7223_v3 = vmov 0.0|0.0   ;;  %v7224_v4 = vmov 0.0   ;;  %vm7225_vm0 = vmmov 0   ;;  %vm84_vm1 = vcmask 261120   ;;  %s7227_s28 = smov 32   ;;  %s8606_s2 = inlined_call_operand.vmem [shape: f32[32,256], index: 2, kind: input, shape index: {}]   ;;  %s8607_s4 = inlined_call_operand.vmem [shape: f32[32,128], index: 4, kind: input, shape index: {}]   ;;  %s8608_s5 = inlined_call_operand.vmem [shape: f32[32,128], index: 5, kind: input, shape index: {}]   ;;  %s8609_s0 = inlined_call_operand.vmem [shape: f32[16,32], index: 0, kind: input, shape index: {}]   ;;  %s8610_s3 = inlined_call_operand.vmem [shape: f32[1,256], index: 3, kind: input, shape index: {}]   ;;  %s8611_s6 = inlined_call_operand.vmem [shape: f32[64,32], index: 6, kind: input, shape index: {}]   ;;  %s8612_s8 = inlined_call_operand.vmem [shape: f32[64,32], index: 8, kind: input, shape index: {}]   ;;  %s8613_s10 = inlined_call_operand.vmem [shape: f32[64,32], index: 10, kind: input, shape index: {}]   ;;  %s8614_s14 = inlined_call_operand.vmem [shape: f32[32,128], index: 14, kind: input, shape index: {}]   ;;  %s8615_s11 = inlined_call_operand.vmem [shape: f32[32,32], index: 11, kind: input, shape index: {}]   ;;  %s8616_s1 = inlined_call_operand.vmem [shape: f32[12,32], index: 1, kind: input, shape index: {}]   ;;  %s8617_s7 = inlined_call_operand.vmem [shape: f32[1,32], index: 7, kind: input, shape index: {}]   ;;  %s8618_s15 = inlined_call_operand.vmem [shape: f32[1,128], index: 15, kind: input, shape index: {}]   ;;  %s8619_s12 = inlined_call_operand.vmem [shape: f32[1,32], index: 12, kind: input, shape index: {}]   ;;  %s8620_s13 = inlined_call_operand.vmem [shape: f32[1,32], index: 13, kind: input, shape index: {}]   ;;  %s8621_s16 = inlined_call_operand.vmem [shape: f32[96,128], index: 16, kind: input, shape index: {}]   ;;  %s8622_s9 = inlined_call_operand.vmem [shape: f32[1,32], index: 9, kind: input, shape index: {}]   ;;  %s8623_s17 = inlined_call_operand.vmem [shape: f32[32,128], index: 17, kind: input, shape index: {}]   ;;  %s8624_s18 = inlined_call_operand.vmem [shape: f32[1,128], index: 18, kind: input, shape index: {}]   ;;  %s8625_s19 = inlined_call_operand.vmem [shape: f32[12,128], index: 19, kind: output, shape index: {}]  }
   0x1   :  { %8630 = sst [smem:[#allocation3_spill]] %s8606_s2  ;;  %6662 = vmatprep.subr.bf16.mxu1 %v7223_v3  ;;  %155 = vmatprep.mubr.f32.mxu0 %v7224_v4  ;;  %v74_v28 = vlaneseq  ;;  %v72_v31 = vld [vmem:[%s8610_s3] sm:$0x3]  ;;  %s7226_s3 = smov 64   ;;  %vm409_vm2 = vcmask 253952   ;;  %vm2529_vm3 = vcmask 523264  }
   0x2   :  { %8631 = sst [smem:[#allocation4_spill]] %s8607_s4  ;;  %s8634_s20 = sld [smem:[#allocation3_spill]]  ;;  %6119 = vmatprep.mubr.msk.f32.mxu1 %vm7225_vm0, %v7224_v4  ;;  %vm452_vm4 = vcmask 516352   ;;  %vm3036_vm5 = vcmask 1041409   ;;  %vm3039_vm6 = vcmask 58368   ;;  %vm3104_vm7 = vcmask 64512  }
   0x3   :  { %8632 = sst [smem:[#allocation5_spill]] %s8608_s5  ;;  %s8635_s2 = sld [smem:[#allocation4_spill]]  ;;  %v7426_v29 = vshrl.u32 %v74_v28, 7  ;;  %vm3266_vm8 = vcmask 785408   ;;  %vm5674_vm9 = vcmask 1041408   ;;  %vm5676_vm10 = vcmask 1043456  }
   0x4   :  { %8633 = sst [smem:[#allocation6_spill]] %s8609_s0  ;;  %s8636_s29 = sld [smem:[#allocation5_spill]]  ;;  %vm5678_vm11 = vcmask 1045504  }
   0x5   :  { %s8637_s22 = sld [smem:[#allocation6_spill]]  ;;  %v7429_v30 = vsub.s32 1, %v7426_v29  ;;  %v7436_v33 = vsub.s32 0, %v7426_v29 }
   0x7   :  { %v81_v32 = vrot.slane %v72_v31, %v7429_v30  ;;  %v77_v38 = vrot.slane %v72_v31, %v7436_v33 }
   0x8   :  { %v65_v0 = vld [vmem:[%s8634_s20 + $0x8] sm:$0xff]  ;;  %v67_v1 = vld [vmem:[%s8634_s20 + $0x18] sm:$0xff]  ;;  %v64_v2 = vld [vmem:[%s8634_s20] sm:$0xff] }
   0x9   :  { %v6654_v5 = vpack.c.bf16 %v67_v1, %v65_v0  ;;  %v66_v6 = vld [vmem:[%s8634_s20 + $0x10] sm:$0xff]  ;;  %v69_v7 = vld [vmem:[%s8634_s20 + $0x28] sm:$0xff]  ;;  %v71_v8 = vld [vmem:[%s8634_s20 + $0x38] sm:$0xff] }
   0xa   :  { %v6656_v9 = vpack.c.bf16 %v66_v6, %v64_v2  ;;  %v6658_v10 = vpack.c.bf16 %v71_v8, %v69_v7  ;;  %v168_v11 = vld [vmem:[%s8635_s2] sm:$0xff]  ;;  %v169_v12 = vld [vmem:[%s8635_s2 + $0x8] sm:$0xff]  ;;  %v70_v15 = vld [vmem:[%s8634_s20 + $0x30] sm:$0xff] }
   0xb   :  { %v68_v13 = vld [vmem:[%s8634_s20 + $0x20] sm:$0xff]  ;;  %6655 = vmatprep.subr.bf16.mxu0 %v6654_v5  ;;  %v7362_v14 = vpack.c.bf16 %v169_v12, %v168_v11  ;;  %v170_v16 = vld [vmem:[%s8635_s2 + $0x10] sm:$0xff]  ;;  %v171_v18 = vld [vmem:[%s8635_s2 + $0x18] sm:$0xff] }
   0xc   :  { %6657 = vmatpush1.bf16.msra.mxu0 %v6656_v9  ;;  %v6660_v17 = vpack.c.bf16 %v70_v15, %v68_v13  ;;  %v7374_v19 = vpack.c.bf16 %v171_v18, %v170_v16  ;;  %v172_v20 = vld [vmem:[%s8636_s29] sm:$0xff]  ;;  %v173_v21 = vld [vmem:[%s8636_s29 + $0x8] sm:$0xff]  ;;  %v174_v24 = vld [vmem:[%s8636_s29 + $0x10] sm:$0xff] }
   0xd   :  { %6659 = vmatprep.subr.bf16.mxu0 %v6658_v10  ;;  %6664 = vmatpush3.bf16.msra.mxu1 %v7362_v14  ;;  %v62_v22 = vld [vmem:[%s8637_s22] sm:$0xff]  ;;  %v7386_v23 = vpack.c.bf16 %v173_v21, %v172_v20  ;;  %v175_v25 = vld [vmem:[%s8636_s29 + $0x18] sm:$0xff]  ;;  %v63_v26 = vld [vmem:[%s8637_s22 + $0x8] sm:$0xff] }
   0xe   :  { %6665 = vmatprep.subr.bf16.mxu1 %v7223_v3  ;;  %v7403_v27 = vpack.c.bf16 %v175_v25, %v174_v24 }
  0x10   :  { %6661 = vmatpush1.bf16.msra.mxu0 %v6660_v17 }
  0x11   :  { %6667 = vmatpush3.bf16.msra.mxu1 %v7374_v19  ;;  %6668 = vmatprep.subr.bf16.mxu0 %v7223_v3 }
  0x12   :  { %6674 = vmatprep.subr.bf16.mxu1 %v7223_v3 }
  0x13   :  { %5783 = vmatmul.mubr.msk.f32.vlgmr.msra.gmra.mrb[0].mxu0 %vm84_vm1, %v62_v22 }
  0x14   :  { %6670 = vmatpush3.bf16.msra.mxu0 %v7386_v23  ;;  %161 = vmatprep.mubr.f32.mxu0 %v7224_v4 }
  0x15   :  { %6120 = vmatmul.mubr.f32.vlgmr.msra.gmra.mrb[0].mxu1 %v7224_v4  ;;  %6671 = vmatprep.subr.bf16.mxu0 %v7223_v3 }
  0x16   :  { %6676 = vmatpush3.bf16.msra.mxu1 %v7362_v14  ;;  %6141 = vmatprep.mubr.msk.f32.mxu1 %vm7225_vm0, %v7224_v4 }
  0x17   :  { %5784 = vmatmul.mubr.msk.f32.gmra.mrb[2].mxu0 %vm84_vm1, %v63_v26  ;;  %6677 = vmatprep.subr.bf16.mxu1 %v7223_v3 }
  0x18   :  { %6673 = vmatpush3.bf16.msra.mxu0 %v7403_v27  ;;  %6130 = vmatprep.mubr.msk.f32.mxu0 %vm7225_vm0, %v7224_v4 }
  0x19   :  { %6680 = vmatprep.subr.bf16.mxu0 %v7223_v3 }
  0x1a   :  { %6679 = vmatpush3.bf16.msra.mxu1 %v7374_v19 }
  0x1b   :  { %6131 = vmatmul.mubr.f32.vlgmr.msra.gmra.mrb[4].mxu0 %v7224_v4  ;;  %6686 = vmatprep.subr.bf16.mxu1 %v7223_v3 }
  0x1c   :  { %6682 = vmatpush3.bf16.msra.mxu0 %v7386_v23  ;;  %6152 = vmatprep.mubr.msk.f32.mxu0 %vm7225_vm0, %v7224_v4 }
  0x1d   :  { %6683 = vmatprep.subr.bf16.mxu0 %v7223_v3 }
  0x20   :  { %6685 = vmatpush3.bf16.msra.mxu0 %v7403_v27 }
  0x21   :  { %6692 = vmatprep.subr.bf16.mxu0 %v7223_v3 }
  0xe6   :  { %v157_v34 = vpop.f32.mrb[0].mxu0 }
  0xe7   :  { %v159_v35 = vpop.f32.mrb[1].mxu0  ;;  %v7443_v44 = vadd.f32 %v157_v34, %v77_v38 }
  0xe8   :  { %v7438_v36 = vadd.f32 %v159_v35, %v81_v32  ;;  %v245_v37 = vpop.f32.mrb[0].mxu1 }
  0xe9   :  { %v6121_v39 = vpop.f32.mrb[1].mxu1  ;;  %v249_v49 = vadd.f32 %v245_v37, %v7443_v44 }
  0xea   :  { %v163_v40 = vpop.f32.mrb[2].mxu0 }
  0xeb   :  { %v7441_v41 = vadd.f32 %v163_v40, %v77_v38  ;;  %v165_v42 = vpop.f32.mrb[3].mxu0  ;;  %v5785_v53 = vmul.f32 -1.442695, %v249_v49 }
  0xec   :  { %v7445_v45 = vadd.f32 %v165_v42, %v81_v32 }
  0xee   :  { %v316_v43 = vpop.f32.mrb[4].mxu0 }
  0xef   :  { %v321_v46 = vrot.slane %v316_v43, 2  ;;  %v6132_v47 = vpop.f32.mrb[5].mxu0 }
  0xf1   :  { %v323_v48 = vadd.f32 %v321_v46, %v7445_v45 }
  0xf3   :  { %6968 = vtanh.f32 %v323_v48  ;;  %v5786_v52 = vmul.f32 -1.442695, %v323_v48 }
  0xf4   :  { %6970 = vtanh.f32 %v249_v49 }
  0xf5   :  { %6972 = vpow2.f32 %v5786_v52 }
  0xf6   :  { %6974 = vpow2.f32 %v5785_v53 }
  0xfd   :  { %v6969_v50 = vpop.eup %6968 }
  0xfe   :  { %357 = vrot.lane.b32.xlu0 %v6969_v50, %s7226_s3  ;;  %v6971_v51 = vpop.eup %6970 }
  0xff   :  { %v6973_v54 = vpop.eup %6972 }
 0x100   :  { %v351_v55 = vadd.f32 1.0, %v6973_v54  ;;  %v6975_v56 = vpop.eup %6974 }
 0x101   :  { %v327_v57 = vadd.f32 1.0, %v6975_v56 }
 0x102   :  { %333 = vrot.lane.b32.xlu0 %v6971_v51, %s7226_s3  ;;  %6976 = vrcp.f32 %v351_v55 }
 0x103   :  { %6978 = vrcp.f32 %v327_v57 }
 0x10c   :  { %v6977_v58 = vpop.eup %6976 }
 0x10d   :  { %v6979_v61 = vpop.eup %6978  ;;  %v355_v0 = vmul.f32 0.0, %v6977_v58 }
 0x10e   :  { %v331_v5 = vmul.f32 0.0, %v6979_v61 }
 0x170   :  { %v358_v59 = vpop.permute.xlu0 %357 }
 0x171   :  { %v360_v60 = vmul.f32 %v6977_v58, %v358_v59 }
 0x173   :  { %362 = vrot.lane.b32.xlu1 %v360_v60, %s7227_s28 }
 0x174   :  { %v334_v62 = vpop.permute.xlu0 %333 }
 0x175   :  { %v336_v63 = vmul.f32 %v6979_v61, %v334_v62 }
 0x177   :  { %338 = vrot.lane.b32.xlu1 %v336_v63, %s7227_s28 }
 0x1e5   :  { %v363_v1 = vpop.permute.xlu1 %362 }
 0x1e6   :  { %v7453_v2 = vadd.f32 %v363_v1, %v355_v0 }
 0x1e8   :  { %6980 = vtanh.f32 %v7453_v2  ;;  %v647_v51 = vrot.slane %v7453_v2, 2 }
 0x1e9   :  { %v339_v6 = vpop.permute.xlu1 %338 }
 0x1ea   :  { %v7456_v7 = vadd.f32 %v339_v6, %v331_v5 }
 0x1ec   :  { %6982 = vtanh.f32 %v7456_v7  ;;  %v620_v53 = vrot.slane %v7456_v7, 6 }
 0x1f2   :  { %v6981_v8 = vpop.eup %6980 }
 0x1f3   :  { %368 = vrot.lane.b32.xlu0 %v6981_v8, %s7226_s3 }
 0x1f6   :  { %v6983_v9 = vpop.eup %6982 }
 0x1f7   :  { %344 = vrot.lane.b32.xlu1 %v6983_v9, %s7226_s3 }
 0x265   :  { %v369_v10 = vpop.permute.xlu0 %368 }
 0x266   :  { %v7461_v11 = vmul.f32 %v6977_v58, %v369_v10 }
 0x268   :  { %v533_v12 = vrot.slane %v7461_v11, 6 }
 0x269   :  { %v345_v13 = vpop.permute.xlu1 %344 }
 0x26a   :  { %v7464_v15 = vmul.f32 %v6979_v61, %v345_v13  ;;  %534 = vrot.lane.b32.xlu1 %v533_v12, %s7227_s28 }
 0x26c   :  { %455 = vrot.lane.b32.xlu0 %v7464_v15, %s7227_s28 }
 0x2dc   :  { %v535_v16 = vpop.permute.xlu1 %534 }
 0x2dd   :  { %6153 = vmatmul.mubr.msk.f32.vlgmr.msra.gmra.mrb[6].mxu0 %vm84_vm1, %v535_v16 }
 0x2de   :  { %v456_v17 = vpop.permute.xlu0 %455  ;;  %6694 = vmatpush3.bf16.msra.mxu0 %v7386_v23  ;;  %6174 = vmatprep.mubr.msk.f32.mxu0 %vm7225_vm0, %v7224_v4 }
 0x2df   :  { %6142 = vmatmul.mubr.msk.f32.vlgmr.msra.gmra.mrb[2].mxu1 %vm84_vm1, %v456_v17  ;;  %6695 = vmatprep.subr.bf16.mxu0 %v7223_v3 }
 0x2e0   :  { %6688 = vmatpush3.bf16.msra.mxu1 %v7362_v14  ;;  %6163 = vmatprep.mubr.msk.f32.mxu1 %vm7225_vm0, %v7224_v4 }
 0x2e1   :  { %6689 = vmatprep.subr.bf16.mxu1 %v7223_v3 }
 0x2e2   :  { %6697 = vmatpush3.bf16.msra.mxu0 %v7403_v27 }
 0x2e3   :  { %6704 = vmatprep.subr.bf16.mxu0 %v7223_v3 }
 0x2e4   :  { %6691 = vmatpush3.bf16.msra.mxu1 %v7374_v19 }
 0x2e5   :  { %6698 = vmatprep.subr.bf16.mxu1 %v7223_v3 }
 0x3b0   :  { %v604_v18 = vpop.f32.mrb[6].mxu0 }
 0x3b1   :  { %v609_v20 = vrot.slane %v604_v18, 4  ;;  %v6154_v21 = vpop.f32.mrb[7].mxu0 }
 0x3b2   :  { %v525_v22 = vpop.f32.mrb[2].mxu1 }
 0x3b3   :  { %v611_v24 = vadd.f32 %v609_v20, %v7445_v45  ;;  %v530_v25 = vrot.slane %v525_v22, 6  ;;  %v6143_v26 = vpop.f32.mrb[3].mxu1 }
 0x3b5   :  { %6984 = vtanh.f32 %v611_v24  ;;  %v532_v31 = vadd.f32 %v530_v25, %v7443_v44  ;;  %v5790_v35 = vmul.f32 -1.442695, %v611_v24 }
 0x3b7   :  { %6986 = vtanh.f32 %v532_v31  ;;  %v5789_v37 = vmul.f32 -1.442695, %v532_v31 }
 0x3b8   :  { %6988 = vpow2.f32 %v5790_v35 }
 0x3b9   :  { %6990 = vpow2.f32 %v5789_v37 }
 0x3bf   :  { %v6985_v32 = vpop.eup %6984 }
 0x3c0   :  { %651 = vrot.lane.b32.xlu1 %v6985_v32, %s7226_s3 }
 0x3c1   :  { %v6987_v34 = vpop.eup %6986 }
 0x3c2   :  { %624 = vrot.lane.b32.xlu0 %v6987_v34, %s7226_s3  ;;  %v6989_v38 = vpop.eup %6988 }
 0x3c3   :  { %v6991_v39 = vpop.eup %6990  ;;  %v642_v40 = vadd.f32 1.0, %v6989_v38 }
 0x3c4   :  { %v615_v42 = vadd.f32 1.0, %v6991_v39 }
 0x3c5   :  { %6992 = vrcp.f32 %v642_v40 }
 0x3c6   :  { %6994 = vrcp.f32 %v615_v42 }
 0x3cf   :  { %v6993_v43 = vpop.eup %6992 }
 0x3d0   :  { %v6995_v48 = vpop.eup %6994  ;;  %v649_v52 = vmul.f32 %v6993_v43, %v647_v51 }
 0x3d1   :  { %v622_v56 = vmul.f32 %v6995_v48, %v620_v53 }
 0x432   :  { %v652_v46 = vpop.permute.xlu1 %651 }
 0x433   :  { %v654_v47 = vmul.f32 %v6993_v43, %v652_v46 }
 0x434   :  { %v625_v49 = vpop.permute.xlu0 %624 }
 0x435   :  { %656 = vrot.lane.b32.xlu1 %v654_v47, %s7227_s28  ;;  %v627_v50 = vmul.f32 %v6995_v48, %v625_v49 }
 0x437   :  { %629 = vrot.lane.b32.xlu0 %v627_v50, %s7227_s28 }
 0x4a7   :  { %v657_v54 = vpop.permute.xlu1 %656 }
 0x4a8   :  { %v7491_v55 = vadd.f32 %v657_v54, %v649_v52 }
 0x4a9   :  { %v630_v57 = vpop.permute.xlu0 %629 }
 0x4aa   :  { %6996 = vtanh.f32 %v7491_v55  ;;  %v7494_v58 = vadd.f32 %v630_v57, %v622_v56  ;;  %v940_v40 = vrot.slane %v7491_v55, 2 }
 0x4ac   :  { %6998 = vtanh.f32 %v7494_v58 }
 0x4b4   :  { %v6997_v59 = vpop.eup %6996 }
 0x4b5   :  { %662 = vrot.lane.b32.xlu1 %v6997_v59, %s7226_s3 }
 0x4b6   :  { %v6999_v60 = vpop.eup %6998 }
 0x4b7   :  { %635 = vrot.lane.b32.xlu0 %v6999_v60, %s7226_s3 }
 0x527   :  { %v663_v61 = vpop.permute.xlu1 %662 }
 0x528   :  { %v7499_v62 = vmul.f32 %v6993_v43, %v663_v61  ;;  %v913_v43 = vrot.slane %v7494_v58, 6 }
 0x529   :  { %v636_v0 = vpop.permute.xlu0 %635 }
 0x52a   :  { %v826_v63 = vrot.slane %v7499_v62, 4  ;;  %v7502_v1 = vmul.f32 %v6995_v48, %v636_v0 }
 0x52c   :  { %827 = vrot.lane.b32.xlu1 %v826_v63, %s7227_s28  ;;  %v747_v2 = vrot.slane %v7502_v1, 2 }
 0x52e   :  { %748 = vrot.lane.b32.xlu0 %v747_v2, %s7227_s28 }
 0x59e   :  { %v828_v5 = vpop.permute.xlu1 %827 }
 0x59f   :  { %6175 = vmatmul.mubr.msk.f32.vlgmr.msra.gmra.mrb[8].mxu0 %vm84_vm1, %v828_v5 }
 0x5a0   :  { %6706 = vmatpush3.bf16.msra.mxu0 %v7386_v23  ;;  %6196 = vmatprep.mubr.msk.f32.mxu0 %vm7225_vm0, %v7224_v4  ;;  %v749_v6 = vpop.permute.xlu0 %748 }
 0x5a1   :  { %6707 = vmatprep.subr.bf16.mxu0 %v7223_v3  ;;  %6164 = vmatmul.mubr.msk.f32.vlgmr.msra.gmra.mrb[4].mxu1 %vm84_vm1, %v749_v6 }
 0x5a2   :  { %6700 = vmatpush3.bf16.msra.mxu1 %v7362_v14  ;;  %6185 = vmatprep.mubr.msk.f32.mxu1 %vm7225_vm0, %v7224_v4 }
 0x5a3   :  { %6701 = vmatprep.subr.bf16.mxu1 %v7223_v3 }
 0x5a4   :  { %6709 = vmatpush3.bf16.msra.mxu0 %v7403_v27 }
 0x5a5   :  { %6716 = vmatprep.subr.bf16.mxu0 %v7223_v3 }
 0x5a6   :  { %6703 = vmatpush3.bf16.msra.mxu1 %v7374_v19 }
 0x5a7   :  { %6710 = vmatprep.subr.bf16.mxu1 %v7223_v3 }
 0x672   :  { %v897_v7 = vpop.f32.mrb[8].mxu0 }
 0x673   :  { %v902_v8 = vrot.slane %v897_v7, 6  ;;  %v6176_v9 = vpop.f32.mrb[9].mxu0 }
 0x674   :  { %v818_v12 = vpop.f32.mrb[4].mxu1 }
 0x675   :  { %v904_v10 = vadd.f32 %v902_v8, %v7445_v45  ;;  %v823_v13 = vrot.slane %v818_v12, 4  ;;  %v6165_v16 = vpop.f32.mrb[5].mxu1 }
 0x677   :  { %7000 = vtanh.f32 %v904_v10  ;;  %v825_v17 = vadd.f32 %v823_v13, %v7443_v44  ;;  %v5794_v21 = vmul.f32 -1.442695, %v904_v10 }
 0x679   :  { %7002 = vtanh.f32 %v825_v17  ;;  %v5793_v22 = vmul.f32 -1.442695, %v825_v17 }
 0x67a   :  { %7004 = vpow2.f32 %v5794_v21 }
 0x67b   :  { %7006 = vpow2.f32 %v5793_v22 }
 0x681   :  { %v7001_v18 = vpop.eup %7000 }
 0x682   :  { %944 = vrot.lane.b32.xlu1 %v7001_v18, %s7226_s3 }
 0x683   :  { %v7003_v20 = vpop.eup %7002 }
 0x684   :  { %917 = vrot.lane.b32.xlu0 %v7003_v20, %s7226_s3  ;;  %v7005_v24 = vpop.eup %7004 }
 0x685   :  { %v7007_v25 = vpop.eup %7006  ;;  %v935_v26 = vadd.f32 1.0, %v7005_v24 }
 0x686   :  { %v908_v31 = vadd.f32 1.0, %v7007_v25 }
 0x687   :  { %7008 = vrcp.f32 %v935_v26 }
 0x688   :  { %7010 = vrcp.f32 %v908_v31 }
 0x691   :  { %v7009_v32 = vpop.eup %7008 }
 0x692   :  { %v7011_v37 = vpop.eup %7010  ;;  %v942_v42 = vmul.f32 %v7009_v32, %v940_v40 }
 0x693   :  { %v915_v48 = vmul.f32 %v7011_v37, %v913_v43 }
 0x6f4   :  { %v945_v34 = vpop.permute.xlu1 %944 }
 0x6f5   :  { %v947_v35 = vmul.f32 %v7009_v32, %v945_v34 }
 0x6f6   :  { %v918_v38 = vpop.permute.xlu0 %917 }
 0x6f7   :  { %949 = vrot.lane.b32.xlu1 %v947_v35, %s7227_s28  ;;  %v920_v39 = vmul.f32 %v7011_v37, %v918_v38 }
 0x6f9   :  { %922 = vrot.lane.b32.xlu0 %v920_v39, %s7227_s28 }
 0x769   :  { %v950_v46 = vpop.permute.xlu1 %949 }
 0x76a   :  { %v7529_v47 = vadd.f32 %v950_v46, %v942_v42 }
 0x76b   :  { %v923_v49 = vpop.permute.xlu0 %922 }
 0x76c   :  { %7012 = vtanh.f32 %v7529_v47  ;;  %v7532_v50 = vadd.f32 %v923_v49, %v915_v48  ;;  %v1230_v25 = vrot.slane %v7529_v47, 2 }
 0x76e   :  { %7014 = vtanh.f32 %v7532_v50  ;;  %v1203_v34 = vrot.slane %v7532_v50, 6 }
 0x776   :  { %v7013_v51 = vpop.eup %7012 }
 0x777   :  { %955 = vrot.lane.b32.xlu1 %v7013_v51, %s7226_s3 }
 0x778   :  { %v7015_v52 = vpop.eup %7014 }
 0x779   :  { %928 = vrot.lane.b32.xlu0 %v7015_v52, %s7226_s3 }
 0x7e9   :  { %v956_v53 = vpop.permute.xlu1 %955 }
 0x7ea   :  { %v7537_v54 = vmul.f32 %v7009_v32, %v956_v53 }
 0x7eb   :  { %v929_v56 = vpop.permute.xlu0 %928 }
 0x7ec   :  { %v1119_v55 = vrot.slane %v7537_v54, 2  ;;  %v7540_v57 = vmul.f32 %v7011_v37, %v929_v56 }
 0x7ee   :  { %1120 = vrot.lane.b32.xlu1 %v1119_v55, %s7227_s28  ;;  %v1040_v58 = vrot.slane %v7540_v57, 4 }
 0x7f0   :  { %1041 = vrot.lane.b32.xlu0 %v1040_v58, %s7227_s28 }
 0x860   :  { %v1121_v59 = vpop.permute.xlu1 %1120 }
 0x861   :  { %6197 = vmatmul.mubr.msk.f32.vlgmr.msra.gmra.mrb[10].mxu0 %vm84_vm1, %v1121_v59 }
 0x862   :  { %6718 = vmatpush3.bf16.msra.mxu0 %v7386_v23  ;;  %6218 = vmatprep.mubr.msk.f32.mxu0 %vm7225_vm0, %v7224_v4  ;;  %v1042_v60 = vpop.permute.xlu0 %1041 }
 0x863   :  { %6719 = vmatprep.subr.bf16.mxu0 %v7223_v3  ;;  %6186 = vmatmul.mubr.msk.f32.vlgmr.msra.gmra.mrb[6].mxu1 %vm84_vm1, %v1042_v60 }
 0x864   :  { %6712 = vmatpush3.bf16.msra.mxu1 %v7362_v14  ;;  %6207 = vmatprep.mubr.msk.f32.mxu1 %vm7225_vm0, %v7224_v4 }
 0x865   :  { %6713 = vmatprep.subr.bf16.mxu1 %v7223_v3 }
 0x866   :  { %6721 = vmatpush3.bf16.msra.mxu0 %v7403_v27 }
 0x867   :  { %6728 = vmatprep.subr.bf16.mxu0 %v7223_v3 }
 0x868   :  { %6715 = vmatpush3.bf16.msra.mxu1 %v7374_v19 }
 0x869   :  { %6722 = vmatprep.subr.bf16.mxu1 %v7223_v3 }
 0x934   :  { %v1190_v61 = vpop.f32.mrb[10].mxu0 }
 0x935   :  { %v1194_v63 = vadd.f32 %v1190_v61, %v7445_v45  ;;  %v6198_v0 = vpop.f32.mrb[11].mxu0 }
 0x936   :  { %v1111_v2 = vpop.f32.mrb[6].mxu1 }
 0x937   :  { %7016 = vtanh.f32 %v1194_v63  ;;  %v1116_v5 = vrot.slane %v1111_v2, 2  ;;  %v6187_v6 = vpop.f32.mrb[7].mxu1  ;;  %v5798_v10 = vmul.f32 -1.442695, %v1194_v63 }
 0x939   :  { %v1118_v7 = vadd.f32 %v1116_v5, %v7443_v44 }
 0x93b   :  { %7018 = vtanh.f32 %v1118_v7  ;;  %v5797_v12 = vmul.f32 -1.442695, %v1118_v7 }
 0x93c   :  { %7020 = vpow2.f32 %v5798_v10 }
 0x93d   :  { %7022 = vpow2.f32 %v5797_v12 }
 0x941   :  { %v7017_v8 = vpop.eup %7016 }
 0x942   :  { %1234 = vrot.lane.b32.xlu0 %v7017_v8, %s7226_s3 }
 0x945   :  { %v7019_v9 = vpop.eup %7018 }
 0x946   :  { %1207 = vrot.lane.b32.xlu1 %v7019_v9, %s7226_s3  ;;  %v7021_v13 = vpop.eup %7020 }
 0x947   :  { %v1225_v45 = vadd.f32 1.0, %v7021_v13  ;;  %v7023_v16 = vpop.eup %7022 }
 0x948   :  { %v1198_v17 = vadd.f32 1.0, %v7023_v16 }
 0x949   :  { %7024 = vrcp.f32 %v1225_v45 }
 0x94a   :  { %7026 = vrcp.f32 %v1198_v17 }
 0x953   :  { %v7025_v18 = vpop.eup %7024 }
 0x954   :  { %v7027_v21 = vpop.eup %7026  ;;  %v1232_v26 = vmul.f32 %v7025_v18, %v1230_v25 }
 0x955   :  { %v1205_v35 = vmul.f32 %v7027_v21, %v1203_v34 }
 0x9b4   :  { %v1235_v20 = vpop.permute.xlu0 %1234 }
 0x9b5   :  { %v1237_v44 = vmul.f32 %v7025_v18, %v1235_v20 }
 0x9b7   :  { %1239 = vrot.lane.b32.xlu0 %v1237_v44, %s7227_s28 }
 0x9b8   :  { %v1208_v22 = vpop.permute.xlu1 %1207 }
 0x9b9   :  { %v1210_v24 = vmul.f32 %v7027_v21, %v1208_v22 }
 0x9bb   :  { %1212 = vrot.lane.b32.xlu1 %v1210_v24, %s7227_s28 }
 0xa29   :  { %v1240_v31 = vpop.permute.xlu0 %1239 }
 0xa2a   :  { %v7566_v32 = vadd.f32 %v1240_v31, %v1232_v26 }
 0xa2c   :  { %7028 = vtanh.f32 %v7566_v32  ;;  %v1519_v16 = vrot.slane %v7566_v32, 2 }
 0xa2d   :  { %v1213_v37 = vpop.permute.xlu1 %1212 }
 0xa2e   :  { %v7570_v38 = vadd.f32 %v1213_v37, %v1205_v35 }
 0xa30   :  { %7030 = vtanh.f32 %v7570_v38  ;;  %v1492_v44 = vrot.slane %v7570_v38, 6 }
 0xa36   :  { %v7029_v39 = vpop.eup %7028 }
 0xa37   :  { %1245 = vrot.lane.b32.xlu0 %v7029_v39, %s7226_s3 }
 0xa3a   :  { %v7031_v40 = vpop.eup %7030 }
 0xa3b   :  { %1218 = vrot.lane.b32.xlu1 %v7031_v40, %s7226_s3 }
 0xaa9   :  { %v1246_v42 = vpop.permute.xlu0 %1245 }
 0xaaa   :  { %v7575_v43 = vmul.f32 %v7025_v18, %v1246_v42 }
 0xaac   :  { %1406 = vrot.lane.b32.xlu0 %v7575_v43, %s7227_s28 }
 0xaad   :  { %v1219_v46 = vpop.permute.xlu1 %1218 }
 0xaae   :  { %v7579_v47 = vmul.f32 %v7027_v21, %v1219_v46 }
 0xab0   :  { %v1330_v48 = vrot.slane %v7579_v47, 6 }
 0xab2   :  { %1331 = vrot.lane.b32.xlu1 %v1330_v48, %s7227_s28 }
 0xb1e   :  { %v1407_v49 = vpop.permute.xlu0 %1406 }
 0xb1f   :  { %6219 = vmatmul.mubr.msk.f32.vlgmr.msra.gmra.mrb[12].mxu0 %vm84_vm1, %v1407_v49 }
 0xb20   :  { %6730 = vmatpush3.bf16.msra.mxu0 %v7386_v23  ;;  %6240 = vmatprep.mubr.msk.f32.mxu0 %vm7225_vm0, %v7224_v4 }
 0xb21   :  { %6731 = vmatprep.subr.bf16.mxu0 %v7223_v3 }
 0xb24   :  { %6733 = vmatpush3.bf16.msra.mxu0 %v7403_v27  ;;  %v1332_v50 = vpop.permute.xlu1 %1331 }
 0xb25   :  { %6740 = vmatprep.subr.bf16.mxu0 %v7223_v3  ;;  %6208 = vmatmul.mubr.msk.f32.vlgmr.msra.gmra.mrb[8].mxu1 %vm84_vm1, %v1332_v50 }
 0xb26   :  { %6724 = vmatpush3.bf16.msra.mxu1 %v7362_v14  ;;  %6229 = vmatprep.mubr.msk.f32.mxu1 %vm7225_vm0, %v7224_v4 }
 0xb27   :  { %6725 = vmatprep.subr.bf16.mxu1 %v7223_v3 }
 0xb2a   :  { %6727 = vmatpush3.bf16.msra.mxu1 %v7374_v19 }
 0xb2b   :  { %6734 = vmatprep.subr.bf16.mxu1 %v7223_v3 }
 0xbf2   :  { %v1476_v51 = vpop.f32.mrb[12].mxu0 }
 0xbf3   :  { %v1481_v52 = vrot.slane %v1476_v51, 2  ;;  %v6220_v53 = vpop.f32.mrb[13].mxu0 }
 0xbf5   :  { %v1483_v55 = vadd.f32 %v1481_v52, %v7438_v36 }
 0xbf7   :  { %7032 = vtanh.f32 %v1483_v55  ;;  %v5802_v63 = vmul.f32 -1.442695, %v1483_v55 }
 0xbf8   :  { %v1401_v56 = vpop.f32.mrb[8].mxu1 }
 0xbf9   :  { %v1405_v58 = vadd.f32 %v1401_v56, %v7441_v41  ;;  %v6209_v59 = vpop.f32.mrb[9].mxu1 }
 0xbfb   :  { %7034 = vtanh.f32 %v1405_v58  ;;  %v5801_v0 = vmul.f32 -1.442695, %v1405_v58 }
 0xbfc   :  { %7036 = vpow2.f32 %v5802_v63 }
 0xbfd   :  { %7038 = vpow2.f32 %v5801_v0 }
 0xc01   :  { %v7033_v60 = vpop.eup %7032 }
 0xc02   :  { %1523 = vrot.lane.b32.xlu0 %v7033_v60, %s7226_s3 }
 0xc05   :  { %v7035_v61 = vpop.eup %7034 }
 0xc06   :  { %1496 = vrot.lane.b32.xlu1 %v7035_v61, %s7226_s3  ;;  %v7037_v2 = vpop.eup %7036 }
 0xc07   :  { %v1514_v5 = vadd.f32 1.0, %v7037_v2  ;;  %v7039_v6 = vpop.eup %7038 }
 0xc08   :  { %v1487_v7 = vadd.f32 1.0, %v7039_v6 }
 0xc09   :  { %7040 = vrcp.f32 %v1514_v5 }
 0xc0a   :  { %7042 = vrcp.f32 %v1487_v7 }
 0xc13   :  { %v7041_v8 = vpop.eup %7040 }
 0xc14   :  { %v7043_v12 = vpop.eup %7042  ;;  %v1521_v17 = vmul.f32 %v7041_v8, %v1519_v16 }
 0xc15   :  { %v1494_v21 = vmul.f32 %v7043_v12, %v1492_v44 }
 0xc74   :  { %v1524_v9 = vpop.permute.xlu0 %1523 }
 0xc75   :  { %v1526_v10 = vmul.f32 %v7041_v8, %v1524_v9 }
 0xc77   :  { %1528 = vrot.lane.b32.xlu0 %v1526_v10, %s7227_s28 }
 0xc78   :  { %v1497_v13 = vpop.permute.xlu1 %1496 }
 0xc79   :  { %v1499_v45 = vmul.f32 %v7043_v12, %v1497_v13 }
 0xc7b   :  { %1501 = vrot.lane.b32.xlu1 %v1499_v45, %s7227_s28 }
 0xce9   :  { %v1529_v18 = vpop.permute.xlu0 %1528 }
 0xcea   :  { %v7604_v20 = vadd.f32 %v1529_v18, %v1521_v17 }
 0xcec   :  { %7044 = vtanh.f32 %v7604_v20  ;;  %v1811_v9 = vrot.slane %v7604_v20, 2 }
 0xced   :  { %v1502_v22 = vpop.permute.xlu1 %1501 }
 0xcee   :  { %v7608_v24 = vadd.f32 %v1502_v22, %v1494_v21 }
 0xcf0   :  { %7046 = vtanh.f32 %v7608_v24 }
 0xcf6   :  { %v7045_v25 = vpop.eup %7044 }
 0xcf7   :  { %1534 = vrot.lane.b32.xlu0 %v7045_v25, %s7226_s3 }
 0xcfa   :  { %v7047_v26 = vpop.eup %7046 }
 0xcfb   :  { %1507 = vrot.lane.b32.xlu1 %v7047_v26, %s7226_s3 }
 0xd69   :  { %v1535_v31 = vpop.permute.xlu0 %1534 }
 0xd6a   :  { %v7613_v32 = vmul.f32 %v7041_v8, %v1535_v31 }
 0xd6c   :  { %v1697_v34 = vrot.slane %v7613_v32, 6 }
 0xd6d   :  { %v1508_v35 = vpop.permute.xlu1 %1507 }
 0xd6e   :  { %1698 = vrot.lane.b32.xlu1 %v1697_v34, %s7227_s28  ;;  %v7617_v37 = vmul.f32 %v7043_v12, %v1508_v35  ;;  %v1784_v12 = vrot.slane %v7608_v24, 6 }
 0xd70   :  { %1619 = vrot.lane.b32.xlu0 %v7617_v37, %s7227_s28 }
 0xde0   :  { %v1699_v38 = vpop.permute.xlu1 %1698 }
 0xde1   :  { %6241 = vmatmul.mubr.msk.f32.vlgmr.msra.gmra.mrb[14].mxu0 %vm84_vm1, %v1699_v38 }
 0xde2   :  { %6742 = vmatpush3.bf16.msra.mxu0 %v7386_v23  ;;  %6262 = vmatprep.mubr.msk.f32.mxu0 %vm7225_vm0, %v7224_v4  ;;  %v1620_v39 = vpop.permute.xlu0 %1619 }
 0xde3   :  { %6743 = vmatprep.subr.bf16.mxu0 %v7223_v3  ;;  %6230 = vmatmul.mubr.msk.f32.vlgmr.msra.gmra.mrb[10].mxu1 %vm84_vm1, %v1620_v39 }
 0xde4   :  { %6736 = vmatpush3.bf16.msra.mxu1 %v7362_v14  ;;  %6251 = vmatprep.mubr.msk.f32.mxu1 %vm7225_vm0, %v7224_v4 }
 0xde5   :  { %6737 = vmatprep.subr.bf16.mxu1 %v7223_v3 }
 0xde6   :  { %6745 = vmatpush3.bf16.msra.mxu0 %v7403_v27 }
 0xde7   :  { %6752 = vmatprep.subr.bf16.mxu0 %v7223_v3 }
 0xde8   :  { %6739 = vmatpush3.bf16.msra.mxu1 %v7374_v19 }
 0xde9   :  { %6746 = vmatprep.subr.bf16.mxu1 %v7223_v3 }
 0xeb4   :  { %v1768_v40 = vpop.f32.mrb[14].mxu0 }
 0xeb5   :  { %v1773_v42 = vrot.slane %v1768_v40, 4  ;;  %v6242_v46 = vpop.f32.mrb[15].mxu0 }
 0xeb6   :  { %v1689_v49 = vpop.f32.mrb[10].mxu1 }
 0xeb7   :  { %v1775_v48 = vadd.f32 %v1773_v42, %v7438_v36  ;;  %v1694_v50 = vrot.slane %v1689_v49, 6  ;;  %v6231_v51 = vpop.f32.mrb[11].mxu1 }
 0xeb9   :  { %7048 = vtanh.f32 %v1775_v48  ;;  %v1696_v52 = vadd.f32 %v1694_v50, %v7441_v41  ;;  %v5806_v56 = vmul.f32 -1.442695, %v1775_v48 }
 0xebb   :  { %7050 = vtanh.f32 %v1696_v52  ;;  %v5805_v58 = vmul.f32 -1.442695, %v1696_v52 }
 0xebc   :  { %7052 = vpow2.f32 %v5806_v56 }
 0xebd   :  { %7054 = vpow2.f32 %v5805_v58 }
 0xec3   :  { %v7049_v53 = vpop.eup %7048 }
 0xec4   :  { %1815 = vrot.lane.b32.xlu1 %v7049_v53, %s7226_s3 }
 0xec5   :  { %v7051_v55 = vpop.eup %7050 }
 0xec6   :  { %1788 = vrot.lane.b32.xlu0 %v7051_v55, %s7226_s3  ;;  %v7053_v59 = vpop.eup %7052 }
 0xec7   :  { %v7055_v60 = vpop.eup %7054  ;;  %v1806_v61 = vadd.f32 1.0, %v7053_v59 }
 0xec8   :  { %v1779_v63 = vadd.f32 1.0, %v7055_v60 }
 0xec9   :  { %7056 = vrcp.f32 %v1806_v61 }
 0xeca   :  { %7058 = vrcp.f32 %v1779_v63 }
 0xed3   :  { %v7057_v0 = vpop.eup %7056 }
 0xed4   :  { %v7059_v6 = vpop.eup %7058  ;;  %v1813_v10 = vmul.f32 %v7057_v0, %v1811_v9 }
 0xed5   :  { %v1786_v16 = vmul.f32 %v7059_v6, %v1784_v12 }
 0xf36   :  { %v1816_v2 = vpop.permute.xlu1 %1815 }
 0xf37   :  { %v1818_v5 = vmul.f32 %v7057_v0, %v1816_v2 }
 0xf38   :  { %v1789_v7 = vpop.permute.xlu0 %1788 }
 0xf39   :  { %1820 = vrot.lane.b32.xlu1 %v1818_v5, %s7227_s28  ;;  %v1791_v8 = vmul.f32 %v7059_v6, %v1789_v7 }
 0xf3b   :  { %1793 = vrot.lane.b32.xlu0 %v1791_v8, %s7227_s28 }
 0xfab   :  { %v1821_v13 = vpop.permute.xlu1 %1820 }
 0xfac   :  { %v7643_v45 = vadd.f32 %v1821_v13, %v1813_v10 }
 0xfad   :  { %v1794_v17 = vpop.permute.xlu0 %1793 }
 0xfae   :  { %7060 = vtanh.f32 %v7643_v45  ;;  %v7646_v18 = vadd.f32 %v1794_v17, %v1786_v16 }
 0xfb0   :  { %7062 = vtanh.f32 %v7646_v18  ;;  %v2077_v5 = vrot.slane %v7646_v18, 6 }
 0xfb8   :  { %v7061_v44 = vpop.eup %7060 }
 0xfb9   :  { %1826 = vrot.lane.b32.xlu1 %v7061_v44, %s7226_s3 }
 0xfba   :  { %v7063_v21 = vpop.eup %7062 }
 0xfbb   :  { %1799 = vrot.lane.b32.xlu0 %v7063_v21, %s7226_s3 }
0x102b   :  { %v1827_v20 = vpop.permute.xlu1 %1826 }
0x102c   :  { %v7651_v22 = vmul.f32 %v7057_v0, %v1827_v20  ;;  %v2104_v0 = vrot.slane %v7643_v45, 2 }
0x102d   :  { %v1800_v25 = vpop.permute.xlu0 %1799 }
0x102e   :  { %v1990_v24 = vrot.slane %v7651_v22, 4  ;;  %v7654_v26 = vmul.f32 %v7059_v6, %v1800_v25 }
0x1030   :  { %1991 = vrot.lane.b32.xlu1 %v1990_v24, %s7227_s28  ;;  %v1911_v31 = vrot.slane %v7654_v26, 2 }
0x1032   :  { %1912 = vrot.lane.b32.xlu0 %v1911_v31, %s7227_s28 }
0x10a2   :  { %v1992_v34 = vpop.permute.xlu1 %1991 }
0x10a3   :  { %6263 = vmatmul.mubr.msk.f32.vlgmr.msra.gmra.mrb[16].mxu0 %vm84_vm1, %v1992_v34 }
0x10a4   :  { %6754 = vmatpush3.bf16.msra.mxu0 %v7386_v23  ;;  %6284 = vmatprep.mubr.msk.f32.mxu0 %vm7225_vm0, %v7224_v4  ;;  %v1913_v35 = vpop.permute.xlu0 %1912 }
0x10a5   :  { %6755 = vmatprep.subr.bf16.mxu0 %v7223_v3  ;;  %6252 = vmatmul.mubr.msk.f32.vlgmr.msra.gmra.mrb[12].mxu1 %vm84_vm1, %v1913_v35 }
0x10a6   :  { %6748 = vmatpush3.bf16.msra.mxu1 %v7362_v14  ;;  %6273 = vmatprep.mubr.msk.f32.mxu1 %vm7225_vm0, %v7224_v4 }
0x10a7   :  { %6749 = vmatprep.subr.bf16.mxu1 %v7223_v3 }
0x10a8   :  { %6757 = vmatpush3.bf16.msra.mxu0 %v7403_v27 }
0x10a9   :  { %6770 = vmatprep.subr.bf16.mxu0 %v7223_v3 }
0x10aa   :  { %6751 = vmatpush3.bf16.msra.mxu1 %v7374_v19 }
0x10ab   :  { %6758 = vmatprep.subr.bf16.mxu1 %v7223_v3 }
0x1176   :  { %v2061_v23 = vpop.f32.mrb[16].mxu0 }
0x1177   :  { %v2066_v38 = vrot.slane %v2061_v23, 6  ;;  %v6264_v39 = vpop.f32.mrb[17].mxu0 }
0x1178   :  { %v1982_v42 = vpop.f32.mrb[12].mxu1 }
0x1179   :  { %v2068_v40 = vadd.f32 %v2066_v38, %v7438_v36  ;;  %v1987_v14 = vrot.slane %v1982_v42, 4  ;;  %v6253_v46 = vpop.f32.mrb[13].mxu1 }
0x117b   :  { %7064 = vtanh.f32 %v2068_v40  ;;  %v1989_v48 = vadd.f32 %v1987_v14, %v7441_v41  ;;  %v5810_v19 = vmul.f32 -1.442695, %v2068_v40 }
0x117d   :  { %7066 = vtanh.f32 %v1989_v48  ;;  %v5809_v50 = vmul.f32 -1.442695, %v1989_v48 }
0x117e   :  { %7068 = vpow2.f32 %v5810_v19 }
0x117f   :  { %7070 = vpow2.f32 %v5809_v50 }
0x1185   :  { %v7065_v27 = vpop.eup %7064 }
0x1186   :  { %2108 = vrot.lane.b32.xlu1 %v7065_v27, %s7226_s3 }
0x1187   :  { %v7067_v49 = vpop.eup %7066 }
0x1188   :  { %2081 = vrot.lane.b32.xlu0 %v7067_v49, %s7226_s3  ;;  %v7069_v51 = vpop.eup %7068 }
0x1189   :  { %v7071_v52 = vpop.eup %7070  ;;  %v2099_v53 = vadd.f32 1.0, %v7069_v51 }
0x118a   :  { %v2072_v55 = vadd.f32 1.0, %v7071_v52 }
0x118b   :  { %7072 = vrcp.f32 %v2099_v53 }
0x118c   :  { %7074 = vrcp.f32 %v2072_v55 }
0x1195   :  { %v7073_v56 = vpop.eup %7072 }
0x1196   :  { %v7075_v60 = vpop.eup %7074  ;;  %v2106_v2 = vmul.f32 %v7073_v56, %v2104_v0 }
0x1197   :  { %v2079_v8 = vmul.f32 %v7075_v60, %v2077_v5 }
0x11f8   :  { %v2109_v58 = vpop.permute.xlu1 %2108 }
0x11f9   :  { %v2111_v59 = vmul.f32 %v7073_v56, %v2109_v58 }
0x11fa   :  { %v2082_v61 = vpop.permute.xlu0 %2081 }
0x11fb   :  { %2113 = vrot.lane.b32.xlu1 %v2111_v59, %s7227_s28  ;;  %v2084_v63 = vmul.f32 %v7075_v60, %v2082_v61 }
0x11fd   :  { %2086 = vrot.lane.b32.xlu0 %v2084_v63, %s7227_s28 }
0x126d   :  { %v2114_v6 = vpop.permute.xlu1 %2113 }
0x126e   :  { %v2116_v7 = vadd.f32 %v2114_v6, %v2106_v2  ;;  %v2512_v6 = vld [vmem:[%s8611_s6] sm:$0xff] }
0x126f   :  { %v2087_v9 = vpop.permute.xlu0 %2086 }
0x1270   :  { %7076 = vtanh.f32 %v2116_v7  ;;  %v2089_v10 = vadd.f32 %v2087_v9, %v2079_v8  ;;  %v2394_v55 = vrot.slane %v2116_v7, 2  ;;  %v2513_v7 = vld [vmem:[%s8611_s6 + $0x8] sm:$0xff]  ;;  %v2514_v8 = vld [vmem:[%s8611_s6 + $0x10] sm:$0xff] }
0x1271   :  { %v6759_v9 = vpack.c.bf16 %v2513_v7, %v2512_v6 }
0x1272   :  { %7078 = vtanh.f32 %v2089_v10 }
0x127a   :  { %v7077_v12 = vpop.eup %7076 }
0x127b   :  { %2119 = vrot.lane.b32.xlu1 %v7077_v12, %s7226_s3  ;;  %v2603_v12 = vld [vmem:[%s8612_s8] sm:$0xff] }
0x127c   :  { %v7079_v13 = vpop.eup %7078 }
0x127d   :  { %2092 = vrot.lane.b32.xlu0 %v7079_v13, %s7226_s3  ;;  %v2604_v13 = vld [vmem:[%s8612_s8 + $0x8] sm:$0xff] }
0x12ed   :  { %v2120_v16 = vpop.permute.xlu1 %2119 }
0x12ee   :  { %v7683_v17 = vmul.f32 %v7073_v56, %v2120_v16  ;;  %v6771_v16 = vpack.c.bf16 %v2604_v13, %v2603_v12 }
0x12ef   :  { %v2093_v44 = vpop.permute.xlu0 %2092 }
0x12f0   :  { %v2283_v45 = vrot.slane %v7683_v17, 2  ;;  %v7686_v18 = vmul.f32 %v7075_v60, %v2093_v44  ;;  %v2367_v60 = vrot.slane %v2089_v10, 6  ;;  %v2515_v10 = vld [vmem:[%s8611_s6 + $0x18] sm:$0xff] }
0x12f1   :  { %v6762_v44 = vpack.c.bf16 %v2515_v10, %v2514_v8 }
0x12f2   :  { %2284 = vrot.lane.b32.xlu1 %v2283_v45, %s7227_s28  ;;  %v2204_v21 = vrot.slane %v7686_v18, 4  ;;  %v2605_v45 = vld [vmem:[%s8612_s8 + $0x10] sm:$0xff] }
0x12f4   :  { %2205 = vrot.lane.b32.xlu0 %v2204_v21, %s7227_s28  ;;  %v2606_v21 = vld [vmem:[%s8612_s8 + $0x18] sm:$0xff] }
0x1364   :  { %v2285_v20 = vpop.permute.xlu1 %2284 }
0x1365   :  { %6285 = vmatmul.mubr.msk.f32.vlgmr.msra.gmra.mrb[18].mxu0 %vm84_vm1, %v2285_v20  ;;  %v2516_v20 = vld [vmem:[%s8611_s6 + $0x20] sm:$0xff] }
0x1366   :  { %6322 = vmatprep.mubr.msk.f32.mxu0 %vm7225_vm0, %v7224_v4  ;;  %v2206_v24 = vpop.permute.xlu0 %2205  ;;  %6772 = vmatpush3.bf16.msra.mxu0 %v6771_v16 }
0x1367   :  { %6274 = vmatmul.mubr.msk.f32.vlgmr.msra.gmra.mrb[14].mxu1 %vm84_vm1, %v2206_v24  ;;  %v2517_v24 = vld [vmem:[%s8611_s6 + $0x28] sm:$0xff]  ;;  %6773 = vmatprep.subr.bf16.mxu0 %v7223_v3 }
0x1368   :  { %6303 = vmatprep.mubr.msk.f32.mxu1 %vm7225_vm0, %v7224_v4  ;;  %6760 = vmatpush3.bf16.msra.mxu1 %v6759_v9 }
0x1369   :  { %6761 = vmatprep.subr.bf16.mxu1 %v7223_v3 }
0x136c   :  { %6763 = vmatpush3.bf16.msra.mxu1 %v6762_v44 }
0x136d   :  { %6764 = vmatprep.subr.bf16.mxu1 %v7223_v3 }
0x1438   :  { %v2354_v25 = vpop.f32.mrb[18].mxu0 }
0x1439   :  { %v2358_v31 = vadd.f32 %v2354_v25, %v7438_v36  ;;  %v6286_v34 = vpop.f32.mrb[19].mxu0  ;;  %v6774_v25 = vpack.c.bf16 %v2606_v21, %v2605_v45 }
0x143a   :  { %v2275_v35 = vpop.f32.mrb[14].mxu1  ;;  %v7228_v34 = vmov 1966171168  }
0x143b   :  { %7080 = vtanh.f32 %v2358_v31  ;;  %v2280_v23 = vrot.slane %v2275_v35, 2  ;;  %v6275_v38 = vpop.f32.mrb[15].mxu1  ;;  %v5814_v14 = vmul.f32 -1.442695, %v2358_v31  ;;  %v6765_v31 = vpack.c.bf16 %v2517_v24, %v2516_v20  ;;  %6775 = vmatpush3.bf16.msra.mxu0 %v6774_v25 }
0x143c   :  { %6776 = vmatprep.subr.bf16.mxu0 %v7223_v3  ;;  %v374_v35 = vunpack.c.l.s4 %v7228_v34  ;;  %v2518_v38 = vld [vmem:[%s8611_s6 + $0x30] sm:$0xff] }
0x143d   :  { %v2282_v39 = vadd.f32 %v2280_v23, %v7441_v41  ;;  %6766 = vmatpush3.bf16.msra.mxu1 %v6765_v31 }
0x143e   :  { %6767 = vmatprep.subr.bf16.mxu1 %v7223_v3  ;;  %v375_v23 = vunpack.c.0.s8 %v374_v35 }
0x143f   :  { %7082 = vtanh.f32 %v2282_v39  ;;  %v5813_v46 = vmul.f32 -1.442695, %v2282_v39  ;;  %v2519_v39 = vld [vmem:[%s8611_s6 + $0x38] sm:$0xff] }
0x1440   :  { %7084 = vpow2.f32 %v5814_v14  ;;  %v2608_v14 = vld [vmem:[%s8612_s8 + $0x28] sm:$0xff] }
0x1441   :  { %7086 = vpow2.f32 %v5813_v46 }
0x1445   :  { %v7081_v40 = vpop.eup %7080 }
0x1446   :  { %2398 = vrot.lane.b32.xlu0 %v7081_v40, %s7226_s3  ;;  %v2607_v40 = vld [vmem:[%s8612_s8 + $0x20] sm:$0xff] }
0x1447   :  { %v6777_v46 = vpack.c.bf16 %v2608_v14, %v2607_v40 }
0x1449   :  { %v7083_v42 = vpop.eup %7082  ;;  %6778 = vmatpush3.bf16.msra.mxu0 %v6777_v46 }
0x144a   :  { %2371 = vrot.lane.b32.xlu1 %v7083_v42, %s7226_s3  ;;  %v7085_v48 = vpop.eup %7084  ;;  %v6768_v42 = vpack.c.bf16 %v2519_v39, %v2518_v38  ;;  %6779 = vmatprep.subr.bf16.mxu0 %v7223_v3 }
0x144b   :  { %v2389_v36 = vadd.f32 1.0, %v7085_v48  ;;  %v7087_v27 = vpop.eup %7086  ;;  %v7767_v48 = vsub.s32 %v375_v23, %v7426_v29 }
0x144c   :  { %v2362_v49 = vadd.f32 1.0, %v7087_v27  ;;  %6769 = vmatpush3.bf16.msra.mxu1 %v6768_v42  ;;  %v2610_v27 = vld [vmem:[%s8612_s8 + $0x38] sm:$0xff] }
0x144d   :  { %7088 = vrcp.f32 %v2389_v36  ;;  %v2609_v36 = vld [vmem:[%s8612_s8 + $0x30] sm:$0xff]  ;;  %s7229_s8 = smov 96  }
0x144e   :  { %7090 = vrcp.f32 %v2362_v49  ;;  %v6780_v49 = vpack.c.bf16 %v2610_v27, %v2609_v36 }
0x1450   :  { %6781 = vmatpush3.bf16.msra.mxu0 %v6780_v49 }
0x1457   :  { %v7701_v19 = vpop.eup %7088 }
0x1458   :  { %v7705_v51 = vpop.eup %7090  ;;  %v2396_v56 = vmul.f32 %v7701_v19, %v2394_v55 }
0x1459   :  { %v2369_v61 = vmul.f32 %v7705_v51, %v2367_v60 }
0x14b8   :  { %v2399_v41 = vpop.permute.xlu0 %2398 }
0x14b9   :  { %v2401_v50 = vmul.f32 %v7701_v19, %v2399_v41  ;;  %v413_v41 = vcombine.high %v7461_v11, %v7461_v11  ;;  %v960_v11 = vcombine.high %v7540_v57, %v7540_v57 }
0x14bb   :  { %2403 = vrot.lane.b32.xlu0 %v2401_v50, %s7227_s28  ;;  %v379_v50 = vrot.slane %v7464_v15, %v7767_v48  ;;  %v1250_v15 = vcombine.high %v7579_v47, %v7579_v47 }
0x14bc   :  { %v2372_v52 = vpop.permute.xlu1 %2371 }
0x14bd   :  { %v2374_v53 = vmul.f32 %v7705_v51, %v2372_v52  ;;  %v673_v52 = vrot.slane %v7502_v1, %v7767_v48  ;;  %v1257_v57 = vrot.slane %v1250_v15, %v7767_v48  ;;  %v1837_v15 = vrot.slane %v7654_v26, %v7767_v48 }
0x14be   :  { %v2124_v26 = vcombine.high %v7686_v18, %v7686_v18 }
0x14bf   :  { %2376 = vrot.lane.b32.xlu1 %v2374_v53, %s7227_s28  ;;  %v681_v60 = vrot.slane %v673_v52, %v7767_v48  ;;  %v1265_v10 = vrot.slane %v1257_v57, %v7767_v48  ;;  %v674_v45 = vcombine.high %v673_v52, %v673_v52  ;;  %v1258_v40 = vcombine.high %v1257_v57, %v1257_v57 }
0x14c1   :  { %v689_v47 = vcombine.high %v681_v60, %v681_v60  ;;  %v1273_v21 = vcombine.high %v1265_v10, %v1265_v10  ;;  %v688_v35 = vrot.slane %v674_v45, %v7767_v48  ;;  %v1272_v52 = vrot.slane %v1258_v40, %v7767_v48 }
0x14c3   :  { %v694_v8 = vrot.slane %v689_v47, %v7436_v33  ;;  %v1278_v31 = vrot.slane %v1273_v21, %v7436_v33  ;;  %v690_v14 = vcombine.high %v688_v35, %v688_v35  ;;  %v1872_v47 = vcombine.high %v7651_v22, %v7651_v22 }
0x14c4   :  { %v2170_v22 = vrot.slane %v7683_v17, %v7767_v48 }
0x14c5   :  { %v1879_v10 = vrot.slane %v1872_v47, %v7767_v48 }
0x14c7   :  { %v1887_v17 = vrot.slane %v1879_v10, %v7767_v48 }
0x14c9   :  { %v1898_v35 = vrot.slane %v1887_v17, %v7436_v33 }
0x152d   :  { %v2404_v58 = vpop.permute.xlu0 %2403 }
0x152e   :  { %v7710_v59 = vadd.f32 %v2404_v58, %v2396_v56  ;;  %v420_v56 = vrot.slane %v413_v41, %v7767_v48  ;;  %v387_v58 = vrot.slane %v379_v50, %v7767_v48  ;;  %v698_v41 = vrot.slane %v690_v14, %v7436_v33  ;;  %v2694_v14 = vld [vmem:[%s8613_s10 + $0x8] sm:$0xff] }
0x1530   :  { %7092 = vtanh.f32 %v7710_v59  ;;  %v398_v6 = vrot.slane %v387_v58, %v7436_v33  ;;  %v421_v20 = vcombine.high %v420_v56, %v420_v56 }
0x1531   :  { %v2377_v63 = vpop.permute.xlu1 %2376 }
0x1532   :  { %v7714_v0 = vadd.f32 %v2377_v63, %v2369_v61  ;;  %v435_v39 = vrot.slane %v421_v20, %v7767_v48  ;;  %v2178_v20 = vrot.slane %v2170_v22, %v7767_v48 }
0x1534   :  { %7094 = vtanh.f32 %v7714_v0  ;;  %v437_v49 = vcombine.high %v435_v39, %v435_v39 }
0x153a   :  { %v7093_v2 = vpop.eup %7092 }
0x153b   :  { %2409 = vrot.lane.b32.xlu0 %v7093_v2, %s7226_s3  ;;  %v428_v2 = vrot.slane %v420_v56, %v7767_v48  ;;  %v445_v56 = vrot.slane %v437_v49, %v7436_v33 }
0x153e   :  { %v7095_v5 = vpop.eup %7094 }
0x153f   :  { %2382 = vrot.lane.b32.xlu1 %v7095_v5, %s7226_s3  ;;  %v967_v5 = vrot.slane %v960_v11, %v7767_v48  ;;  %v1545_v11 = vrot.slane %v7617_v37, %v7767_v48  ;;  %v1845_v37 = vrot.slane %v1837_v15, %v7767_v48 }
0x1541   :  { %v975_v9 = vrot.slane %v967_v5, %v7767_v48  ;;  %v1553_v57 = vrot.slane %v1545_v11, %v7767_v48  ;;  %v1853_v18 = vcombine.high %v1845_v37, %v1845_v37 }
0x1543   :  { %v986_v44 = vrot.slane %v975_v9, %v7436_v33  ;;  %v1564_v9 = vrot.slane %v1553_v57, %v7436_v33  ;;  %v1858_v45 = vrot.slane %v1853_v18, %v7436_v33 }
0x15ad   :  { %v2410_v53 = vpop.permute.xlu0 %2409 }
0x15ae   :  { %v7783_v55 = vmul.f32 %v7701_v19, %v2410_v53  ;;  %v708_v19 = vcombine.high %v7499_v62, %v7499_v62  ;;  %v1006_v62 = vrot.slane %v7537_v54, %v7767_v48  ;;  %v380_v54 = vcombine.high %v379_v50, %v379_v50 }
0x15af   :  { %v1578_v53 = vcombine.high %v7613_v32, %v7613_v32 }
0x15b0   :  { %v2499_v61 = vrot.slane %v7783_v55, 2  ;;  %v715_v7 = vrot.slane %v708_v19, %v7767_v48  ;;  %v1014_v12 = vrot.slane %v1006_v62, %v7767_v48  ;;  %v394_v34 = vrot.slane %v380_v54, %v7767_v48 }
0x15b1   :  { %v2383_v1 = vpop.permute.xlu1 %2382  ;;  %v1007_v36 = vcombine.high %v1006_v62, %v1006_v62  ;;  %v1585_v19 = vrot.slane %v1578_v53, %v7767_v48  ;;  %v1838_v54 = vcombine.high %v1837_v15, %v1837_v15 }
0x15b2   :  { %2500 = vrot.lane.b32.xlu1 %v2499_v61, %s7226_s3  ;;  %v7797_v63 = vmul.f32 %v7705_v51, %v2383_v1  ;;  %v436_v51 = vcombine.high %v428_v2, %v428_v2  ;;  %v723_v16 = vrot.slane %v715_v7, %v7767_v48  ;;  %v1022_v25 = vcombine.high %v1014_v12, %v1014_v12 }
0x15b3   :  { %v402_v42 = vrot.slane %v394_v34, %v7436_v33  ;;  %v716_v46 = vcombine.high %v715_v7, %v715_v7  ;;  %v1021_v60 = vrot.slane %v1007_v36, %v7767_v48  ;;  %v1274_v1 = vcombine.high %v1272_v52, %v1272_v52 }
0x15b4   :  { %2496 = vrot.lane.b32.xlu0 %v7797_v63, %s7227_s28  ;;  %v441_v13 = vrot.slane %v436_v51, %v7436_v33  ;;  %v734_v24 = vrot.slane %v723_v16, %v7436_v33  ;;  %v1027_v38 = vrot.slane %v1022_v25, %v7436_v33  ;;  %v1593_v51 = vrot.slane %v1585_v19, %v7767_v48 }
0x15b5   :  { %v730_v58 = vrot.slane %v716_v46, %v7767_v48  ;;  %v1546_v16 = vcombine.high %v1545_v11, %v1545_v11  ;;  %v1586_v21 = vcombine.high %v1585_v19, %v1585_v19  ;;  %v1852_v34 = vrot.slane %v1838_v54, %v7767_v48 }
0x15b6   :  { %403 = vrot.lane.b32.xlu1 %v398_v6, %s7227_s28  ;;  %v1282_v6 = vrot.slane %v1274_v1, %v7436_v33  ;;  %v1880_v36 = vcombine.high %v1879_v10, %v1879_v10  ;;  %v2695_v10 = vld [vmem:[%s8613_s10 + $0x10] sm:$0xff] }
0x15b7   :  { %v738_v2 = vrot.slane %v730_v58, %v7436_v33  ;;  %v1854_v40 = vcombine.high %v1852_v34, %v1852_v34  ;;  %v2700_v34 = vld [vmem:[%s8613_s10 + $0x38] sm:$0xff] }
0x15b8   :  { %2505 = vrot.lane.b32.xlu0 %v7714_v0, %s7229_s8  ;;  %v1298_v0 = vrot.slane %v7575_v43, %v7767_v48  ;;  %v968_v43 = vcombine.high %v967_v5, %v967_v5  ;;  %v1023_v5 = vcombine.high %v1021_v60, %v1021_v60  ;;  %v1894_v60 = vrot.slane %v1880_v36, %v7767_v48 }
0x15b9   :  { %v1862_v52 = vrot.slane %v1854_v40, %v7436_v33 }
0x15ba   :  { %699 = vrot.lane.b32.xlu1 %v694_v8, %s7227_s28  ;;  %v1306_v23 = vrot.slane %v1298_v0, %v7767_v48  ;;  %v982_v50 = vrot.slane %v968_v43, %v7767_v48  ;;  %v1299_v32 = vcombine.high %v1298_v0, %v1298_v0  ;;  %v1031_v7 = vrot.slane %v1023_v5, %v7436_v33 }
0x15bb   :  { %v2131_v8 = vrot.slane %v2124_v26, %v7767_v48  ;;  %v1902_v19 = vrot.slane %v1894_v60, %v7436_v33 }
0x15bc   :  { %446 = vrot.lane.b32.xlu0 %v441_v13, %s7226_s3  ;;  %v1317_v27 = vrot.slane %v1306_v23, %v7436_v33  ;;  %v990_v61 = vrot.slane %v982_v50, %v7436_v33  ;;  %v1313_v62 = vrot.slane %v1299_v32, %v7767_v48  ;;  %v1601_v13 = vcombine.high %v1593_v51, %v1593_v51  ;;  %v2809_v51 = vld [vmem:[%s8614_s14 + $0x8] sm:$0xff] }
0x15bd   :  { %v2186_v23 = vcombine.high %v2178_v20, %v2178_v20  ;;  %v2132_v39 = vcombine.high %v2131_v8, %v2131_v8  ;;  %v2462_v32 = vrot.slane %v7783_v55, %v7767_v48  ;;  %v2698_v20 = vld [vmem:[%s8613_s10 + $0x28] sm:$0xff] }
0x15be   :  { %991 = vrot.lane.b32.xlu1 %v986_v44, %s7227_s28  ;;  %v1321_v12 = vrot.slane %v1313_v62, %v7436_v33  ;;  %v2139_v44 = vrot.slane %v2131_v8, %v7767_v48  ;;  %v1606_v0 = vrot.slane %v1601_v13, %v7436_v33  ;;  %v2808_v62 = vld [vmem:[%s8614_s14] sm:$0xff] }
0x15bf   :  { %v2191_v49 = vrot.slane %v2186_v23, %v7436_v33  ;;  %v2146_v53 = vrot.slane %v2132_v39, %v7767_v48  ;;  %v2463_v37 = vcombine.high %v2462_v32, %v2462_v32  ;;  %v2470_v26 = vrot.slane %v2462_v32, %v7767_v48 }
0x15c0   :  { %739 = vrot.lane.b32.xlu0 %v734_v24, %s7226_s3  ;;  %v2414_v24 = vcombine.high %v7797_v63, %v7797_v63  ;;  %v2150_v25 = vrot.slane %v2139_v44, %v7436_v33  ;;  %v2509_v44 = vrot.slane %v7710_v59, 2 }
0x15c1   :  { %v2154_v15 = vrot.slane %v2146_v53, %v7436_v33  ;;  %v2481_v55 = vrot.slane %v2470_v26, %v7436_v33 }
0x15c2   :  { %1283 = vrot.lane.b32.xlu1 %v1278_v31, %s7227_s28  ;;  %v1560_v31 = vrot.slane %v1546_v16, %v7767_v48  ;;  %v2421_v43 = vrot.slane %v2414_v24, %v7767_v48 }
0x15c4   :  { %1032 = vrot.lane.b32.xlu0 %v1027_v38, %s7226_s3  ;;  %v1600_v38 = vrot.slane %v1586_v21, %v7767_v48  ;;  %v1568_v63 = vrot.slane %v1560_v31, %v7436_v33  ;;  %v2422_v50 = vcombine.high %v2421_v43, %v2421_v43  ;;  %v2697_v21 = vld [vmem:[%s8613_s10 + $0x20] sm:$0xff]  ;;  %v2699_v31 = vld [vmem:[%s8613_s10 + $0x30] sm:$0xff] }
0x15c5   :  { %v6790_v59 = vpack.c.bf16 %v2698_v20, %v2697_v21 }
0x15c6   :  { %405 = vrot.lane.b32.xlu1 %v402_v42, %s7227_s28  ;;  %v2693_v42 = vld [vmem:[%s8613_s10] sm:$0xff]  ;;  %v2436_v1 = vrot.slane %v2422_v50, %v7767_v48 }
0x15c7   :  { %v6782_v46 = vpack.c.bf16 %v2694_v14, %v2693_v42 }
0x15c8   :  { %1322 = vrot.lane.b32.xlu0 %v1317_v27, %s7226_s3  ;;  %v2171_v27 = vcombine.high %v2170_v22, %v2170_v22  ;;  %v2438_v57 = vcombine.high %v2436_v1, %v2436_v1  ;;  %v2696_v22 = vld [vmem:[%s8613_s10 + $0x18] sm:$0xff] }
0x15c9   :  { %6783 = vmatprep.subr.bf16.mxu1 %v6782_v46 }
0x15ca   :  { %701 = vrot.lane.b32.xlu1 %v698_v41, %s7227_s28  ;;  %v1602_v41 = vcombine.high %v1600_v38, %v1600_v38  ;;  %v2185_v11 = vrot.slane %v2171_v27, %v7767_v48  ;;  %v2446_v47 = vrot.slane %v2438_v57, %v7436_v33  ;;  %v6794_v38 = vpack.c.bf16 %v2700_v34, %v2699_v31 }
0x15cc   :  { %448 = vrot.lane.b32.xlu0 %v445_v56, %s7226_s3  ;;  %v2429_v56 = vrot.slane %v2421_v43, %v7767_v48  ;;  %v1610_v58 = vrot.slane %v1602_v41, %v7436_v33 }
0x15ce   :  { %993 = vrot.lane.b32.xlu1 %v990_v61, %s7227_s28  ;;  %v2437_v61 = vcombine.high %v2429_v56, %v2429_v56 }
0x15d0   :  { %741 = vrot.lane.b32.xlu0 %v738_v2, %s7226_s3  ;;  %v2187_v2 = vcombine.high %v2185_v11, %v2185_v11  ;;  %v2442_v5 = vrot.slane %v2437_v61, %v7436_v33 }
0x15d2   :  { %1285 = vrot.lane.b32.xlu1 %v1282_v6, %s7227_s28  ;;  %v2195_v6 = vrot.slane %v2187_v2, %v7436_v33 }
0x15d4   :  { %1034 = vrot.lane.b32.xlu0 %v1031_v7, %s7226_s3  ;;  %v2477_v7 = vrot.slane %v2463_v37, %v7767_v48 }
0x15d6   :  { %1569 = vrot.lane.b32.xlu1 %v1564_v9, %s7227_s28  ;;  %v2485_v8 = vrot.slane %v2477_v7, %v7436_v33  ;;  %v6798_v9 = vpack.c.bf16 %v2809_v51, %v2808_v62  ;;  %v2811_v7 = vld [vmem:[%s8614_s14 + $0x18] sm:$0xff]  ;;  %v2790_v51 = vld [vmem:[%s8615_s11] sm:$0xff] }
0x15d8   :  { %1324 = vrot.lane.b32.xlu0 %v1321_v12, %s7226_s3  ;;  %6799 = vmatprep.subr.bf16.mxu0 %v6798_v9 }
0x15da   :  { %1863 = vrot.lane.b32.xlu1 %v1858_v45, %s7227_s28  ;;  %v6786_v45 = vpack.c.bf16 %v2696_v22, %v2695_v10  ;;  %v2807_v10 = vld [vmem:[%s8616_s1 + $0x8] sm:$0xf]  ;;  %v2792_v22 = vld [vmem:[%s8615_s11 + $0x10] sm:$0xff] }
0x15dc   :  { %1611 = vrot.lane.b32.xlu0 %v1606_v0, %s7226_s3 }
0x15de   :  { %2155 = vrot.lane.b32.xlu1 %v2150_v25, %s7227_s28 }
0x15e0   :  { %1903 = vrot.lane.b32.xlu0 %v1898_v35, %s7226_s3 }
0x15e2   :  { %1571 = vrot.lane.b32.xlu1 %v1568_v63, %s7227_s28 }
0x15e4   :  { %2196 = vrot.lane.b32.xlu0 %v2191_v49, %s7226_s3 }
0x15e6   :  { %1865 = vrot.lane.b32.xlu1 %v1862_v52, %s7227_s28 }
0x15e8   :  { %1613 = vrot.lane.b32.xlu0 %v1610_v58, %s7226_s3 }
0x15ea   :  { %2157 = vrot.lane.b32.xlu1 %v2154_v15, %s7227_s28 }
0x15ec   :  { %1905 = vrot.lane.b32.xlu0 %v1902_v19, %s7226_s3 }
0x15ee   :  { %2447 = vrot.lane.b32.xlu1 %v2442_v5, %s7227_s28 }
0x15f0   :  { %2198 = vrot.lane.b32.xlu0 %v2195_v6, %s7226_s3 }
0x15f2   :  { %2449 = vrot.lane.b32.xlu1 %v2446_v47, %s7227_s28 }
0x15f4   :  { %2486 = vrot.lane.b32.xlu0 %v2481_v55, %s7226_s3  ;;  %v2810_v55 = vld [vmem:[%s8614_s14 + $0x10] sm:$0xff] }
0x15f5   :  { %v6802_v62 = vpack.c.bf16 %v2811_v7, %v2810_v55 }
0x15f8   :  { %2488 = vrot.lane.b32.xlu0 %v2485_v8, %s7226_s3  ;;  %v2791_v8 = vld [vmem:[%s8615_s11 + $0x8] sm:$0xff] }
0x1624   :  { %v2501_v18 = vpop.permute.xlu1 %2500 }
0x1626   :  { %v2497_v12 = vpop.permute.xlu0 %2496 }
0x1627   :  { %v2503_v13 = vsel %vm84_vm1, %v2497_v12, %v2501_v18  ;;  %v8020_v18 = vpack.c.bf16 %v2791_v8, %v2790_v51  ;;  %v2793_v12 = vld [vmem:[%s8615_s11 + $0x18] sm:$0xff] }
0x1628   :  { %v404_v16 = vpop.permute.xlu1 %403  ;;  %v2528_v54 = vrot.slane %v2503_v13, 6  ;;  %v8034_v13 = vpack.c.bf16 %v2793_v12, %v2792_v22 }
0x1629   :  { %410 = vst.msk [vmem:[#allocation2] sm:$0x1] %vm409_vm2, %v404_v16  ;;  %v5815_v16 = vld [vmem:[%s8617_s7] ss:$0 sm:$0xff] }
0x162a   :  { %6304 = vmatmul.mubr.msk.f32.vlgmr.msra.gmra.mrb[16].mxu1 %vm2529_vm3, %v2528_v54  ;;  %v2506_v0 = vpop.permute.xlu0 %2505 }
0x162b   :  { %v2511_v17 = vsel %vm84_vm1, %v2506_v0, %v2509_v44  ;;  %6785 = vmatpush3.bf16.msra.mxu1 %v6782_v46 }
0x162c   :  { %v700_v24 = vpop.permute.xlu1 %699  ;;  %v2619_v25 = vrot.slane %v2511_v17, 6  ;;  %6787 = vmatprep.subr.bf16.mxu1 %v6786_v45 }
0x162d   :  { %705 = vst.msk [vmem:[#allocation2 + $0x1] sm:$0x1] %vm409_vm2, %v700_v24 }
0x162e   :  { %6323 = vmatmul.mubr.msk.f32.vlgmr.msra.gmra.mrb[20].mxu0 %vm2529_vm3, %v2619_v25  ;;  %v447_v35 = vpop.permute.xlu0 %446  ;;  %v8057_v25 = vld [vmem:[%s8618_s15] ss:$0 sm:$0xff] }
0x162f   :  { %453 = vst.msk [vmem:[#allocation2 + $0x7] sm:$0x1] %vm452_vm4, %v447_v35  ;;  %6789 = vmatpush3.bf16.msra.mxu1 %v6786_v45  ;;  %6801 = vmatpush3.bf16.msra.mxu0 %v6798_v9  ;;  %v2806_v9 = vld [vmem:[%s8616_s1] sm:$0xff] }
0x1630   :  { %v992_v23 = vpop.permute.xlu1 %991  ;;  %6791 = vmatprep.subr.bf16.mxu1 %v6790_v59  ;;  %6803 = vmatprep.subr.bf16.mxu0 %v6802_v62 }
0x1631   :  { %997 = vst.msk [vmem:[#allocation2 + $0x2] sm:$0x1] %vm409_vm2, %v992_v23  ;;  %6352 = vmatprep.mubr.msk.f32.mxu0 %vm84_vm1, %v2806_v9 }
0x1632   :  { %v740_v39 = vpop.permute.xlu0 %739 }
0x1633   :  { %745 = vst.msk [vmem:[#allocation2 + $0x6] sm:$0x1] %vm452_vm4, %v740_v39  ;;  %6793 = vmatpush3.bf16.msra.mxu1 %v6790_v59  ;;  %6805 = vmatpush3.bf16.msra.mxu0 %v6802_v62  ;;  %v5819_v39 = vld [vmem:[%s8619_s12] ss:$0 sm:$0xff] }
0x1634   :  { %v1284_v43 = vpop.permute.xlu1 %1283  ;;  %6795 = vmatprep.subr.bf16.mxu1 %v6794_v38  ;;  %6806 = vmatprep.subr.bf16.mxu0 %v7223_v3 }
0x1635   :  { %1289 = vst.msk [vmem:[#allocation2 + $0x3] sm:$0x1] %vm409_vm2, %v1284_v43 }
0x1636   :  { %v1033_v63 = vpop.permute.xlu0 %1032  ;;  %6353 = vmatmul.mubr.msk.f32.vlgmr.msra.gmra.mrb[22].mxu0 %vm84_vm1, %v2807_v10 }
0x1637   :  { %1038 = vst.msk [vmem:[#allocation2 + $0x5] sm:$0x1] %vm452_vm4, %v1033_v63  ;;  %6797 = vmatpush3.bf16.msra.mxu1 %v6794_v38  ;;  %6808 = vmatpush3.bf16.msra.mxu0 %v8020_v18 }
0x1638   :  { %v406_v40 = vpop.permute.xlu1 %405  ;;  %6371 = vmatprep.subr.mxu1 %v7224_v4  ;;  %6363 = vmatprep.mubr.msk.f32.mxu0 %vm7225_vm0, %v7224_v4 }
0x1639   :  { %411 = vst.msk [vmem:[#allocation2 + $0x8] sm:$0x1] %vm409_vm2, %v406_v40  ;;  %6809 = vmatprep.subr.bf16.mxu0 %v7223_v3 }
0x163a   :  { %v1323_v42 = vpop.permute.xlu0 %1322 }
0x163b   :  { %1328 = vst.msk [vmem:[#allocation2 + $0x4] sm:$0x1] %vm452_vm4, %v1323_v42  ;;  %6811 = vmatpush3.bf16.msra.mxu0 %v8034_v13 }
0x163c   :  { %v702_v14 = vpop.permute.xlu1 %701  ;;  %6366 = vmatprep.subr.mxu0 %v7224_v4 }
0x163d   :  { %706 = vst.msk [vmem:[#allocation2 + $0x9] sm:$0x1] %vm409_vm2, %v702_v14 }
0x163e   :  { %v449_v46 = vpop.permute.xlu0 %448 }
0x163f   :  { %454 = vst.msk [vmem:[#allocation2 + $0xf] sm:$0x1] %vm452_vm4, %v449_v46 }
0x1640   :  { %v994_v36 = vpop.permute.xlu1 %993 }
0x1641   :  { %998 = vst.msk [vmem:[#allocation2 + $0xa] sm:$0x1] %vm409_vm2, %v994_v36 }
0x1642   :  { %v742_v27 = vpop.permute.xlu0 %741 }
0x1643   :  { %746 = vst.msk [vmem:[#allocation2 + $0xe] sm:$0x1] %vm452_vm4, %v742_v27 }
0x1644   :  { %v1286_v49 = vpop.permute.xlu1 %1285 }
0x1645   :  { %1290 = vst.msk [vmem:[#allocation2 + $0xb] sm:$0x1] %vm409_vm2, %v1286_v49 }
0x1646   :  { %v1035_v41 = vpop.permute.xlu0 %1034 }
0x1647   :  { %1039 = vst.msk [vmem:[#allocation2 + $0xd] sm:$0x1] %vm452_vm4, %v1035_v41  ;;  %v8081_v41 = vld [vmem:[%s8620_s13] ss:$0 sm:$0xff] }
0x1648   :  { %v1570_v50 = vpop.permute.xlu1 %1569 }
0x1649   :  { %1575 = vst.msk [vmem:[#allocation2 + $0x4] sm:$0x1] %vm409_vm2, %v1570_v50 }
0x164a   :  { %v1325_v52 = vpop.permute.xlu0 %1324 }
0x164b   :  { %1329 = vst.msk [vmem:[#allocation2 + $0xc] sm:$0x1] %vm452_vm4, %v1325_v52 }
0x164c   :  { %v1864_v53 = vpop.permute.xlu1 %1863 }
0x164d   :  { %1869 = vst.msk [vmem:[#allocation2 + $0x5] sm:$0x1] %vm409_vm2, %v1864_v53 }
0x164e   :  { %v1612_v56 = vpop.permute.xlu0 %1611 }
0x164f   :  { %1617 = vst.msk [vmem:[#allocation2 + $0x3] sm:$0x1] %vm452_vm4, %v1612_v56 }
0x1650   :  { %v2156_v58 = vpop.permute.xlu1 %2155 }
0x1651   :  { %2161 = vst.msk [vmem:[#allocation2 + $0x6] sm:$0x1] %vm409_vm2, %v2156_v58 }
0x1652   :  { %v1904_v60 = vpop.permute.xlu0 %1903 }
0x1653   :  { %1909 = vst.msk [vmem:[#allocation2 + $0x2] sm:$0x1] %vm452_vm4, %v1904_v60 }
0x1654   :  { %v1572_v11 = vpop.permute.xlu1 %1571 }
0x1655   :  { %1576 = vst.msk [vmem:[#allocation2 + $0xc] sm:$0x1] %vm409_vm2, %v1572_v11  ;;  %v3027_v11 = vand.u32 127, %v74_v28 }
0x1656   :  { %v2197_v15 = vpop.permute.xlu0 %2196 }
0x1657   :  { %2202 = vst.msk [vmem:[#allocation2 + $0x1] sm:$0x1] %vm452_vm4, %v2197_v15  ;;  %v8089_v15 = vsub.s32 %v3027_v11, %v7426_v29  ;;  %v2803_v11 = vld [vmem:[%s8621_s16 + $0x48] sm:$0xff] }
0x1658   :  { %v1866_v61 = vpop.permute.xlu1 %1865 }
0x1659   :  { %1870 = vst.msk [vmem:[#allocation2 + $0xd] sm:$0x1] %vm409_vm2, %v1866_v61 }
0x165a   :  { %v1614_v1 = vpop.permute.xlu0 %1613 }
0x165b   :  { %1618 = vst.msk [vmem:[#allocation2 + $0xb] sm:$0x1] %vm452_vm4, %v1614_v1 }
0x165c   :  { %v2158_v32 = vpop.permute.xlu1 %2157 }
0x165d   :  { %2162 = vst.msk [vmem:[#allocation2 + $0xe] sm:$0x1] %vm409_vm2, %v2158_v32 }
0x165e   :  { %v1906_v19 = vpop.permute.xlu0 %1905 }
0x165f   :  { %1910 = vst.msk [vmem:[#allocation2 + $0xa] sm:$0x1] %vm452_vm4, %v1906_v19 }
0x1660   :  { %v2448_v2 = vpop.permute.xlu1 %2447 }
0x1661   :  { %2453 = vst.msk [vmem:[#allocation2 + $0x7] sm:$0x1] %vm409_vm2, %v2448_v2 }
0x1662   :  { %v2199_v5 = vpop.permute.xlu0 %2198 }
0x1663   :  { %2203 = vst.msk [vmem:[#allocation2 + $0x9] sm:$0x1] %vm452_vm4, %v2199_v5 }
0x1664   :  { %v2450_v57 = vpop.permute.xlu1 %2449 }
0x1665   :  { %2454 = vst.msk [vmem:[#allocation2 + $0xf] sm:$0x1] %vm409_vm2, %v2450_v57  ;;  %v7230_v57 = vmov 0  }
0x1666   :  { %v2487_v37 = vpop.permute.xlu0 %2486  ;;  %6967 = vset.pattern.permute.xlu0 %v7230_v57  ;;  %6966 = vset.pattern.permute.xlu1 %v7230_v57 }
0x1667   :  { %2492 = vst.msk [vmem:[#allocation2] sm:$0x1] %vm452_vm4, %v2487_v37 }
0x166a   :  { %v2489_v26 = vpop.permute.xlu0 %2488 }
0x166b   :  { %2493 = vst.msk [vmem:[#allocation2 + $0x8] sm:$0x1] %vm452_vm4, %v2489_v26 }
0x166e   :  { %v7992_v6 = vld [vmem:[#allocation2] sm:$0xff] }
0x166f   :  { %6341 = vmatprep.mubr.msk.f32.mxu1 %vm2529_vm3, %v7992_v6 }
0x1672   :  { %v7996_v47 = vld [vmem:[#allocation2 + $0x8] sm:$0xff] }
0x1673   :  { %6342 = vmatmul.mubr.msk.f32.vlgmr.msra.gmra.mrb[18].mxu1 %vm2529_vm3, %v7996_v47 }
0x1674   :  { %6372 = vmatpush3.msra.mxu1 %v7996_v47  ;;  %6373 = vmatprep.mubr.msk.f32.mxu1 %vm7225_vm0, %v7224_v4 }
0x1675   :  { %6830 = vmatprep.subr.bf16.mxu1 %v7223_v3 }
0x16fd   :  { %v2598_v54 = vpop.f32.mrb[16].mxu1 }
0x16fe   :  { %v2599_v45 = vadd.f32 %v5815_v16, %v2598_v54  ;;  %v6305_v44 = vpop.f32.mrb[17].mxu1 }
0x1700   :  { %7096 = vtanh.f32 %v2599_v45 }
0x1701   :  { %v8044_v21 = vpop.f32.mrb[20].mxu0 }
0x1702   :  { %v6324_v20 = vpop.f32.mrb[21].mxu0 }
0x1709   :  { %v6354_v59 = vpop.f32.mrb[22].mxu0 }
0x170a   :  { %v8046_v0 = vpop.eup %7096  ;;  %v8060_v31 = vadd.f32 %v6354_v59, %v8057_v25  ;;  %v8062_v34 = vpop.f32.mrb[23].mxu0 }
0x170b   :  { %6364 = vmatmul.mubr.msk.f32.vlgmr.msra.gmra.mrb[24].mxu0 %vm84_vm1, %v8046_v0 }
0x170c   :  { %6367 = vmatpush3.msra.mxu0 %v7992_v6  ;;  %6368 = vmatprep.mubr.msk.f32.mxu0 %vm7225_vm0, %v7224_v4 }
0x170d   :  { %6812 = vmatprep.subr.bf16.mxu0 %v7223_v3 }
0x1746   :  { %v6343_v17 = vpop.f32.mrb[18].mxu1 }
0x1747   :  { %v2780_v24 = vpop.f32.mrb[19].mxu1  ;;  %v8073_v46 = vadd.f32 %v6343_v17, %v5819_v39 }
0x1748   :  { %v8069_v40 = vadd.f32 %v5819_v39, %v2780_v24  ;;  %v2795_v39 = vld [vmem:[%s8621_s16 + $0x8] sm:$0xff] }
0x17de   :  { %v2969_v35 = vpop.f32.mrb[24].mxu0 }
0x17df   :  { %v2980_v23 = vrot.slane %v2969_v35, %v7767_v48  ;;  %v6365_v38 = vpop.f32.mrb[25].mxu0 }
0x17e1   :  { %v2981_v43 = vcombine.high %v2980_v23, %v2980_v23  ;;  %v2988_v63 = vrot.slane %v2980_v23, %v7767_v48 }
0x17e3   :  { %v2995_v42 = vrot.slane %v2981_v43, %v7767_v48  ;;  %v2999_v14 = vrot.slane %v2988_v63, %v7436_v33 }
0x17e5   :  { %v3003_v36 = vrot.slane %v2995_v42, %v7436_v33  ;;  %v3006_v27 = vadd.f32 %v2999_v14, %v8069_v40  ;;  %v2796_v14 = vld [vmem:[%s8621_s16 + $0x10] sm:$0xff] }
0x17e7   :  { %v3007_v49 = vadd.f32 %v3003_v36, %v8073_v46  ;;  %7098 = vtanh.f32 %v3006_v27  ;;  %v2797_v36 = vld [vmem:[%s8621_s16 + $0x18] sm:$0xff] }
0x17e8   :  { %v8128_v27 = vpack.c.bf16 %v2797_v36, %v2796_v14 }
0x17e9   :  { %7100 = vtanh.f32 %v3007_v49  ;;  %v2798_v49 = vld [vmem:[%s8621_s16 + $0x20] sm:$0xff] }
0x17f1   :  { %v7099_v50 = vpop.eup %7098 }
0x17f2   :  { %v3016_v52 = vmul.f32 %v7099_v50, %v8081_v41  ;;  %v2799_v50 = vld [vmem:[%s8621_s16 + $0x28] sm:$0xff] }
0x17f3   :  { %v7101_v53 = vpop.eup %7100 }
0x17f4   :  { %v3018_v56 = vsel %vm84_vm1, %v3016_v52, 0.0  ;;  %v3017_v58 = vmul.f32 %v7101_v53, %v8081_v41  ;;  %v8142_v52 = vpack.c.bf16 %v2799_v50, %v2798_v49  ;;  %v2800_v53 = vld [vmem:[%s8621_s16 + $0x30] sm:$0xff] }
0x17f5   :  { %3019 = vadd.xlane.f32.xlu1 %v3018_v56  ;;  %v2801_v56 = vld [vmem:[%s8621_s16 + $0x38] sm:$0xff] }
0x17f6   :  { %v3021_v60 = vsel %vm84_vm1, %v3017_v58, 0.0  ;;  %v8152_v58 = vpack.c.bf16 %v2801_v56, %v2800_v53 }
0x17f7   :  { %3022 = vadd.xlane.f32.xlu0 %v3021_v60  ;;  %v2802_v60 = vld [vmem:[%s8621_s16 + $0x40] sm:$0xff] }
0x1882   :  { %v3020_v61 = vpop.xlane.xlu1 %3019 }
0x1883   :  { %v3031_v32 = vrot.slane %v3020_v61, %v8089_v15 }
0x1884   :  { %v3023_v1 = vpop.xlane.xlu0 %3022 }
0x1885   :  { %v3035_v19 = vrot.slane %v3023_v1, %v8089_v15 }
0x1887   :  { %v3037_v2 = vsel %vm3036_vm5, %v3035_v19, %v3031_v32  ;;  %v2805_v32 = vld [vmem:[%s8621_s16 + $0x58] sm:$0xff] }
0x1888   :  { %v3040_v5 = vsel %vm3039_vm6, %v3037_v2, -inf }
0x1889   :  { %3041 = vmax.xlane.f32.xlu0 %v3040_v5 }
0x1916   :  { %v3042_v28 = vpop.xlane.xlu0 %3041 }
0x1917   :  { %v3047_v29 = vrot.slane %v3042_v28, %v7436_v33  ;;  %v3051_v37 = vrot.slane %v3042_v28, %v7429_v30 }
0x1919   :  { %v3054_v26 = vsub.f32 %v3020_v61, %v3047_v29  ;;  %v3055_v55 = vsub.f32 %v3023_v1, %v3051_v37  ;;  %v8163_v61 = vpack.c.bf16 %v2803_v11, %v2802_v60  ;;  %v2804_v1 = vld [vmem:[%s8621_s16 + $0x50] sm:$0xff] }
0x191a   :  { %v8173_v19 = vpack.c.bf16 %v2805_v32, %v2804_v1 }
0x191b   :  { %v3056_v7 = vmul.f32 1.442695, %v3054_v26  ;;  %v3058_v62 = vmul.f32 1.442695, %v3055_v55 }
0x191d   :  { %7102 = vpow2.f32 %v3056_v7  ;;  %v8188_v7 = vadd.f32 %v8057_v25, %v8062_v34 }
0x191e   :  { %7104 = vpow2.f32 %v3058_v62  ;;  %v5817_v62 = vld [vmem:[%s8622_s9] ss:$0 sm:$0xff] }
0x1927   :  { %v7103_v51 = vpop.eup %7102 }
0x1928   :  { %v7105_v8 = vpop.eup %7104  ;;  %3063 = vperm.xlu1 %6966, %v7103_v51  }
0x1929   :  { %3066 = vperm.xlu0 %6967, %v7105_v8  }
0x19a7   :  { %v3064_v9 = vpop.permute.xlu1 %3063 }
0x19a8   :  { %v3067_v10 = vpop.permute.xlu0 %3066  ;;  %v3071_v22 = vrot.slane %v3064_v9, %v8089_v15 }
0x19a9   :  { %v3075_v12 = vrot.slane %v3067_v10, %v8089_v15  ;;  %v2689_v10 = vadd.f32 %v5817_v62, %v8044_v21 }
0x19ab   :  { %v3076_v16 = vsel %vm3036_vm5, %v3075_v12, %v3071_v22 }
0x19ac   :  { %v3078_v54 = vsel %vm3039_vm6, %v3076_v16, 0.0 }
0x19ad   :  { %3079 = vadd.xlane.f32.xlu1 %v3078_v54 }
0x19be   :  { %3262 = vrot.lane.b32.xlu1 %v8046_v0, %s7226_s3  ;;  %v2794_v0 = vld [vmem:[%s8621_s16] sm:$0xff] }
0x19bf   :  { %v8113_v63 = vpack.c.bf16 %v2795_v39, %v2794_v0 }
0x1a3a   :  { %v3080_v45 = vpop.xlane.xlu1 %3079 }
0x1a3b   :  { %v3089_v44 = vrot.slane %v3080_v45, %v7429_v30  ;;  %v3085_v20 = vrot.slane %v3080_v45, %v7436_v33 }
0x1a3d   :  { %7106 = vrcp.f32 %v3089_v44 }
0x1a3e   :  { %7108 = vrcp.f32 %v3085_v20  ;;  %v3263_v29 = vpop.permute.xlu1 %3262 }
0x1a47   :  { %v7107_v17 = vpop.eup %7106 }
0x1a48   :  { %v3095_v24 = vmul.f32 %v7107_v17, %v7105_v8  ;;  %v7109_v59 = vpop.eup %7108 }
0x1a49   :  { %v3093_v35 = vmul.f32 %v7109_v59, %v7103_v51 }
0x1a4a   :  { %3179 = vperm.xlu0 %6967, %v3095_v24  }
0x1a4e   :  { %3098 = vperm.xlu0 %6967, %v3093_v35  }
0x1ac9   :  { %v3180_v23 = vpop.permute.xlu0 %3179 }
0x1aca   :  { %v3184_v38 = vrot.slane %v3180_v23, %v8089_v15 }
0x1acc   :  { %6374 = vmatmul.mubr.msk.f32.vlgmr.msra.gmra.mrb[20].mxu1 %vm3104_vm7, %v3184_v38 }
0x1acd   :  { %v3099_v43 = vpop.permute.xlu0 %3098  ;;  %6832 = vmatpush3.bf16.msra.mxu1 %v8020_v18  ;;  %6411 = vmatprep.mubr.msk.f32.mxu1 %vm7225_vm0, %v7224_v4 }
0x1ace   :  { %v3103_v42 = vrot.slane %v3099_v43, %v8089_v15  ;;  %6833 = vmatprep.subr.bf16.mxu1 %v7223_v3 }
0x1ad0   :  { %6369 = vmatmul.mubr.msk.f32.vlgmr.msra.gmra.mrb[26].mxu0 %vm3104_vm7, %v3103_v42 }
0x1ad1   :  { %6814 = vmatpush3.bf16.msra.mxu0 %v8113_v63  ;;  %6400 = vmatprep.mubr.msk.f32.mxu0 %vm7225_vm0, %v7224_v4 }
0x1ad2   :  { %6815 = vmatprep.subr.bf16.mxu0 %v7223_v3  ;;  %6835 = vmatpush3.bf16.msra.mxu1 %v8034_v13 }
0x1ad3   :  { %6414 = vmatprep.subr.mxu1 %v7224_v4 }
0x1ad5   :  { %6817 = vmatpush3.bf16.msra.mxu0 %v8128_v27 }
0x1ad6   :  { %6818 = vmatprep.subr.bf16.mxu0 %v7223_v3 }
0x1ad9   :  { %6820 = vmatpush3.bf16.msra.mxu0 %v8142_v52 }
0x1ada   :  { %6821 = vmatprep.subr.bf16.mxu0 %v7223_v3 }
0x1add   :  { %6823 = vmatpush3.bf16.msra.mxu0 %v8152_v58 }
0x1ade   :  { %6824 = vmatprep.subr.bf16.mxu0 %v7223_v3 }
0x1ae1   :  { %6826 = vmatpush3.bf16.msra.mxu0 %v8163_v61 }
0x1ae2   :  { %6827 = vmatprep.subr.bf16.mxu0 %v7223_v3 }
0x1ae5   :  { %6829 = vmatpush3.bf16.msra.mxu0 %v8173_v19 }
0x1ae6   :  { %6854 = vmatprep.subr.bf16.mxu0 %v7223_v3 }
0x1b9f   :  { %v3253_v2 = vpop.f32.mrb[20].mxu1 }
0x1ba0   :  { %v6375_v5 = vpop.f32.mrb[21].mxu1  ;;  %v3259_v57 = vrot.slane %v3253_v2, 7 }
0x1ba3   :  { %v3173_v28 = vpop.f32.mrb[26].mxu0 }
0x1ba4   :  { %v3260_v37 = vsel %vm3036_vm5, %v3259_v57, %v3173_v28  ;;  %v6370_v26 = vpop.f32.mrb[27].mxu0 }
0x1ba5   :  { %v3265_v55 = vsel %vm2529_vm3, %v3260_v37, %v3263_v29 }
0x1ba6   :  { %6401 = vmatmul.mubr.msk.f32.vlgmr.msra.gmra.mrb[28].mxu0 %vm3266_vm8, %v3265_v55 }
0x1ba7   :  { %6856 = vmatpush3.bf16.msra.mxu0 %v8020_v18  ;;  %6459 = vmatprep.mubr.msk.f32.mxu0 %vm7225_vm0, %v7224_v4 }
0x1ba8   :  { %6857 = vmatprep.subr.bf16.mxu0 %v7223_v3 }
0x1bab   :  { %6859 = vmatpush3.bf16.msra.mxu0 %v8034_v13 }
0x1bac   :  { %6462 = vmatprep.subr.mxu0 %v7224_v4 }
0x1c79   :  { %v3336_v51 = vpop.f32.mrb[28].mxu0 }
0x1c7a   :  { %v3340_v8 = vadd.f32 %v3336_v51, %v8188_v7  ;;  %v6402_v9 = vpop.f32.mrb[29].mxu0 }
0x1c7c   :  { %7110 = vtanh.f32 %v3340_v8  ;;  %v5830_v25 = vmul.f32 -1.442695, %v3340_v8 }
0x1c7d   :  { %7112 = vtanh.f32 %v2689_v10 }
0x1c7e   :  { %7114 = vpow2.f32 %v5830_v25 }
0x1c86   :  { %v7111_v22 = vpop.eup %7110 }
0x1c87   :  { %3354 = vrot.lane.b32.xlu0 %v7111_v22, %s7226_s3  ;;  %v7113_v12 = vpop.eup %7112 }
0x1c88   :  { %v7115_v34 = vpop.eup %7114 }
0x1c89   :  { %v3344_v16 = vadd.f32 1.0, %v7115_v34 }
0x1c8b   :  { %3349 = vrot.lane.b32.xlu0 %v7113_v12, %s7227_s28  ;;  %7116 = vrcp.f32 %v3344_v16 }
0x1c95   :  { %v7117_v54 = vpop.eup %7116 }
0x1cf9   :  { %v3355_v45 = vpop.permute.xlu0 %3354 }
0x1cfa   :  { %v3357_v44 = vmul.f32 %v7117_v54, %v3355_v45 }
0x1cfc   :  { %3359 = vrot.lane.b32.xlu0 %v3357_v44, %s7227_s28 }
0x1cfd   :  { %v3350_v20 = vpop.permute.xlu0 %3349 }
0x1cfe   :  { %v3352_v21 = vmul.f32 %v7117_v54, %v3350_v20 }
0x1d6e   :  { %v3360_v17 = vpop.permute.xlu0 %3359 }
0x1d6f   :  { %v8198_v24 = vadd.f32 %v3360_v17, %v3352_v21 }
0x1d71   :  { %7118 = vtanh.f32 %v8198_v24 }
0x1d7b   :  { %v7119_v59 = vpop.eup %7118 }
0x1d7c   :  { %3365 = vrot.lane.b32.xlu0 %v7119_v59, %s7226_s3 }
0x1dee   :  { %v3366_v35 = vpop.permute.xlu0 %3365 }
0x1def   :  { %v8202_v23 = vmul.f32 %v7117_v54, %v3366_v35 }
0x1df1   :  { %3370 = vrot.lane.b32.xlu1 %v8202_v23, %s7227_s28 }
0x1e63   :  { %v3371_v38 = vpop.permute.xlu1 %3370 }
0x1e64   :  { %6412 = vmatmul.mubr.msk.f32.vlgmr.msra.gmra.mrb[22].mxu1 %vm84_vm1, %v3371_v38 }
0x1e65   :  { %6415 = vmatpush3.msra.mxu1 %v7992_v6  ;;  %6416 = vmatprep.mubr.msk.f32.mxu1 %vm7225_vm0, %v7224_v4 }
0x1e66   :  { %6419 = vmatprep.subr.mxu1 %v7224_v4 }
0x1f37   :  { %v3440_v0 = vpop.f32.mrb[22].mxu1 }
0x1f38   :  { %v3451_v39 = vrot.slane %v3440_v0, %v7767_v48  ;;  %v6413_v43 = vpop.f32.mrb[23].mxu1 }
0x1f3a   :  { %v3452_v42 = vcombine.high %v3451_v39, %v3451_v39  ;;  %v3459_v14 = vrot.slane %v3451_v39, %v7767_v48 }
0x1f3c   :  { %v3466_v36 = vrot.slane %v3452_v42, %v7767_v48  ;;  %v3470_v49 = vrot.slane %v3459_v14, %v7436_v33 }
0x1f3e   :  { %v3474_v50 = vrot.slane %v3466_v36, %v7436_v33  ;;  %v3477_v53 = vadd.f32 %v3470_v49, %v8069_v40 }
0x1f40   :  { %v3478_v56 = vadd.f32 %v3474_v50, %v8073_v46  ;;  %7120 = vtanh.f32 %v3477_v53 }
0x1f42   :  { %7122 = vtanh.f32 %v3478_v56 }
0x1f4a   :  { %v7121_v60 = vpop.eup %7120 }
0x1f4b   :  { %v3481_v11 = vmul.f32 %v7121_v60, %v8081_v41 }
0x1f4c   :  { %v7123_v1 = vpop.eup %7122 }
0x1f4d   :  { %v3483_v32 = vsel %vm84_vm1, %v3481_v11, 0.0  ;;  %v3482_v2 = vmul.f32 %v7123_v1, %v8081_v41 }
0x1f4e   :  { %3484 = vadd.xlane.f32.xlu0 %v3483_v32 }
0x1f4f   :  { %v3486_v5 = vsel %vm84_vm1, %v3482_v2, 0.0 }
0x1f50   :  { %3487 = vadd.xlane.f32.xlu1 %v3486_v5 }
0x1fdb   :  { %v3485_v57 = vpop.xlane.xlu0 %3484 }
0x1fdc   :  { %v3494_v29 = vrot.slane %v3485_v57, %v8089_v15 }
0x1fdd   :  { %v3488_v28 = vpop.xlane.xlu1 %3487 }
0x1fde   :  { %v3498_v37 = vrot.slane %v3488_v28, %v8089_v15 }
0x1fe0   :  { %v3499_v26 = vsel %vm3036_vm5, %v3498_v37, %v3494_v29 }
0x1fe1   :  { %v3501_v55 = vsel %vm3039_vm6, %v3499_v26, -inf }
0x1fe2   :  { %3502 = vmax.xlane.f32.xlu0 %v3501_v55 }
0x206f   :  { %v3503_v62 = vpop.xlane.xlu0 %3502 }
0x2070   :  { %v3508_v51 = vrot.slane %v3503_v62, %v7436_v33  ;;  %v3512_v8 = vrot.slane %v3503_v62, %v7429_v30 }
0x2072   :  { %v3515_v9 = vsub.f32 %v3485_v57, %v3508_v51  ;;  %v3516_v10 = vsub.f32 %v3488_v28, %v3512_v8 }
0x2074   :  { %v3517_v22 = vmul.f32 1.442695, %v3515_v9  ;;  %v3519_v12 = vmul.f32 1.442695, %v3516_v10  ;;  %v3811_v10 = vrot.slane %v8198_v24, 6 }
0x2076   :  { %7124 = vpow2.f32 %v3517_v22 }
0x2077   :  { %7126 = vpow2.f32 %v3519_v12 }
0x2080   :  { %v7125_v25 = vpop.eup %7124 }
0x2081   :  { %v7127_v34 = vpop.eup %7126  ;;  %3524 = vperm.xlu0 %6967, %v7125_v25  }
0x2082   :  { %3527 = vperm.xlu1 %6966, %v7127_v34  }
0x2100   :  { %v3525_v16 = vpop.permute.xlu0 %3524 }
0x2101   :  { %v3528_v54 = vpop.permute.xlu1 %3527  ;;  %v3532_v45 = vrot.slane %v3525_v16, %v8089_v15 }
0x2102   :  { %v3536_v44 = vrot.slane %v3528_v54, %v8089_v15 }
0x2104   :  { %v3537_v20 = vsel %vm3036_vm5, %v3536_v44, %v3532_v45 }
0x2105   :  { %v3539_v21 = vsel %vm3039_vm6, %v3537_v20, 0.0 }
0x2106   :  { %3540 = vadd.xlane.f32.xlu1 %v3539_v21 }
0x2193   :  { %v3541_v17 = vpop.xlane.xlu1 %3540 }
0x2194   :  { %v3546_v59 = vrot.slane %v3541_v17, %v7436_v33  ;;  %v3550_v35 = vrot.slane %v3541_v17, %v7429_v30 }
0x2196   :  { %7128 = vrcp.f32 %v3546_v59 }
0x2197   :  { %7130 = vrcp.f32 %v3550_v35 }
0x21a0   :  { %v7129_v38 = vpop.eup %7128 }
0x21a1   :  { %v3554_v0 = vmul.f32 %v7129_v38, %v7125_v25  ;;  %v7131_v39 = vpop.eup %7130 }
0x21a2   :  { %v3556_v43 = vmul.f32 %v7131_v39, %v7127_v34 }
0x21a3   :  { %3559 = vperm.xlu0 %6967, %v3554_v0  }
0x21a7   :  { %3639 = vperm.xlu0 %6967, %v3556_v43  }
0x21ab   :  { %3722 = vrot.lane.b32.xlu0 %v8202_v23, %s7229_s8 }
0x2222   :  { %v3560_v42 = vpop.permute.xlu0 %3559 }
0x2223   :  { %v3564_v14 = vrot.slane %v3560_v42, %v8089_v15 }
0x2225   :  { %6417 = vmatmul.mubr.msk.f32.vlgmr.msra.gmra.mrb[24].mxu1 %vm3104_vm7, %v3564_v14 }
0x2226   :  { %6420 = vmatpush3.msra.mxu1 %v7996_v47  ;;  %v3640_v36 = vpop.permute.xlu0 %3639  ;;  %6421 = vmatprep.mubr.msk.f32.mxu1 %vm7225_vm0, %v7224_v4 }
0x2227   :  { %v3644_v49 = vrot.slane %v3640_v36, %v8089_v15  ;;  %6836 = vmatprep.subr.bf16.mxu1 %v7223_v3 }
0x2229   :  { %6422 = vmatmul.mubr.msk.f32.vlgmr.msra.gmra.mrb[26].mxu1 %vm3104_vm7, %v3644_v49 }
0x222a   :  { %6838 = vmatpush3.bf16.msra.mxu1 %v8113_v63  ;;  %6448 = vmatprep.mubr.msk.f32.mxu1 %vm7225_vm0, %v7224_v4  ;;  %v3723_v1 = vpop.permute.xlu0 %3722 }
0x222b   :  { %6839 = vmatprep.subr.bf16.mxu1 %v7223_v3 }
0x222e   :  { %6841 = vmatpush3.bf16.msra.mxu1 %v8128_v27 }
0x222f   :  { %6842 = vmatprep.subr.bf16.mxu1 %v7223_v3 }
0x2232   :  { %6844 = vmatpush3.bf16.msra.mxu1 %v8142_v52 }
0x2233   :  { %6845 = vmatprep.subr.bf16.mxu1 %v7223_v3 }
0x2236   :  { %6847 = vmatpush3.bf16.msra.mxu1 %v8152_v58 }
0x2237   :  { %6848 = vmatprep.subr.bf16.mxu1 %v7223_v3 }
0x223a   :  { %6850 = vmatpush3.bf16.msra.mxu1 %v8163_v61 }
0x223b   :  { %6851 = vmatprep.subr.bf16.mxu1 %v7223_v3 }
0x223e   :  { %6853 = vmatpush3.bf16.msra.mxu1 %v8173_v19 }
0x223f   :  { %6878 = vmatprep.subr.bf16.mxu1 %v7223_v3 }
0x22f8   :  { %v3633_v50 = vpop.f32.mrb[24].mxu1 }
0x22f9   :  { %v6418_v53 = vpop.f32.mrb[25].mxu1 }
0x22fc   :  { %v3713_v56 = vpop.f32.mrb[26].mxu1 }
0x22fd   :  { %v3719_v60 = vrot.slane %v3713_v56, 7  ;;  %v6423_v11 = vpop.f32.mrb[27].mxu1 }
0x22ff   :  { %v3720_v32 = vsel %vm3036_vm5, %v3719_v60, %v3633_v50 }
0x2300   :  { %v3725_v2 = vsel %vm2529_vm3, %v3720_v32, %v3723_v1 }
0x2301   :  { %6449 = vmatmul.mubr.msk.f32.vlgmr.msra.gmra.mrb[28].mxu1 %vm3266_vm8, %v3725_v2 }
0x2302   :  { %6880 = vmatpush3.bf16.msra.mxu1 %v8020_v18  ;;  %6507 = vmatprep.mubr.msk.f32.mxu1 %vm7225_vm0, %v7224_v4 }
0x2303   :  { %6881 = vmatprep.subr.bf16.mxu1 %v7223_v3 }
0x2306   :  { %6883 = vmatpush3.bf16.msra.mxu1 %v8034_v13 }
0x2307   :  { %6510 = vmatprep.subr.mxu1 %v7224_v4 }
0x23d4   :  { %v3795_v5 = vpop.f32.mrb[28].mxu1 }
0x23d5   :  { %v3800_v57 = vrot.slane %v3795_v5, 6  ;;  %v6450_v28 = vpop.f32.mrb[29].mxu1 }
0x23d7   :  { %v3802_v29 = vadd.f32 %v3800_v57, %v8188_v7 }
0x23d9   :  { %7132 = vtanh.f32 %v3802_v29  ;;  %v5835_v26 = vmul.f32 -1.442695, %v3802_v29 }
0x23db   :  { %7134 = vpow2.f32 %v5835_v26 }
0x23e3   :  { %v7133_v37 = vpop.eup %7132 }
0x23e4   :  { %3815 = vrot.lane.b32.xlu0 %v7133_v37, %s7226_s3 }
0x23e5   :  { %v7135_v55 = vpop.eup %7134 }
0x23e6   :  { %v3806_v62 = vadd.f32 1.0, %v7135_v55 }
0x23e8   :  { %7136 = vrcp.f32 %v3806_v62 }
0x23f2   :  { %v7137_v51 = vpop.eup %7136 }
0x23f3   :  { %v3813_v22 = vmul.f32 %v7137_v51, %v3811_v10 }
0x2456   :  { %v3816_v8 = vpop.permute.xlu0 %3815 }
0x2457   :  { %v3818_v9 = vmul.f32 %v7137_v51, %v3816_v8 }
0x2459   :  { %3820 = vrot.lane.b32.xlu0 %v3818_v9, %s7227_s28 }
0x24cb   :  { %v3821_v12 = vpop.permute.xlu0 %3820 }
0x24cc   :  { %v8271_v25 = vadd.f32 %v3821_v12, %v3813_v22 }
0x24ce   :  { %7138 = vtanh.f32 %v8271_v25 }
0x24d8   :  { %v7139_v34 = vpop.eup %7138 }
0x24d9   :  { %3826 = vrot.lane.b32.xlu0 %v7139_v34, %s7226_s3 }
0x254b   :  { %v3827_v16 = vpop.permute.xlu0 %3826 }
0x254c   :  { %v8275_v54 = vmul.f32 %v7137_v51, %v3827_v16 }
0x254e   :  { %v3831_v45 = vrot.slane %v8275_v54, 2 }
0x2550   :  { %3832 = vrot.lane.b32.xlu0 %v3831_v45, %s7227_s28 }
0x25c2   :  { %v3833_v44 = vpop.permute.xlu0 %3832 }
0x25c3   :  { %6460 = vmatmul.mubr.msk.f32.vlgmr.msra.gmra.mrb[30].mxu0 %vm84_vm1, %v3833_v44 }
0x25c4   :  { %6463 = vmatpush3.msra.mxu0 %v7992_v6  ;;  %6464 = vmatprep.mubr.msk.f32.mxu0 %vm7225_vm0, %v7224_v4 }
0x25c5   :  { %6467 = vmatprep.subr.mxu0 %v7224_v4 }
0x2696   :  { %v3902_v24 = vpop.f32.mrb[30].mxu0 }
0x2697   :  { %v3913_v20 = vrot.slane %v3902_v24, %v7767_v48  ;;  %v6461_v21 = vpop.f32.mrb[31].mxu0 }
0x2699   :  { %v3914_v17 = vcombine.high %v3913_v20, %v3913_v20  ;;  %v3921_v59 = vrot.slane %v3913_v20, %v7767_v48 }
0x269b   :  { %v3928_v35 = vrot.slane %v3914_v17, %v7767_v48  ;;  %v3932_v38 = vrot.slane %v3921_v59, %v7436_v33 }
0x269d   :  { %v3936_v0 = vrot.slane %v3928_v35, %v7436_v33  ;;  %v3939_v39 = vadd.f32 %v3932_v38, %v8069_v40 }
0x269f   :  { %v3940_v43 = vadd.f32 %v3936_v0, %v8073_v46  ;;  %7140 = vtanh.f32 %v3939_v39 }
0x26a1   :  { %7142 = vtanh.f32 %v3940_v43 }
0x26a9   :  { %v7141_v42 = vpop.eup %7140 }
0x26aa   :  { %v3943_v14 = vmul.f32 %v7141_v42, %v8081_v41 }
0x26ab   :  { %v7143_v36 = vpop.eup %7142 }
0x26ac   :  { %v3945_v49 = vsel %vm84_vm1, %v3943_v14, 0.0  ;;  %v3944_v50 = vmul.f32 %v7143_v36, %v8081_v41 }
0x26ad   :  { %3946 = vadd.xlane.f32.xlu0 %v3945_v49 }
0x26ae   :  { %v3948_v53 = vsel %vm84_vm1, %v3944_v50, 0.0 }
0x26af   :  { %3949 = vadd.xlane.f32.xlu1 %v3948_v53 }
0x273a   :  { %v3947_v56 = vpop.xlane.xlu0 %3946 }
0x273b   :  { %v3956_v11 = vrot.slane %v3947_v56, %v8089_v15 }
0x273c   :  { %v3950_v60 = vpop.xlane.xlu1 %3949 }
0x273d   :  { %v3960_v1 = vrot.slane %v3950_v60, %v8089_v15 }
0x273f   :  { %v3961_v32 = vsel %vm3036_vm5, %v3960_v1, %v3956_v11 }
0x2740   :  { %v3963_v2 = vsel %vm3039_vm6, %v3961_v32, -inf }
0x2741   :  { %3964 = vmax.xlane.f32.xlu1 %v3963_v2 }
0x27ce   :  { %v3965_v5 = vpop.xlane.xlu1 %3964 }
0x27cf   :  { %v3970_v57 = vrot.slane %v3965_v5, %v7436_v33  ;;  %v3974_v28 = vrot.slane %v3965_v5, %v7429_v30 }
0x27d1   :  { %v3977_v29 = vsub.f32 %v3947_v56, %v3970_v57  ;;  %v3978_v37 = vsub.f32 %v3950_v60, %v3974_v28 }
0x27d3   :  { %v3979_v26 = vmul.f32 1.442695, %v3977_v29  ;;  %v3981_v55 = vmul.f32 1.442695, %v3978_v37  ;;  %v4273_v37 = vrot.slane %v8271_v25, 6 }
0x27d5   :  { %7144 = vpow2.f32 %v3979_v26 }
0x27d6   :  { %7146 = vpow2.f32 %v3981_v55 }
0x27df   :  { %v7145_v62 = vpop.eup %7144 }
0x27e0   :  { %v7147_v51 = vpop.eup %7146  ;;  %3986 = vperm.xlu1 %6966, %v7145_v62  }
0x27e1   :  { %3989 = vperm.xlu0 %6967, %v7147_v51  }
0x285f   :  { %v3987_v8 = vpop.permute.xlu1 %3986 }
0x2860   :  { %v3990_v9 = vpop.permute.xlu0 %3989  ;;  %v3994_v10 = vrot.slane %v3987_v8, %v8089_v15 }
0x2861   :  { %v3998_v22 = vrot.slane %v3990_v9, %v8089_v15 }
0x2863   :  { %v3999_v12 = vsel %vm3036_vm5, %v3998_v22, %v3994_v10  ;;  %v5675_v10 = vsel %vm5674_vm9, %v8202_v23, %v8275_v54 }
0x2864   :  { %v4001_v34 = vsel %vm3039_vm6, %v3999_v12, 0.0 }
0x2865   :  { %4002 = vadd.xlane.f32.xlu1 %v4001_v34 }
0x28f2   :  { %v4003_v16 = vpop.xlane.xlu1 %4002 }
0x28f3   :  { %v4008_v44 = vrot.slane %v4003_v16, %v7436_v33  ;;  %v4012_v24 = vrot.slane %v4003_v16, %v7429_v30 }
0x28f5   :  { %7148 = vrcp.f32 %v4008_v44 }
0x28f6   :  { %7150 = vrcp.f32 %v4012_v24 }
0x28ff   :  { %v7149_v20 = vpop.eup %7148 }
0x2900   :  { %v4016_v21 = vmul.f32 %v7149_v20, %v7145_v62  ;;  %v7151_v17 = vpop.eup %7150 }
0x2901   :  { %v4018_v59 = vmul.f32 %v7151_v17, %v7147_v51 }
0x2902   :  { %4021 = vperm.xlu0 %6967, %v4016_v21  }
0x2906   :  { %4101 = vperm.xlu0 %6967, %v4018_v59  }
0x290a   :  { %4184 = vrot.lane.b32.xlu0 %v3831_v45, %s7229_s8 }
0x2981   :  { %v4022_v35 = vpop.permute.xlu0 %4021 }
0x2982   :  { %v4026_v38 = vrot.slane %v4022_v35, %v8089_v15 }
0x2984   :  { %6465 = vmatmul.mubr.msk.f32.vlgmr.msra.gmra.mrb[32].mxu0 %vm3104_vm7, %v4026_v38 }
0x2985   :  { %6468 = vmatpush3.msra.mxu0 %v7996_v47  ;;  %v4102_v0 = vpop.permute.xlu0 %4101  ;;  %6469 = vmatprep.mubr.msk.f32.mxu0 %vm7225_vm0, %v7224_v4 }
0x2986   :  { %v4106_v39 = vrot.slane %v4102_v0, %v8089_v15  ;;  %6860 = vmatprep.subr.bf16.mxu0 %v7223_v3 }
0x2988   :  { %6470 = vmatmul.mubr.msk.f32.vlgmr.msra.gmra.mrb[34].mxu0 %vm3104_vm7, %v4106_v39 }
0x2989   :  { %6862 = vmatpush3.bf16.msra.mxu0 %v8113_v63  ;;  %6496 = vmatprep.mubr.msk.f32.mxu0 %vm7225_vm0, %v7224_v4  ;;  %v4185_v36 = vpop.permute.xlu0 %4184 }
0x298a   :  { %6863 = vmatprep.subr.bf16.mxu0 %v7223_v3 }
0x298d   :  { %6865 = vmatpush3.bf16.msra.mxu0 %v8128_v27 }
0x298e   :  { %6866 = vmatprep.subr.bf16.mxu0 %v7223_v3 }
0x2991   :  { %6868 = vmatpush3.bf16.msra.mxu0 %v8142_v52 }
0x2992   :  { %6869 = vmatprep.subr.bf16.mxu0 %v7223_v3 }
0x2995   :  { %6871 = vmatpush3.bf16.msra.mxu0 %v8152_v58 }
0x2996   :  { %6872 = vmatprep.subr.bf16.mxu0 %v7223_v3 }
0x2999   :  { %6874 = vmatpush3.bf16.msra.mxu0 %v8163_v61 }
0x299a   :  { %6875 = vmatprep.subr.bf16.mxu0 %v7223_v3 }
0x299d   :  { %6877 = vmatpush3.bf16.msra.mxu0 %v8173_v19 }
0x299e   :  { %6902 = vmatprep.subr.bf16.mxu0 %v7223_v3 }
0x2a57   :  { %v4095_v47 = vpop.f32.mrb[32].mxu0 }
0x2a58   :  { %v6466_v45 = vpop.f32.mrb[33].mxu0 }
0x2a5b   :  { %v4175_v43 = vpop.f32.mrb[34].mxu0 }
0x2a5c   :  { %v4181_v42 = vrot.slane %v4175_v43, 7  ;;  %v6471_v14 = vpop.f32.mrb[35].mxu0 }
0x2a5e   :  { %v4182_v49 = vsel %vm3036_vm5, %v4181_v42, %v4095_v47 }
0x2a5f   :  { %v4187_v50 = vsel %vm2529_vm3, %v4182_v49, %v4185_v36 }
0x2a60   :  { %6497 = vmatmul.mubr.msk.f32.vlgmr.msra.gmra.mrb[36].mxu0 %vm3266_vm8, %v4187_v50 }
0x2a61   :  { %6904 = vmatpush3.bf16.msra.mxu0 %v8020_v18  ;;  %6555 = vmatprep.mubr.msk.f32.mxu0 %vm7225_vm0, %v7224_v4 }
0x2a62   :  { %6905 = vmatprep.subr.bf16.mxu0 %v7223_v3 }
0x2a65   :  { %6907 = vmatpush3.bf16.msra.mxu0 %v8034_v13 }
0x2a66   :  { %6558 = vmatprep.subr.mxu0 %v7224_v4 }
0x2b33   :  { %v4257_v53 = vpop.f32.mrb[36].mxu0 }
0x2b34   :  { %v4262_v56 = vrot.slane %v4257_v53, 4  ;;  %v6498_v60 = vpop.f32.mrb[37].mxu0 }
0x2b36   :  { %v4264_v11 = vadd.f32 %v4262_v56, %v8188_v7 }
0x2b38   :  { %7152 = vtanh.f32 %v4264_v11  ;;  %v5840_v32 = vmul.f32 -1.442695, %v4264_v11 }
0x2b3a   :  { %7154 = vpow2.f32 %v5840_v32 }
0x2b42   :  { %v7153_v1 = vpop.eup %7152 }
0x2b43   :  { %4277 = vrot.lane.b32.xlu0 %v7153_v1, %s7226_s3 }
0x2b44   :  { %v7155_v2 = vpop.eup %7154 }
0x2b45   :  { %v4268_v5 = vadd.f32 1.0, %v7155_v2 }
0x2b47   :  { %7156 = vrcp.f32 %v4268_v5 }
0x2b51   :  { %v7157_v57 = vpop.eup %7156 }
0x2b52   :  { %v4275_v26 = vmul.f32 %v7157_v57, %v4273_v37 }
0x2bb5   :  { %v4278_v28 = vpop.permute.xlu0 %4277 }
0x2bb6   :  { %v4280_v29 = vmul.f32 %v7157_v57, %v4278_v28 }
0x2bb8   :  { %4282 = vrot.lane.b32.xlu1 %v4280_v29, %s7227_s28 }
0x2c2a   :  { %v4283_v55 = vpop.permute.xlu1 %4282 }
0x2c2b   :  { %v8347_v62 = vadd.f32 %v4283_v55, %v4275_v26 }
0x2c2d   :  { %7158 = vtanh.f32 %v8347_v62 }
0x2c37   :  { %v7159_v51 = vpop.eup %7158 }
0x2c38   :  { %4288 = vrot.lane.b32.xlu0 %v7159_v51, %s7226_s3 }
0x2caa   :  { %v4289_v8 = vpop.permute.xlu0 %4288 }
0x2cab   :  { %v8351_v9 = vmul.f32 %v7157_v57, %v4289_v8 }
0x2cad   :  { %v4293_v25 = vrot.slane %v8351_v9, 4  ;;  %v8358_v22 = vsel %vm5676_vm10, %v5675_v10, %v8351_v9 }
0x2caf   :  { %4294 = vrot.lane.b32.xlu0 %v4293_v25, %s7227_s28 }
0x2d21   :  { %v4295_v12 = vpop.permute.xlu0 %4294 }
0x2d22   :  { %6508 = vmatmul.mubr.msk.f32.vlgmr.msra.gmra.mrb[30].mxu1 %vm84_vm1, %v4295_v12 }
0x2d23   :  { %6511 = vmatpush3.msra.mxu1 %v7992_v6  ;;  %6512 = vmatprep.mubr.msk.f32.mxu1 %vm7225_vm0, %v7224_v4 }
0x2d24   :  { %6515 = vmatprep.subr.mxu1 %v7224_v4 }
0x2df5   :  { %v4364_v23 = vpop.f32.mrb[30].mxu1 }
0x2df6   :  { %v4375_v54 = vrot.slane %v4364_v23, %v7767_v48  ;;  %v6509_v34 = vpop.f32.mrb[31].mxu1 }
0x2df8   :  { %v4376_v16 = vcombine.high %v4375_v54, %v4375_v54  ;;  %v4383_v44 = vrot.slane %v4375_v54, %v7767_v48 }
0x2dfa   :  { %v4390_v24 = vrot.slane %v4376_v16, %v7767_v48  ;;  %v4394_v20 = vrot.slane %v4383_v44, %v7436_v33  ;;  %v8396_v44 = vld [vmem:[#allocation2 + $0x8] sm:$0xff] }
0x2dfc   :  { %v4398_v21 = vrot.slane %v4390_v24, %v7436_v33  ;;  %v4401_v6 = vadd.f32 %v4394_v20, %v8069_v40 }
0x2dfe   :  { %v4402_v17 = vadd.f32 %v4398_v21, %v8073_v46  ;;  %7160 = vtanh.f32 %v4401_v6 }
0x2e00   :  { %7162 = vtanh.f32 %v4402_v17 }
0x2e08   :  { %v7161_v59 = vpop.eup %7160 }
0x2e09   :  { %v4405_v35 = vmul.f32 %v7161_v59, %v8081_v41 }
0x2e0a   :  { %v7163_v38 = vpop.eup %7162 }
0x2e0b   :  { %v4407_v0 = vsel %vm84_vm1, %v4405_v35, 0.0  ;;  %v4406_v39 = vmul.f32 %v7163_v38, %v8081_v41 }
0x2e0c   :  { %4408 = vadd.xlane.f32.xlu0 %v4407_v0 }
0x2e0d   :  { %v4410_v47 = vsel %vm84_vm1, %v4406_v39, 0.0 }
0x2e0e   :  { %4411 = vadd.xlane.f32.xlu1 %v4410_v47 }
0x2e99   :  { %v4409_v45 = vpop.xlane.xlu0 %4408 }
0x2e9a   :  { %v4418_v42 = vrot.slane %v4409_v45, %v8089_v15 }
0x2e9b   :  { %v4412_v43 = vpop.xlane.xlu1 %4411 }
0x2e9c   :  { %v4422_v14 = vrot.slane %v4412_v43, %v8089_v15 }
0x2e9e   :  { %v4423_v36 = vsel %vm3036_vm5, %v4422_v14, %v4418_v42 }
0x2e9f   :  { %v4425_v49 = vsel %vm3039_vm6, %v4423_v36, -inf }
0x2ea0   :  { %4426 = vmax.xlane.f32.xlu0 %v4425_v49 }
0x2f2d   :  { %v4427_v50 = vpop.xlane.xlu0 %4426 }
0x2f2e   :  { %v4432_v53 = vrot.slane %v4427_v50, %v7436_v33  ;;  %v4436_v41 = vrot.slane %v4427_v50, %v7429_v30 }
0x2f30   :  { %v4439_v56 = vsub.f32 %v4409_v45, %v4432_v53  ;;  %v4440_v60 = vsub.f32 %v4412_v43, %v4436_v41 }
0x2f32   :  { %v4441_v11 = vmul.f32 1.442695, %v4439_v56  ;;  %v4443_v1 = vmul.f32 1.442695, %v4440_v60 }
0x2f34   :  { %7164 = vpow2.f32 %v4441_v11 }
0x2f35   :  { %7166 = vpow2.f32 %v4443_v1 }
0x2f3e   :  { %v7165_v32 = vpop.eup %7164 }
0x2f3f   :  { %v7167_v2 = vpop.eup %7166  ;;  %4448 = vperm.xlu0 %6967, %v7165_v32  }
0x2f40   :  { %4451 = vperm.xlu1 %6966, %v7167_v2  }
0x2fbe   :  { %v4449_v5 = vpop.permute.xlu0 %4448 }
0x2fbf   :  { %v4452_v57 = vpop.permute.xlu1 %4451  ;;  %v4456_v28 = vrot.slane %v4449_v5, %v8089_v15 }
0x2fc0   :  { %v4460_v29 = vrot.slane %v4452_v57, %v8089_v15 }
0x2fc2   :  { %v4461_v37 = vsel %vm3036_vm5, %v4460_v29, %v4456_v28 }
0x2fc3   :  { %v4463_v26 = vsel %vm3039_vm6, %v4461_v37, 0.0 }
0x2fc4   :  { %4464 = vadd.xlane.f32.xlu0 %v4463_v26 }
0x3051   :  { %v4465_v55 = vpop.xlane.xlu0 %4464 }
0x3052   :  { %v4470_v51 = vrot.slane %v4465_v55, %v7436_v33  ;;  %v4474_v8 = vrot.slane %v4465_v55, %v7429_v30 }
0x3054   :  { %7168 = vrcp.f32 %v4470_v51 }
0x3055   :  { %7170 = vrcp.f32 %v4474_v8 }
0x305e   :  { %v7169_v10 = vpop.eup %7168 }
0x305f   :  { %v4478_v12 = vmul.f32 %v7169_v10, %v7165_v32  ;;  %v7171_v23 = vpop.eup %7170 }
0x3060   :  { %v4480_v54 = vmul.f32 %v7171_v23, %v7167_v2  ;;  %v8446_v2 = vld [vmem:[#allocation2] sm:$0xff] }
0x3061   :  { %4483 = vperm.xlu1 %6966, %v4478_v12   ;;  %v8462_v12 = vld [vmem:[%s8620_s13] ss:$0 sm:$0xff] }
0x3065   :  { %4563 = vperm.xlu1 %6966, %v4480_v54  }
0x3069   :  { %4646 = vrot.lane.b32.xlu1 %v4293_v25, %s7229_s8 }
0x30e0   :  { %v4484_v34 = vpop.permute.xlu1 %4483 }
0x30e1   :  { %v4488_v16 = vrot.slane %v4484_v34, %v8089_v15 }
0x30e3   :  { %6513 = vmatmul.mubr.msk.f32.vlgmr.msra.gmra.mrb[32].mxu1 %vm3104_vm7, %v4488_v16 }
0x30e4   :  { %6516 = vmatpush3.msra.mxu1 %v8396_v44  ;;  %v4564_v24 = vpop.permute.xlu1 %4563  ;;  %6517 = vmatprep.mubr.msk.f32.mxu1 %vm7225_vm0, %v7224_v4 }
0x30e5   :  { %v4568_v20 = vrot.slane %v4564_v24, %v8089_v15  ;;  %6884 = vmatprep.subr.bf16.mxu1 %v7223_v3 }
0x30e7   :  { %6518 = vmatmul.mubr.msk.f32.vlgmr.msra.gmra.mrb[34].mxu1 %vm3104_vm7, %v4568_v20 }
0x30e8   :  { %6886 = vmatpush3.bf16.msra.mxu1 %v8113_v63  ;;  %6544 = vmatprep.mubr.msk.f32.mxu1 %vm7225_vm0, %v7224_v4  ;;  %v4647_v59 = vpop.permute.xlu1 %4646 }
0x30e9   :  { %6887 = vmatprep.subr.bf16.mxu1 %v7223_v3 }
0x30ec   :  { %6889 = vmatpush3.bf16.msra.mxu1 %v8128_v27 }
0x30ed   :  { %6890 = vmatprep.subr.bf16.mxu1 %v7223_v3 }
0x30f0   :  { %6892 = vmatpush3.bf16.msra.mxu1 %v8142_v52 }
0x30f1   :  { %6893 = vmatprep.subr.bf16.mxu1 %v7223_v3 }
0x30f4   :  { %6895 = vmatpush3.bf16.msra.mxu1 %v8152_v58 }
0x30f5   :  { %6896 = vmatprep.subr.bf16.mxu1 %v7223_v3 }
0x30f8   :  { %6898 = vmatpush3.bf16.msra.mxu1 %v8163_v61 }
0x30f9   :  { %6899 = vmatprep.subr.bf16.mxu1 %v7223_v3 }
0x30fc   :  { %6901 = vmatpush3.bf16.msra.mxu1 %v8173_v19 }
0x30fd   :  { %6926 = vmatprep.subr.bf16.mxu1 %v7223_v3 }
0x31b6   :  { %v4557_v9 = vpop.f32.mrb[32].mxu1 }
0x31b7   :  { %v6514_v25 = vpop.f32.mrb[33].mxu1 }
0x31ba   :  { %v4637_v21 = vpop.f32.mrb[34].mxu1 }
0x31bb   :  { %v4643_v6 = vrot.slane %v4637_v21, 7  ;;  %v6519_v17 = vpop.f32.mrb[35].mxu1 }
0x31bd   :  { %v4644_v35 = vsel %vm3036_vm5, %v4643_v6, %v4557_v9 }
0x31be   :  { %v4649_v38 = vsel %vm2529_vm3, %v4644_v35, %v4647_v59 }
0x31bf   :  { %6545 = vmatmul.mubr.msk.f32.vlgmr.msra.gmra.mrb[36].mxu1 %vm3266_vm8, %v4649_v38 }
0x31c0   :  { %6928 = vmatpush3.bf16.msra.mxu1 %v8020_v18  ;;  %6603 = vmatprep.mubr.msk.f32.mxu1 %vm7225_vm0, %v7224_v4 }
0x31c1   :  { %6929 = vmatprep.subr.bf16.mxu1 %v7223_v3 }
0x31c4   :  { %6931 = vmatpush3.bf16.msra.mxu1 %v8034_v13  ;;  %v4735_v13 = vrot.slane %v8347_v62, 6 }
0x31c5   :  { %6606 = vmatprep.subr.mxu1 %v7224_v4 }
0x3292   :  { %v4719_v0 = vpop.f32.mrb[36].mxu1 }
0x3293   :  { %v4724_v39 = vrot.slane %v4719_v0, 2  ;;  %v6546_v47 = vpop.f32.mrb[37].mxu1 }
0x3295   :  { %v4726_v45 = vadd.f32 %v4724_v39, %v8188_v7 }
0x3297   :  { %7172 = vtanh.f32 %v4726_v45  ;;  %v5845_v42 = vmul.f32 -1.442695, %v4726_v45 }
0x3299   :  { %7174 = vpow2.f32 %v5845_v42 }
0x32a1   :  { %v7173_v43 = vpop.eup %7172 }
0x32a2   :  { %4739 = vrot.lane.b32.xlu1 %v7173_v43, %s7226_s3 }
0x32a3   :  { %v7175_v18 = vpop.eup %7174 }
0x32a4   :  { %v4730_v14 = vadd.f32 1.0, %v7175_v18 }
0x32a6   :  { %7176 = vrcp.f32 %v4730_v14 }
0x32b0   :  { %v7177_v36 = vpop.eup %7176 }
0x32b1   :  { %v4737_v53 = vmul.f32 %v7177_v36, %v4735_v13 }
0x3314   :  { %v4740_v49 = vpop.permute.xlu1 %4739 }
0x3315   :  { %v4742_v50 = vmul.f32 %v7177_v36, %v4740_v49 }
0x3317   :  { %4744 = vrot.lane.b32.xlu1 %v4742_v50, %s7227_s28 }
0x3389   :  { %v4745_v41 = vpop.permute.xlu1 %4744 }
0x338a   :  { %v8431_v56 = vadd.f32 %v4745_v41, %v4737_v53 }
0x338c   :  { %7178 = vtanh.f32 %v8431_v56 }
0x3396   :  { %v7179_v7 = vpop.eup %7178 }
0x3397   :  { %4750 = vrot.lane.b32.xlu1 %v7179_v7, %s7226_s3 }
0x3409   :  { %v4751_v60 = vpop.permute.xlu1 %4750 }
0x340a   :  { %v8435_v11 = vmul.f32 %v7177_v36, %v4751_v60 }
0x340c   :  { %v4755_v1 = vrot.slane %v8435_v11, 6  ;;  %v8440_v32 = vsel %vm5678_vm11, %v8358_v22, %v8435_v11 }
0x340e   :  { %4756 = vrot.lane.b32.xlu1 %v4755_v1, %s7227_s28 }
0x3480   :  { %v4757_v62 = vpop.permute.xlu1 %4756 }
0x3481   :  { %6556 = vmatmul.mubr.msk.f32.vlgmr.msra.gmra.mrb[38].mxu0 %vm84_vm1, %v4757_v62 }
0x3482   :  { %6559 = vmatpush3.msra.mxu0 %v8446_v2  ;;  %6560 = vmatprep.mubr.msk.f32.mxu0 %vm7225_vm0, %v7224_v4 }
0x3483   :  { %6563 = vmatprep.subr.mxu0 %v7224_v4 }
0x3554   :  { %v4826_v5 = vpop.f32.mrb[38].mxu0 }
0x3555   :  { %v4837_v22 = vrot.slane %v4826_v5, %v7767_v48  ;;  %v6557_v57 = vpop.f32.mrb[39].mxu0 }
0x3557   :  { %v4838_v28 = vcombine.high %v4837_v22, %v4837_v22  ;;  %v4845_v29 = vrot.slane %v4837_v22, %v7767_v48 }
0x3559   :  { %v4852_v37 = vrot.slane %v4838_v28, %v7767_v48  ;;  %v4856_v26 = vrot.slane %v4845_v29, %v7436_v33 }
0x355b   :  { %v4860_v55 = vrot.slane %v4852_v37, %v7436_v33  ;;  %v4863_v51 = vadd.f32 %v4856_v26, %v8069_v40 }
0x355d   :  { %v4864_v8 = vadd.f32 %v4860_v55, %v8073_v46  ;;  %7180 = vtanh.f32 %v4863_v51 }
0x355f   :  { %7182 = vtanh.f32 %v4864_v8 }
0x3567   :  { %v7181_v10 = vpop.eup %7180 }
0x3568   :  { %v4867_v23 = vmul.f32 %v8462_v12, %v7181_v10 }
0x3569   :  { %v7183_v54 = vpop.eup %7182 }
0x356a   :  { %v4869_v34 = vsel %vm84_vm1, %v4867_v23, 0.0  ;;  %v4868_v16 = vmul.f32 %v8462_v12, %v7183_v54 }
0x356b   :  { %4870 = vadd.xlane.f32.xlu0 %v4869_v34 }
0x356c   :  { %v4872_v24 = vsel %vm84_vm1, %v4868_v16, 0.0 }
0x356d   :  { %4873 = vadd.xlane.f32.xlu1 %v4872_v24 }
0x35f8   :  { %v4871_v20 = vpop.xlane.xlu0 %4870 }
0x35f9   :  { %v4880_v25 = vrot.slane %v4871_v20, %v8089_v15 }
0x35fa   :  { %v4874_v9 = vpop.xlane.xlu1 %4873 }
0x35fb   :  { %v4884_v21 = vrot.slane %v4874_v9, %v8089_v15 }
0x35fd   :  { %v4885_v6 = vsel %vm3036_vm5, %v4884_v21, %v4880_v25 }
0x35fe   :  { %v4887_v17 = vsel %vm3039_vm6, %v4885_v6, -inf }
0x35ff   :  { %4888 = vmax.xlane.f32.xlu0 %v4887_v17 }
0x368c   :  { %v4889_v59 = vpop.xlane.xlu0 %4888 }
0x368d   :  { %v4894_v35 = vrot.slane %v4889_v59, %v7436_v33  ;;  %v4898_v38 = vrot.slane %v4889_v59, %v7429_v30  ;;  %v5194_v59 = vrot.slane %v8431_v56, 6 }
0x368f   :  { %v4901_v0 = vsub.f32 %v4871_v20, %v4894_v35  ;;  %v4902_v39 = vsub.f32 %v4874_v9, %v4898_v38 }
0x3691   :  { %v4903_v47 = vmul.f32 1.442695, %v4901_v0  ;;  %v4905_v45 = vmul.f32 1.442695, %v4902_v39 }
0x3693   :  { %7184 = vpow2.f32 %v4903_v47 }
0x3694   :  { %7186 = vpow2.f32 %v4905_v45 }
0x369d   :  { %v7185_v43 = vpop.eup %7184 }
0x369e   :  { %4910 = vperm.xlu0 %6967, %v7185_v43   ;;  %v7187_v42 = vpop.eup %7186 }
0x36a2   :  { %4913 = vperm.xlu0 %6967, %v7187_v42  }
0x371d   :  { %v4911_v18 = vpop.permute.xlu0 %4910 }
0x371e   :  { %v4918_v36 = vrot.slane %v4911_v18, %v8089_v15 }
0x3721   :  { %v4914_v14 = vpop.permute.xlu0 %4913 }
0x3722   :  { %v4922_v49 = vrot.slane %v4914_v14, %v8089_v15 }
0x3724   :  { %v4923_v50 = vsel %vm3036_vm5, %v4922_v49, %v4918_v36 }
0x3725   :  { %v4925_v13 = vsel %vm3039_vm6, %v4923_v50, 0.0 }
0x3726   :  { %4926 = vadd.xlane.f32.xlu0 %v4925_v13 }
0x37b3   :  { %v4927_v53 = vpop.xlane.xlu0 %4926 }
0x37b4   :  { %v4932_v41 = vrot.slane %v4927_v53, %v7436_v33  ;;  %v4936_v7 = vrot.slane %v4927_v53, %v7429_v30 }
0x37b6   :  { %7188 = vrcp.f32 %v4932_v41 }
0x37b7   :  { %7190 = vrcp.f32 %v4936_v7 }
0x37c0   :  { %v7189_v60 = vpop.eup %7188 }
0x37c1   :  { %v4940_v62 = vmul.f32 %v7189_v60, %v7185_v43  ;;  %v7191_v5 = vpop.eup %7190 }
0x37c2   :  { %v4942_v22 = vmul.f32 %v7191_v5, %v7187_v42 }
0x37c3   :  { %4945 = vperm.xlu1 %6966, %v4940_v62  }
0x37c7   :  { %5025 = vperm.xlu1 %6966, %v4942_v22  }
0x37cb   :  { %5108 = vrot.lane.b32.xlu1 %v4755_v1, %s7229_s8 }
0x3842   :  { %v4946_v57 = vpop.permute.xlu1 %4945 }
0x3843   :  { %v4950_v28 = vrot.slane %v4946_v57, %v8089_v15 }
0x3845   :  { %6561 = vmatmul.mubr.msk.f32.vlgmr.msra.gmra.mrb[40].mxu0 %vm3104_vm7, %v4950_v28 }
0x3846   :  { %6564 = vmatpush3.msra.mxu0 %v8396_v44  ;;  %v5026_v29 = vpop.permute.xlu1 %5025  ;;  %6565 = vmatprep.mubr.msk.f32.mxu0 %vm7225_vm0, %v7224_v4 }
0x3847   :  { %v5030_v37 = vrot.slane %v5026_v29, %v8089_v15  ;;  %6908 = vmatprep.subr.bf16.mxu0 %v7223_v3 }
0x3849   :  { %6566 = vmatmul.mubr.msk.f32.vlgmr.msra.gmra.mrb[42].mxu0 %vm3104_vm7, %v5030_v37 }
0x384a   :  { %6910 = vmatpush3.bf16.msra.mxu0 %v8113_v63  ;;  %6592 = vmatprep.mubr.msk.f32.mxu0 %vm7225_vm0, %v7224_v4  ;;  %v5109_v8 = vpop.permute.xlu1 %5108 }
0x384b   :  { %6911 = vmatprep.subr.bf16.mxu0 %v7223_v3 }
0x384e   :  { %6913 = vmatpush3.bf16.msra.mxu0 %v8128_v27 }
0x384f   :  { %6914 = vmatprep.subr.bf16.mxu0 %v7223_v3 }
0x3852   :  { %6916 = vmatpush3.bf16.msra.mxu0 %v8142_v52 }
0x3853   :  { %6917 = vmatprep.subr.bf16.mxu0 %v7223_v3 }
0x3856   :  { %6919 = vmatpush3.bf16.msra.mxu0 %v8152_v58 }
0x3857   :  { %6920 = vmatprep.subr.bf16.mxu0 %v7223_v3 }
0x385a   :  { %6922 = vmatpush3.bf16.msra.mxu0 %v8163_v61 }
0x385b   :  { %6923 = vmatprep.subr.bf16.mxu0 %v7223_v3 }
0x385e   :  { %6925 = vmatpush3.bf16.msra.mxu0 %v8173_v19 }
0x3918   :  { %v5019_v11 = vpop.f32.mrb[40].mxu0 }
0x3919   :  { %v6562_v1 = vpop.f32.mrb[41].mxu0 }
0x391c   :  { %v5099_v26 = vpop.f32.mrb[42].mxu0 }
0x391d   :  { %v5105_v55 = vrot.slane %v5099_v26, 7  ;;  %v6567_v51 = vpop.f32.mrb[43].mxu0 }
0x391f   :  { %v5106_v10 = vsel %vm3036_vm5, %v5105_v55, %v5019_v11 }
0x3920   :  { %v5111_v23 = vsel %vm2529_vm3, %v5106_v10, %v5109_v8 }
0x3921   :  { %6593 = vmatmul.mubr.msk.f32.vlgmr.msra.gmra.mrb[44].mxu0 %vm3266_vm8, %v5111_v23 }
0x39f4   :  { %v5181_v54 = vpop.f32.mrb[44].mxu0 }
0x39f5   :  { %v5185_v34 = vadd.f32 %v5181_v54, %v8060_v31  ;;  %v6594_v16 = vpop.f32.mrb[45].mxu0 }
0x39f7   :  { %7192 = vtanh.f32 %v5185_v34  ;;  %v5850_v20 = vmul.f32 -1.442695, %v5185_v34 }
0x39f9   :  { %7194 = vpow2.f32 %v5850_v20 }
0x3a01   :  { %v7193_v24 = vpop.eup %7192 }
0x3a02   :  { %5198 = vrot.lane.b32.xlu1 %v7193_v24, %s7226_s3 }
0x3a03   :  { %v7195_v9 = vpop.eup %7194 }
0x3a04   :  { %v5189_v25 = vadd.f32 1.0, %v7195_v9 }
0x3a06   :  { %7196 = vrcp.f32 %v5189_v25 }
0x3a10   :  { %v7197_v21 = vpop.eup %7196 }
0x3a11   :  { %v5196_v35 = vmul.f32 %v7197_v21, %v5194_v59 }
0x3a74   :  { %v5199_v6 = vpop.permute.xlu1 %5198 }
0x3a75   :  { %v5201_v17 = vmul.f32 %v7197_v21, %v5199_v6 }
0x3a77   :  { %5203 = vrot.lane.b32.xlu0 %v5201_v17, %s7227_s28 }
0x3ae9   :  { %v5204_v38 = vpop.permute.xlu0 %5203 }
0x3aea   :  { %v8511_v0 = vadd.f32 %v5204_v38, %v5196_v35 }
0x3aec   :  { %7198 = vtanh.f32 %v8511_v0 }
0x3af6   :  { %v7199_v39 = vpop.eup %7198 }
0x3af7   :  { %5209 = vrot.lane.b32.xlu1 %v7199_v39, %s7226_s3 }
0x3b69   :  { %v5210_v47 = vpop.permute.xlu1 %5209 }
0x3b6a   :  { %v8515_v45 = vmul.f32 %v7197_v21, %v5210_v47 }
0x3b6c   :  { %5214 = vrot.lane.b32.xlu1 %v8515_v45, %s7227_s28 }
0x3bde   :  { %v5215_v43 = vpop.permute.xlu1 %5214 }
0x3bdf   :  { %6604 = vmatmul.mubr.msk.f32.vlgmr.msra.gmra.mrb[38].mxu1 %vm84_vm1, %v5215_v43 }
0x3be0   :  { %6607 = vmatpush3.msra.mxu1 %v8446_v2  ;;  %6608 = vmatprep.mubr.msk.f32.mxu1 %vm7225_vm0, %v7224_v4 }
0x3be1   :  { %6611 = vmatprep.subr.mxu1 %v7224_v4 }
0x3cb2   :  { %v5284_v56 = vpop.f32.mrb[38].mxu1 }
0x3cb3   :  { %v5295_v42 = vrot.slane %v5284_v56, %v7767_v48  ;;  %v6605_v18 = vpop.f32.mrb[39].mxu1 }
0x3cb5   :  { %v5296_v14 = vcombine.high %v5295_v42, %v5295_v42  ;;  %v5303_v36 = vrot.slane %v5295_v42, %v7767_v48 }
0x3cb7   :  { %v5310_v49 = vrot.slane %v5296_v14, %v7767_v48  ;;  %v5314_v50 = vrot.slane %v5303_v36, %v7436_v33 }
0x3cb9   :  { %v5318_v13 = vrot.slane %v5310_v49, %v7436_v33  ;;  %v5321_v2 = vadd.f32 %v5314_v50, %v8069_v40 }
0x3cbb   :  { %v5322_v53 = vadd.f32 %v5318_v13, %v8073_v46  ;;  %7200 = vtanh.f32 %v5321_v2  ;;  %v5655_v13 = vrot.slane %v8511_v0, 6  ;;  %v5684_v0 = vld [vmem:[%s8623_s17 + $0x18] sm:$0xff] }
0x3cbd   :  { %7202 = vtanh.f32 %v5322_v53 }
0x3cc5   :  { %v7201_v41 = vpop.eup %7200 }
0x3cc6   :  { %v5325_v7 = vmul.f32 %v8462_v12, %v7201_v41 }
0x3cc7   :  { %v7203_v60 = vpop.eup %7202 }
0x3cc8   :  { %v5327_v62 = vsel %vm84_vm1, %v5325_v7, 0.0  ;;  %v5326_v5 = vmul.f32 %v8462_v12, %v7203_v60  ;;  %v5682_v7 = vld [vmem:[%s8623_s17 + $0x8] sm:$0xff]  ;;  %v5683_v60 = vld [vmem:[%s8623_s17 + $0x10] sm:$0xff] }
0x3cc9   :  { %5328 = vadd.xlane.f32.xlu1 %v5327_v62 }
0x3cca   :  { %v5330_v48 = vsel %vm84_vm1, %v5326_v5, 0.0  ;;  %v6954_v5 = vpack.c.bf16 %v5684_v0, %v5683_v60 }
0x3ccb   :  { %5331 = vadd.xlane.f32.xlu0 %v5330_v48 }
0x3d56   :  { %v5329_v22 = vpop.xlane.xlu1 %5328 }
0x3d57   :  { %v5338_v40 = vrot.slane %v5329_v22, %v8089_v15 }
0x3d58   :  { %v5332_v57 = vpop.xlane.xlu0 %5331 }
0x3d59   :  { %v5342_v46 = vrot.slane %v5332_v57, %v8089_v15 }
0x3d5b   :  { %v5343_v28 = vsel %vm3036_vm5, %v5342_v46, %v5338_v40 }
0x3d5c   :  { %v5345_v29 = vsel %vm3039_vm6, %v5343_v28, -inf }
0x3d5d   :  { %5346 = vmax.xlane.f32.xlu1 %v5345_v29  ;;  %v5856_v29 = vld [vmem:[%s8624_s18] ss:$0 sm:$0xff] }
0x3dea   :  { %v5347_v37 = vpop.xlane.xlu1 %5346 }
0x3deb   :  { %v5352_v11 = vrot.slane %v5347_v37, %v7436_v33  ;;  %v5356_v12 = vrot.slane %v5347_v37, %v7429_v30 }
0x3ded   :  { %v5359_v1 = vsub.f32 %v5329_v22, %v5352_v11  ;;  %v5360_v26 = vsub.f32 %v5332_v57, %v5356_v12 }
0x3def   :  { %v5361_v55 = vmul.f32 1.442695, %v5359_v1  ;;  %v5363_v51 = vmul.f32 1.442695, %v5360_v26 }
0x3df1   :  { %7204 = vpow2.f32 %v5361_v55 }
0x3df2   :  { %7206 = vpow2.f32 %v5363_v51 }
0x3dfb   :  { %v7205_v8 = vpop.eup %7204 }
0x3dfc   :  { %v7207_v10 = vpop.eup %7206  ;;  %5368 = vperm.xlu1 %6966, %v7205_v8  }
0x3dfd   :  { %5371 = vperm.xlu0 %6967, %v7207_v10  }
0x3e7b   :  { %v5369_v23 = vpop.permute.xlu1 %5368 }
0x3e7c   :  { %v5372_v54 = vpop.permute.xlu0 %5371  ;;  %v5376_v34 = vrot.slane %v5369_v23, %v8089_v15 }
0x3e7d   :  { %v5380_v16 = vrot.slane %v5372_v54, %v8089_v15 }
0x3e7f   :  { %v5381_v24 = vsel %vm3036_vm5, %v5380_v16, %v5376_v34 }
0x3e80   :  { %v5383_v20 = vsel %vm3039_vm6, %v5381_v24, 0.0 }
0x3e81   :  { %5384 = vadd.xlane.f32.xlu1 %v5383_v20 }
0x3f0e   :  { %v5385_v9 = vpop.xlane.xlu1 %5384 }
0x3f0f   :  { %v5390_v25 = vrot.slane %v5385_v9, %v7436_v33  ;;  %v5394_v21 = vrot.slane %v5385_v9, %v7429_v30 }
0x3f11   :  { %7208 = vrcp.f32 %v5390_v25 }
0x3f12   :  { %7210 = vrcp.f32 %v5394_v21 }
0x3f1b   :  { %v7209_v6 = vpop.eup %7208 }
0x3f1c   :  { %v5398_v17 = vmul.f32 %v7209_v6, %v7205_v8  ;;  %v7211_v59 = vpop.eup %7210 }
0x3f1d   :  { %v5400_v35 = vmul.f32 %v7211_v59, %v7207_v10 }
0x3f1e   :  { %5403 = vperm.xlu0 %6967, %v5398_v17  }
0x3f22   :  { %5483 = vperm.xlu0 %6967, %v5400_v35  }
0x3f26   :  { %5566 = vrot.lane.b32.xlu0 %v8515_v45, %s7229_s8 }
0x3f9d   :  { %v5404_v38 = vpop.permute.xlu0 %5403 }
0x3f9e   :  { %v5408_v39 = vrot.slane %v5404_v38, %v8089_v15 }
0x3fa0   :  { %6609 = vmatmul.mubr.msk.f32.vlgmr.msra.gmra.mrb[40].mxu1 %vm3104_vm7, %v5408_v39 }
0x3fa1   :  { %6612 = vmatpush3.msra.mxu1 %v8396_v44  ;;  %v5484_v33 = vpop.permute.xlu0 %5483  ;;  %6613 = vmatprep.mubr.msk.f32.mxu1 %vm7225_vm0, %v7224_v4 }
0x3fa2   :  { %v5488_v30 = vrot.slane %v5484_v33, %v8089_v15  ;;  %6932 = vmatprep.subr.bf16.mxu1 %v7223_v3 }
0x3fa4   :  { %6614 = vmatmul.mubr.msk.f32.vlgmr.msra.gmra.mrb[42].mxu1 %vm3104_vm7, %v5488_v30 }
0x3fa5   :  { %6934 = vmatpush3.bf16.msra.mxu1 %v8113_v63  ;;  %6640 = vmatprep.mubr.msk.f32.mxu1 %vm7225_vm0, %v7224_v4  ;;  %v5567_v47 = vpop.permute.xlu0 %5566 }
0x3fa6   :  { %6935 = vmatprep.subr.bf16.mxu1 %v7223_v3 }
0x3fa9   :  { %6937 = vmatpush3.bf16.msra.mxu1 %v8128_v27 }
0x3faa   :  { %6938 = vmatprep.subr.bf16.mxu1 %v7223_v3 }
0x3fad   :  { %6940 = vmatpush3.bf16.msra.mxu1 %v8142_v52 }
0x3fae   :  { %6941 = vmatprep.subr.bf16.mxu1 %v7223_v3 }
0x3fb1   :  { %6943 = vmatpush3.bf16.msra.mxu1 %v8152_v58 }
0x3fb2   :  { %6944 = vmatprep.subr.bf16.mxu1 %v7223_v3 }
0x3fb5   :  { %6946 = vmatpush3.bf16.msra.mxu1 %v8163_v61 }
0x3fb6   :  { %6947 = vmatprep.subr.bf16.mxu1 %v7223_v3 }
0x3fb9   :  { %6949 = vmatpush3.bf16.msra.mxu1 %v8173_v19 }
0x4073   :  { %v5477_v4 = vpop.f32.mrb[40].mxu1 }
0x4074   :  { %v6610_v15 = vpop.f32.mrb[41].mxu1 }
0x4077   :  { %v5557_v63 = vpop.f32.mrb[42].mxu1 }
0x4078   :  { %v5563_v27 = vrot.slane %v5557_v63, 7  ;;  %v6615_v44 = vpop.f32.mrb[43].mxu1 }
0x407a   :  { %v5564_v52 = vsel %vm3036_vm5, %v5563_v27, %v5477_v4 }
0x407b   :  { %v5569_v43 = vsel %vm2529_vm3, %v5564_v52, %v5567_v47 }
0x407c   :  { %6641 = vmatmul.mubr.msk.f32.vlgmr.msra.gmra.mrb[44].mxu1 %vm3266_vm8, %v5569_v43 }
0x414f   :  { %v5639_v58 = vpop.f32.mrb[44].mxu1 }
0x4150   :  { %v5644_v56 = vrot.slane %v5639_v58, 6  ;;  %v6642_v42 = vpop.f32.mrb[45].mxu1 }
0x4152   :  { %v5646_v61 = vadd.f32 %v5644_v56, %v8060_v31  ;;  %v5681_v31 = vld [vmem:[%s8623_s17] sm:$0xff] }
0x4153   :  { %v6950_v62 = vpack.c.bf16 %v5682_v7, %v5681_v31 }
0x4154   :  { %7212 = vtanh.f32 %v5646_v61  ;;  %v5855_v19 = vmul.f32 -1.442695, %v5646_v61 }
0x4155   :  { %6951 = vmatprep.subr.bf16.mxu0 %v6950_v62 }
0x4156   :  { %7214 = vpow2.f32 %v5855_v19  ;;  %6953 = vmatpush3.bf16.msra.mxu0 %v6950_v62 }
0x4157   :  { %6955 = vmatprep.subr.bf16.mxu0 %v6954_v5 }
0x415a   :  { %6957 = vmatpush3.bf16.msra.mxu0 %v6954_v5 }
0x415e   :  { %v7213_v3 = vpop.eup %7212 }
0x415f   :  { %5659 = vrot.lane.b32.xlu0 %v7213_v3, %s7226_s3 }
0x4160   :  { %v7215_v18 = vpop.eup %7214 }
0x4161   :  { %v5650_v14 = vadd.f32 1.0, %v7215_v18 }
0x4163   :  { %7216 = vrcp.f32 %v5650_v14 }
0x416d   :  { %v7217_v36 = vpop.eup %7216 }
0x416e   :  { %v5657_v2 = vmul.f32 %v7217_v36, %v5655_v13 }
0x41d1   :  { %v5660_v49 = vpop.permute.xlu0 %5659 }
0x41d2   :  { %v5662_v50 = vmul.f32 %v7217_v36, %v5660_v49 }
0x41d4   :  { %5664 = vrot.lane.b32.xlu0 %v5662_v50, %s7227_s28 }
0x4246   :  { %v5665_v53 = vpop.permute.xlu0 %5664 }
0x4247   :  { %v5667_v41 = vadd.f32 %v5665_v53, %v5657_v2 }
0x4249   :  { %7218 = vtanh.f32 %v5667_v41 }
0x4253   :  { %v7219_v48 = vpop.eup %7218 }
0x4254   :  { %5670 = vrot.lane.b32.xlu0 %v7219_v48, %s7226_s3 }
0x4258   :  { %5694 = vrot.lane.b32.xlu0 %v8440_v32, %s7227_s28 }
0x42c6   :  { %v5671_v22 = vpop.permute.xlu0 %5670 }
0x42c7   :  { %v5673_v57 = vmul.f32 %v7217_v36, %v5671_v22 }
0x42c9   :  { %v5680_v40 = vsel %vm5674_vm9, %v8515_v45, %v5673_v57 }
0x42ca   :  { %5696 = vrot.lane.b32.xlu1 %v5680_v40, %s7227_s28  ;;  %v5695_v46 = vpop.permute.xlu0 %5694 }
0x42cb   :  { %6651 = vmatprep.mubr.msk.f32.mxu0 %vm84_vm1, %v5695_v46 }
0x433c   :  { %v5697_v28 = vpop.permute.xlu1 %5696 }
0x433d   :  { %6652 = vmatmul.mubr.msk.f32.vlgmr.msra.gmra.mrb[46].mxu0 %vm84_vm1, %v5697_v28 }
0x4410   :  { %v6653_v37 = vpop.f32.mrb[46].mxu0 }
0x4411   :  { %v5774_v11 = vadd.f32 %v6653_v37, %v5856_v29  ;;  %v5768_v32 = vpop.f32.mrb[47].mxu0 }
0x4412   :  { %v5769_v12 = vadd.f32 %v5856_v29, %v5768_v32 }
0x4413   :  { %5778 = vst [vmem:[%s8625_s19 + $0x8] sm:$0xf] %v5774_v11 }
0x4414   :  { %5777 = vst [vmem:[%s8625_s19] sm:$0xff] %v5769_v12 }

</bundles_post_ra>
